<compile_context>
chip_gen: v6e
topology: v6e:2x2x1
jax: 0.10.0
libtpu: 0.0.40
codegen_flags: <defaults>
</compile_context>

<pallas_src>
import functools

import jax
import jax.numpy as jnp
import numpy as np
from jax.experimental import pallas as pl
from jax.experimental.pallas import tpu as pltpu

ENCODER_HIDDEN_DIMENSION = 64
DECODER_HIDDEN_DIMENSION = 32   # unused in forward, kept for parity with __init__
EMBEDDING_DIMENSION = 100
NUM_CLASS = 2


def _round_up(x, m):
    return (x + m - 1) // m * m


def _pick_s_block(S, L):
    """Smallest multiple-of-8 divisor of S whose GRU batch (S_blk*L) is >= 128.

    Multiple-of-8 keeps the blocked (B, S_blk, D) output tile sublane-aligned;
    >=128 rows keeps the recurrence matmul's M dimension fed; the smallest such
    divisor maximises grid steps for megacore sharding / DMA pipelining.
    Falls back to S (single grid step) when no such divisor exists.
    """
    for cand in range(8, S, 8):
        if S % cand == 0 and cand * L >= 128:
            return cand
    return S


def _scoped_vmem_limit(estimate_bytes):
    """Scoped-VMEM limit from the actual residency estimate + headroom, clamped
    to (7/8 of) the chip's physical VMEM (64 MiB v7x, 128 MiB v5e/v6e)."""
    try:
        cap = pltpu.get_tpu_info().vmem_capacity_bytes
    except Exception:               # non-TPU trace / API drift: be conservative
        cap = 64 * 1024 * 1024
    want = int(estimate_bytes) + (8 << 20)
    return int(max(16 << 20, min(want, (cap * 7) // 8)))


# ------------------------------------------------------------------ in-kernel helpers
def _bigru_core(xx, wx, whh, bx, bhn, p_ref, hf_ref, hb_ref, H):
    """Fused bidirectional GRU.

    xx : (T, N, 2F) value, columns [x_t ; x_{T-1-t}] (time-reversed copy built
         in the XLA wrapper), already in the MXU compute dtype (bf16).
    wx : (2F, 6H) input projection, columns [r|z|n], each gate 2H wide and
         block-diagonal (fwd top-left / bwd bottom-right).
    whh: (2H, 6H) hidden projection, same layout.
    bx : (1, 6H) f32; b_ih for all gates with b_hh folded in for r and z.
    bhn: (1, 2H) f32; the n-gate b_hh (must stay inside the r*(.) term).
    p_ref : (T, N, 6H) f32 scratch -- hoisted input projections.
    hf_ref: (T, N, H)  f32 scratch -- forward hidden states (natural time).
    hb_ref: (T, N, H)  f32 scratch -- backward hidden states, written at the
            un-reversed time index so no flip is needed afterwards.
    Returns (T, N, 2H) f32, time-aligned for both directions.
    """
    T, N, F2 = xx.shape
    G = 2 * H

    # Hoisted input projection: one MXU matmul covers all T steps & both dirs.
    p = jnp.dot(xx.reshape(T * N, F2), wx,
                preferred_element_type=jnp.float32) + bx            # (T*N, 6H) f32
    p_ref[...] = p.reshape(T, N, 3 * G)

    bhn_b = jnp.broadcast_to(bhn, (N, G))     # hoisted: no per-step broadcast

    def step(t, h):
        pt = p_ref[t]                                               # (N, 6H)
        gh = jnp.dot(h.astype(whh.dtype), whh,
                     preferred_element_type=jnp.float32)            # (N, 6H)
        r = jax.nn.sigmoid(pt[:, :G] + gh[:, :G])
        z = jax.nn.sigmoid(pt[:, G:2 * G] + gh[:, G:2 * G])
        n = jnp.tanh(pt[:, 2 * G:] + r * (gh[:, 2 * G:] + bhn_b))
        h_new = (1.0 - z) * n + z * h
        hf_ref[t] = h_new[:, :H]              # forward half, natural time
        hb_ref[T - 1 - t] = h_new[:, H:]      # backward half, un-reversed time
        return h_new

    jax.lax.fori_loop(0, T, step, jnp.zeros((N, G), jnp.float32),
                      unroll=T <= 8)
    return jnp.concatenate([hf_ref[...], hb_ref[...]], axis=-1)     # (T, N, 2H)


def _attention(g, w, b, crow):
    """HAN attention over axis 1 of g: (M, R, D) -> (M, D).

    Scores are computed lane-dense as (M, R); the (D,1) context matmul is a VPU
    multiply + lane reduction (the scalar context bias is dropped -- softmax is
    shift-invariant); the softmax divide uses the EUP approx reciprocal.
    """
    M, R, D = g.shape
    u = jnp.tanh(jnp.dot(g.reshape(M * R, D).astype(w.dtype), w,
                         preferred_element_type=jnp.float32) + b)
    u = u.reshape(M, R, D)
    c = jnp.sum(u * crow, axis=-1)                          # (M, R) lane-dense
    c = c - jnp.max(c, axis=-1, keepdims=True)
    e = jnp.exp(c)
    alpha = e * pl.reciprocal(jnp.sum(e, axis=-1, keepdims=True), approx=True)
    return jnp.sum(alpha[:, :, None] * g, axis=1)           # (M, D)


# --------------------------------------------------------------------------- kernels
def _word_kernel(xx_ref, wx_ref, whh_ref, bx_ref, bhn_ref,
                 aw_ref, ab_ref, ac_ref,
                 ws_ref, p_ref, hf_ref, hb_ref, *, L, H):
    """Word-level biGRU + word attention for one block of sentences."""
    B, s_blk = ws_ref.shape[0], ws_ref.shape[1]
    D = 2 * H
    xx = xx_ref[...].reshape(B, s_blk * L, xx_ref.shape[-1])         # (B, N, 2F)
    gw = _bigru_core(xx, wx_ref[...], whh_ref[...], bx_ref[...], bhn_ref[...],
                     p_ref, hf_ref, hb_ref, H)                       # (B, N, D)
    ws = _attention(gw.reshape(B * s_blk, L, D),
                    aw_ref[...], ab_ref[...], ac_ref[...])           # (B*s_blk, D)
    ws_ref[...] = ws.reshape(B, s_blk, D)


def _sent_kernel(xx_ref, wx_ref, whh_ref, bx_ref, bhn_ref,
                 aw_ref, ab_ref, ac_ref, cw_ref, cb_ref,
                 out_ref, p_ref, hf_ref, hb_ref, *, H):
    """Sentence-level biGRU + attention + classifier softmax."""
    gs = _bigru_core(xx_ref[...], wx_ref[...], whh_ref[...], bx_ref[...],
                     bhn_ref[...], p_ref, hf_ref, hb_ref, H)         # (B, S, D)
    v = _attention(gs, aw_ref[...], ab_ref[...], ac_ref[...])        # (B, D)
    logits = jnp.dot(v, cw_ref[...],
                     preferred_element_type=jnp.float32) + cb_ref[...]
    logits = logits - jnp.max(logits, axis=-1, keepdims=True)
    e = jnp.exp(logits)
    out_ref[...] = e / jnp.sum(e, axis=-1, keepdims=True)


# ----------------------------------------------------------------- parameter plumbing
def _fuse_bigru_params(p, f_pad=None):
    """Pack per-direction GRU weights into the fused block-diagonal layout.

    Returns wx (2F_pad, 6H), whh (2H, 6H), bx (1, 6H) with the r/z-gate b_hh
    folded into b_ih, and bhn (1, 2H) = the n-gate b_hh.
    """
    H = p["whh_f"].shape[0]
    F = p["wih_f"].shape[0]
    Fp = F if f_pad is None else f_pad

    def pad_rows(a):
        if Fp == F:
            return a
        return jnp.concatenate([a, jnp.zeros((Fp - F, a.shape[1]), a.dtype)], 0)

    def blockdiag(a, b):            # a: (Fa, H), b: (Fb, H) -> (Fa+Fb, 2H)
        top = jnp.concatenate([a, jnp.zeros((a.shape[0], H), a.dtype)], 1)
        bot = jnp.concatenate([jnp.zeros((b.shape[0], H), b.dtype), b], 1)
        return jnp.concatenate([top, bot], 0)

    wx_cols, wh_cols, bx_cols, bhn = [], [], [], None
    for gi in range(3):             # r, z, n gates
        sl = slice(gi * H, (gi + 1) * H)
        wx_cols.append(blockdiag(pad_rows(p["wih_f"][:, sl]),
                                 pad_rows(p["wih_b"][:, sl])))
        wh_cols.append(blockdiag(p["whh_f"][:, sl], p["whh_b"][:, sl]))
        b_ih = jnp.concatenate([p["bih_f"][:, sl], p["bih_b"][:, sl]], axis=1)
        b_hh = jnp.concatenate([p["bhh_f"][:, sl], p["bhh_b"][:, sl]], axis=1)
        if gi < 2:                  # sigmoid gates: bhh folds onto the x side
            bx_cols.append(b_ih + b_hh)
        else:                       # n-gate bhh must stay inside r*(.)
            bx_cols.append(b_ih)
            bhn = b_hh
    return dict(wx=jnp.concatenate(wx_cols, axis=1),     # (2F_pad, 6H)
                whh=jnp.concatenate(wh_cols, axis=1),    # (2H, 6H)
                bx=jnp.concatenate(bx_cols, axis=1),     # (1, 6H)
                bhn=bhn)                                 # (1, 2H)


def init_params(key, vocab_size, E=EMBEDDING_DIMENSION, H=ENCODER_HIDDEN_DIMENSION,
                C=NUM_CLASS):
    keys = iter(jax.random.split(key, 32))

    def nrm(shape, scale=0.1):
        return scale * jax.random.normal(next(keys), shape, dtype=jnp.float32)

    D = 2 * H

    def gru_params(in_dim):
        return dict(
            wih_f=nrm((in_dim, 3 * H)), whh_f=nrm((H, 3 * H)),
            bih_f=nrm((1, 3 * H)), bhh_f=nrm((1, 3 * H)),
            wih_b=nrm((in_dim, 3 * H)), whh_b=nrm((H, 3 * H)),
            bih_b=nrm((1, 3 * H)), bhh_b=nrm((1, 3 * H)),
        )

    def attn_params():
        return dict(w=nrm((D, D)), b=nrm((1, D)), cw=nrm((D, 1)), cb=nrm((1, 1)))

    return dict(
        embedding=nrm((vocab_size, E)),
        word_gru=gru_params(E),
        word_attn=attn_params(),
        sent_gru=gru_params(D),
        sent_attn=attn_params(),
        cls_w=nrm((D, C)),
        cls_b=nrm((1, C)),
    )


# ------------------------------------------------------------------------- entry point
def han_forward(params, text, s_block=None, compute_dtype=jnp.bfloat16):
    """text: int32 (B, num_sentences, seq_len) -> probs (B, num_class)."""
    B, S, L = text.shape
    H = params["word_gru"]["whh_f"].shape[0]
    D = 2 * H
    C = params["cls_w"].shape[1]
    E = params["embedding"].shape[1]
    Ep = _round_up(E, 128)                       # lane-dense embedding width
    cdt = compute_dtype
    cbytes = jnp.dtype(cdt).itemsize
    f32 = 4

    if s_block is None:
        s_block = _pick_s_block(S, L)
    assert S % s_block == 0, "sentence block must divide S"
    assert s_block == S or s_block % 8 == 0, "blocked out-spec needs 8-aligned tile"
    n_blk = S // s_block
    N = s_block * L

    wg = _fuse_bigru_params(params["word_gru"], f_pad=Ep)
    sg = _fuse_bigru_params(params["sent_gru"])
    wa, sa = params["word_attn"], params["sent_attn"]

    # Embedding gather stays in plain JAX (XLA gather); table is zero-padded to
    # a 128-wide row and cast to the MXU compute dtype so x arrives bf16.
    emb = params["embedding"]
    if Ep != E:
        emb = jnp.concatenate([emb, jnp.zeros((emb.shape[0], Ep - E), emb.dtype)], 1)
    x = jnp.take(emb.astype(cdt), text.reshape(B, S * L), axis=0)
    x = x.reshape(B, S, L, Ep)
    # Fused-direction input [x ; time-reversed x]; the reversal over the GRU
    # time axis (= comment batch B) is done here in XLA, not inside the kernel.
    xx = jnp.concatenate([x, x[::-1]], axis=-1)                     # (B, S, L, 2Ep)

    def _const_spec(a):
        return pl.BlockSpec(a.shape, lambda i, _nd=a.ndim: (0,) * _nd)

    def _nbytes(*arrs):
        return sum(int(a.size) * a.dtype.itemsize for a in arrs)

    # ----------------------------- word-level stage (gridded over sentence blocks)
    word_args = (xx,
                 wg["wx"].astype(cdt), wg["whh"].astype(cdt), wg["bx"], wg["bhn"],
                 wa["w"].astype(cdt), wa["b"], wa["cw"].T)
    word_in_specs = ([pl.BlockSpec((B, s_block, L, 2 * Ep), lambda i: (0, i, 0, 0))]
                     + [_const_spec(a) for a in word_args[1:]])
    word_scratch_bytes = B * N * (3 * D + 2 * H) * f32
    word_io_bytes = B * s_block * (L * 2 * Ep * cbytes + D * f32)
    word_vmem = _scoped_vmem_limit(3 * (word_io_bytes + word_scratch_bytes)
                                   + 2 * _nbytes(*word_args[1:]))

    word_s = pl.pallas_call(
        functools.partial(_word_kernel, L=L, H=H),
        grid=(n_blk,),
        out_shape=jax.ShapeDtypeStruct((B, S, D), jnp.float32),
        in_specs=word_in_specs,
        out_specs=pl.BlockSpec((B, s_block, D), lambda i: (0, i, 0)),
        scratch_shapes=[pltpu.VMEM((B, N, 3 * D), jnp.float32),
                        pltpu.VMEM((B, N, H), jnp.float32),
                        pltpu.VMEM((B, N, H), jnp.float32)],
        compiler_params=pltpu.CompilerParams(
            dimension_semantics=("parallel",),
            vmem_limit_bytes=word_vmem),
    )(*word_args)                                                    # (B, S, D) f32

    # ----------------------------- sentence-level stage (tiny, single step)
    xx_s = jnp.concatenate([word_s, word_s[::-1]], axis=-1).astype(cdt)   # (B, S, 2D)
    sent_args = (xx_s,
                 sg["wx"].astype(cdt), sg["whh"].astype(cdt), sg["bx"], sg["bhn"],
                 sa["w"].astype(cdt), sa["b"], sa["cw"].T,
                 params["cls_w"], params["cls_b"])
    sent_scratch_bytes = B * S * (3 * D + 2 * H) * f32
    sent_io_bytes = B * S * 2 * D * cbytes + B * C * f32
    sent_vmem = _scoped_vmem_limit(3 * (sent_io_bytes + sent_scratch_bytes)
                                   + 2 * _nbytes(*sent_args[1:]))

    vmem_spec = pl.BlockSpec(memory_space=pltpu.MemorySpace.VMEM)
    return pl.pallas_call(
        functools.partial(_sent_kernel, H=H),
        out_shape=jax.ShapeDtypeStruct((B, C), jnp.float32),
        in_specs=[vmem_spec] * len(sent_args),
        out_specs=vmem_spec,
        scratch_shapes=[pltpu.VMEM((B, S, 3 * D), jnp.float32),
                        pltpu.VMEM((B, S, H), jnp.float32),
                        pltpu.VMEM((B, S, H), jnp.float32)],
        compiler_params=pltpu.CompilerParams(vmem_limit_bytes=sent_vmem),
    )(*sent_args)


# ------------------------------------------------------------------ pure-JAX reference
def _ref_gru_dir(x, wih, whh, bih, bhh, reverse):
    T, N, _ = x.shape
    H = whh.shape[0]
    hp = jax.lax.Precision.HIGHEST

    def cell(h, xt):
        gx = jnp.dot(xt, wih, precision=hp) + bih
        gh = jnp.dot(h, whh, precision=hp) + bhh
        r = jax.nn.sigmoid(gx[:, :H] + gh[:, :H])
        z = jax.nn.sigmoid(gx[:, H:2 * H] + gh[:, H:2 * H])
        n = jnp.tanh(gx[:, 2 * H:] + r * gh[:, 2 * H:])
        hn = (1.0 - z) * n + z * h
        return hn, hn

    xs = x[::-1] if reverse else x
    _, ys = jax.lax.scan(cell, jnp.zeros((N, H), jnp.float32), xs)
    return ys[::-1] if reverse else ys


def _ref_bigru(x, p):
    return jnp.concatenate(
        [_ref_gru_dir(x, p["wih_f"], p["whh_f"], p["bih_f"], p["bhh_f"], False),
         _ref_gru_dir(x, p["wih_b"], p["whh_b"], p["bih_b"], p["bhh_b"], True)], axis=-1)


def _ref_attention(g, p):
    hp = jax.lax.Precision.HIGHEST
    u = jnp.tanh(jnp.einsum("tnd,de->tne", g, p["w"], precision=hp) + p["b"])
    c = jnp.einsum("tnd,do->tno", u, p["cw"], precision=hp) + p["cb"]
    alpha = jax.nn.softmax(c, axis=1)
    return jnp.sum(alpha * g, axis=1, keepdims=True)


def ref_forward(params, text):
    B, S, L = text.shape
    hp = jax.lax.Precision.HIGHEST
    word_s = []
    for j in range(S):
        x = jnp.take(params["embedding"], text[:, j, :], axis=0)
        g = _ref_bigru(x, params["word_gru"])
        word_s.append(_ref_attention(g, params["word_attn"]))
    word_s = jnp.concatenate(word_s, axis=1)
    g = _ref_bigru(word_s, params["sent_gru"])
    v = _ref_attention(g, params["sent_attn"])
    logits = jnp.dot(v[:, 0, :], params["cls_w"], precision=hp) + params["cls_b"]
    return jax.nn.softmax(logits, axis=-1)


# --------------------------------------------------------------------------- main
if __name__ == "__main__":
    key = jax.random.PRNGKey(0)
    k_param, k_text = jax.random.split(key)

    VOCAB_SIZE = 50
    B, S, L = 2, 16, 16     # batch, sentences per comment, words per sentence
    # -> word stage: s_block=8, grid=(2,), GRU batch per block = 128 rows

    params = init_params(k_param, VOCAB_SIZE)
    text = jax.random.randint(k_text, (B, S, L), 0, VOCAB_SIZE, dtype=jnp.int32)

    out = jax.jit(han_forward)(params, text)
    out = jax.block_until_ready(out)

    assert out.shape == (B, NUM_CLASS), out.shape
    ref = jax.block_until_ready(jax.jit(ref_forward)(params, text))
    np.testing.assert_allclose(np.asarray(out), np.asarray(ref), rtol=5e-3, atol=5e-3)

    print("KERNEL_OK")
</pallas_src>

<mosaic_0001>
module attributes {stable_mosaic.version = 11 : i64} {
  func.func @_word_kernel(%arg0: i32, %arg1: memref<2x8x16x256xbf16, #tpu.memory_space<vmem>>, %arg2: memref<256x384xbf16, #tpu.memory_space<vmem>>, %arg3: memref<128x384xbf16, #tpu.memory_space<vmem>>, %arg4: memref<1x384xf32, #tpu.memory_space<vmem>>, %arg5: memref<1x128xf32, #tpu.memory_space<vmem>>, %arg6: memref<128x128xbf16, #tpu.memory_space<vmem>>, %arg7: memref<1x128xf32, #tpu.memory_space<vmem>>, %arg8: memref<1x128xf32, #tpu.memory_space<vmem>>, %arg9: memref<2x8x128xf32, #tpu.memory_space<vmem>>, %arg10: memref<2x128x384xf32, #tpu.memory_space<vmem>>, %arg11: memref<2x128x64xf32, #tpu.memory_space<vmem>>, %arg12: memref<2x128x64xf32, #tpu.memory_space<vmem>>) attributes {dimension_semantics = [#tpu.dimension_semantics<parallel>], iteration_bounds = array<i64: 2>, scalar_prefetch = 0 : i64, scratch_operands = 3 : i64, tpu.core_type = #tpu.core_type<tc>, window_params = [{transform_indices = @transform_0, window_bounds = array<i64: 2, 8, 16, 256>}, {pipeline_mode = #tpu.pipeline_mode<synchronous>, transform_indices = @transform_1, window_bounds = array<i64: 256, 384>}, {pipeline_mode = #tpu.pipeline_mode<synchronous>, transform_indices = @transform_2, window_bounds = array<i64: 128, 384>}, {pipeline_mode = #tpu.pipeline_mode<synchronous>, transform_indices = @transform_3, window_bounds = array<i64: 1, 384>}, {pipeline_mode = #tpu.pipeline_mode<synchronous>, transform_indices = @transform_4, window_bounds = array<i64: 1, 128>}, {pipeline_mode = #tpu.pipeline_mode<synchronous>, transform_indices = @transform_5, window_bounds = array<i64: 128, 128>}, {pipeline_mode = #tpu.pipeline_mode<synchronous>, transform_indices = @transform_6, window_bounds = array<i64: 1, 128>}, {pipeline_mode = #tpu.pipeline_mode<synchronous>, transform_indices = @transform_7, window_bounds = array<i64: 1, 128>}, {transform_indices = @transform_8, window_bounds = array<i64: 2, 8, 128>}]} {
    %c0 = arith.constant 0 : index
    %c0_0 = arith.constant 0 : index
    %c0_1 = arith.constant 0 : index
    %c0_2 = arith.constant 0 : index
    %0 = vector.load %arg1[%c0, %c0_0, %c0_1, %c0_2] : memref<2x8x16x256xbf16, #tpu.memory_space<vmem>>, vector<2x8x16x256xbf16>
    %1 = vector.shape_cast %0 : vector<2x8x16x256xbf16> to vector<2x128x256xbf16>
    %c0_3 = arith.constant 0 : index
    %c0_4 = arith.constant 0 : index
    %2 = vector.load %arg2[%c0_3, %c0_4] : memref<256x384xbf16, #tpu.memory_space<vmem>>, vector<256x384xbf16>
    %c0_5 = arith.constant 0 : index
    %c0_6 = arith.constant 0 : index
    %3 = vector.load %arg3[%c0_5, %c0_6] : memref<128x384xbf16, #tpu.memory_space<vmem>>, vector<128x384xbf16>
    %c0_7 = arith.constant 0 : index
    %c0_8 = arith.constant 0 : index
    %4 = vector.load %arg4[%c0_7, %c0_8] : memref<1x384xf32, #tpu.memory_space<vmem>>, vector<1x384xf32>
    %c0_9 = arith.constant 0 : index
    %c0_10 = arith.constant 0 : index
    %5 = vector.load %arg5[%c0_9, %c0_10] : memref<1x128xf32, #tpu.memory_space<vmem>>, vector<1x128xf32>
    %6 = vector.shape_cast %1 : vector<2x128x256xbf16> to vector<256x256xbf16>
    %cst = arith.constant dense<0.000000e+00> : vector<256x384xf32>
    %7 = tpu.matmul %6, %2, %cst {dimension_numbers = #tpu.dot_dimension_numbers<[1], [0], [0], [1], [0, 0, 1, 1], [], []>} : vector<256x256xbf16>, vector<256x384xbf16>, vector<256x384xf32> -> vector<256x384xf32>
    %8 = vector.broadcast %4 : vector<1x384xf32> to vector<256x384xf32>
    %9 = arith.addf %7, %8 : vector<256x384xf32>
    %10 = vector.shape_cast %9 : vector<256x384xf32> to vector<2x128x384xf32>
    %c0_11 = arith.constant 0 : index
    %c0_12 = arith.constant 0 : index
    %c0_13 = arith.constant 0 : index
    %11 = vector.load %arg10[%c0_11, %c0_12, %c0_13] : memref<2x128x384xf32, #tpu.memory_space<vmem>>, vector<2x128x384xf32>
    tpu.vector_store %arg10[%c0_11, %c0_12, %c0_13], %10 {strides = array<i32>} : memref<2x128x384xf32, #tpu.memory_space<vmem>>, vector<2x128x384xf32>,
    %12 = vector.shape_cast %5 : vector<1x128xf32> to vector<1x128xf32>
    %13 = vector.broadcast %12 : vector<1x128xf32> to vector<128x128xf32>
    %cst_14 = arith.constant 0.000000e+00 : f32
    %14 = vector.broadcast %cst_14 : f32 to vector<128x128xf32>
    %c0_i32 = arith.constant 0 : i32
    %15 = arith.index_cast %c0_i32 : i32 to index
    %c0_15 = arith.constant 0 : index
    %c0_16 = arith.constant 0 : index
    %16 = vector.load %arg10[%15, %c0_15, %c0_16] : memref<2x128x384xf32, #tpu.memory_space<vmem>>, vector<1x128x384xf32>
    %17 = vector.shape_cast %16 : vector<1x128x384xf32> to vector<128x384xf32>
    %18 = arith.truncf %14 : vector<128x128xf32> to vector<128x128xbf16>
    %cst_17 = arith.constant dense<0.000000e+00> : vector<128x384xf32>
    %19 = tpu.matmul %18, %3, %cst_17 {dimension_numbers = #tpu.dot_dimension_numbers<[1], [0], [0], [1], [0, 0, 1, 1], [], []>} : vector<128x128xbf16>, vector<128x384xbf16>, vector<128x384xf32> -> vector<128x384xf32>
    %20 = vector.extract_strided_slice %17 {offsets = [0, 0], sizes = [128, 128], strides = [1, 1]} : vector<128x384xf32> to vector<128x128xf32>
    %21 = vector.extract_strided_slice %19 {offsets = [0, 0], sizes = [128, 128], strides = [1, 1]} : vector<128x384xf32> to vector<128x128xf32>
    %22 = arith.addf %20, %21 : vector<128x128xf32>
    %23 = arith.negf %22 : vector<128x128xf32>
    %24 = math.exp %23 : vector<128x128xf32>
    %cst_18 = arith.constant 1.000000e+00 : f32
    %25 = vector.broadcast %cst_18 : f32 to vector<128x128xf32>
    %26 = arith.addf %25, %24 : vector<128x128xf32>
    %27 = arith.divf %25, %26 : vector<128x128xf32>
    %28 = vector.extract_strided_slice %17 {offsets = [0, 128], sizes = [128, 128], strides = [1, 1]} : vector<128x384xf32> to vector<128x128xf32>
    %29 = vector.extract_strided_slice %19 {offsets = [0, 128], sizes = [128, 128], strides = [1, 1]} : vector<128x384xf32> to vector<128x128xf32>
    %30 = arith.addf %28, %29 : vector<128x128xf32>
    %31 = arith.negf %30 : vector<128x128xf32>
    %32 = math.exp %31 : vector<128x128xf32>
    %cst_19 = arith.constant 1.000000e+00 : f32
    %33 = vector.broadcast %cst_19 : f32 to vector<128x128xf32>
    %34 = arith.addf %33, %32 : vector<128x128xf32>
    %35 = arith.divf %33, %34 : vector<128x128xf32>
    %36 = vector.extract_strided_slice %17 {offsets = [0, 256], sizes = [128, 128], strides = [1, 1]} : vector<128x384xf32> to vector<128x128xf32>
    %37 = vector.extract_strided_slice %19 {offsets = [0, 256], sizes = [128, 128], strides = [1, 1]} : vector<128x384xf32> to vector<128x128xf32>
    %38 = arith.addf %37, %13 : vector<128x128xf32>
    %39 = arith.mulf %27, %38 : vector<128x128xf32>
    %40 = arith.addf %36, %39 : vector<128x128xf32>
    %41 = math.tanh %40 : vector<128x128xf32>
    %cst_20 = arith.constant 1.000000e+00 : f32
    %42 = vector.broadcast %cst_20 : f32 to vector<128x128xf32>
    %43 = arith.subf %42, %35 : vector<128x128xf32>
    %44 = arith.mulf %43, %41 : vector<128x128xf32>
    %45 = arith.mulf %35, %14 : vector<128x128xf32>
    %46 = arith.addf %44, %45 : vector<128x128xf32>
    %47 = vector.extract_strided_slice %46 {offsets = [0, 0], sizes = [128, 64], strides = [1, 1]} : vector<128x128xf32> to vector<128x64xf32>
    %48 = arith.index_cast %c0_i32 : i32 to index
    %c0_21 = arith.constant 0 : index
    %c0_22 = arith.constant 0 : index
    %49 = vector.load %arg11[%48, %c0_21, %c0_22] : memref<2x128x64xf32, #tpu.memory_space<vmem>>, vector<1x128x64xf32>
    %50 = vector.shape_cast %49 : vector<1x128x64xf32> to vector<128x64xf32>
    %51 = vector.shape_cast %47 : vector<128x64xf32> to vector<1x128x64xf32>
    tpu.vector_store %arg11[%48, %c0_21, %c0_22], %51 {strides = array<i32>} : memref<2x128x64xf32, #tpu.memory_space<vmem>>, vector<1x128x64xf32>,
    %52 = vector.extract_strided_slice %46 {offsets = [0, 64], sizes = [128, 64], strides = [1, 1]} : vector<128x128xf32> to vector<128x64xf32>
    %c1_i32 = arith.constant 1 : i32
    %53 = arith.subi %c1_i32, %c0_i32 : i32
    %54 = arith.index_cast %53 : i32 to index
    %c0_23 = arith.constant 0 : index
    %c0_24 = arith.constant 0 : index
    %55 = vector.load %arg12[%54, %c0_23, %c0_24] : memref<2x128x64xf32, #tpu.memory_space<vmem>>, vector<1x128x64xf32>
    %56 = vector.shape_cast %55 : vector<1x128x64xf32> to vector<128x64xf32>
    %57 = vector.shape_cast %52 : vector<128x64xf32> to vector<1x128x64xf32>
    tpu.vector_store %arg12[%54, %c0_23, %c0_24], %57 {strides = array<i32>} : memref<2x128x64xf32, #tpu.memory_space<vmem>>, vector<1x128x64xf32>,
    %c1_i32_25 = arith.constant 1 : i32
    %58 = arith.index_cast %c1_i32_25 : i32 to index
    %c0_26 = arith.constant 0 : index
    %c0_27 = arith.constant 0 : index
    %59 = vector.load %arg10[%58, %c0_26, %c0_27] : memref<2x128x384xf32, #tpu.memory_space<vmem>>, vector<1x128x384xf32>
    %60 = vector.shape_cast %59 : vector<1x128x384xf32> to vector<128x384xf32>
    %61 = arith.truncf %46 : vector<128x128xf32> to vector<128x128xbf16>
    %cst_28 = arith.constant dense<0.000000e+00> : vector<128x384xf32>
    %62 = tpu.matmul %61, %3, %cst_28 {dimension_numbers = #tpu.dot_dimension_numbers<[1], [0], [0], [1], [0, 0, 1, 1], [], []>} : vector<128x128xbf16>, vector<128x384xbf16>, vector<128x384xf32> -> vector<128x384xf32>
    %63 = vector.extract_strided_slice %60 {offsets = [0, 0], sizes = [128, 128], strides = [1, 1]} : vector<128x384xf32> to vector<128x128xf32>
    %64 = vector.extract_strided_slice %62 {offsets = [0, 0], sizes = [128, 128], strides = [1, 1]} : vector<128x384xf32> to vector<128x128xf32>
    %65 = arith.addf %63, %64 : vector<128x128xf32>
    %66 = arith.negf %65 : vector<128x128xf32>
    %67 = math.exp %66 : vector<128x128xf32>
    %cst_29 = arith.constant 1.000000e+00 : f32
    %68 = vector.broadcast %cst_29 : f32 to vector<128x128xf32>
    %69 = arith.addf %68, %67 : vector<128x128xf32>
    %70 = arith.divf %68, %69 : vector<128x128xf32>
    %71 = vector.extract_strided_slice %60 {offsets = [0, 128], sizes = [128, 128], strides = [1, 1]} : vector<128x384xf32> to vector<128x128xf32>
    %72 = vector.extract_strided_slice %62 {offsets = [0, 128], sizes = [128, 128], strides = [1, 1]} : vector<128x384xf32> to vector<128x128xf32>
    %73 = arith.addf %71, %72 : vector<128x128xf32>
    %74 = arith.negf %73 : vector<128x128xf32>
    %75 = math.exp %74 : vector<128x128xf32>
    %cst_30 = arith.constant 1.000000e+00 : f32
    %76 = vector.broadcast %cst_30 : f32 to vector<128x128xf32>
    %77 = arith.addf %76, %75 : vector<128x128xf32>
    %78 = arith.divf %76, %77 : vector<128x128xf32>
    %79 = vector.extract_strided_slice %60 {offsets = [0, 256], sizes = [128, 128], strides = [1, 1]} : vector<128x384xf32> to vector<128x128xf32>
    %80 = vector.extract_strided_slice %62 {offsets = [0, 256], sizes = [128, 128], strides = [1, 1]} : vector<128x384xf32> to vector<128x128xf32>
    %81 = arith.addf %80, %13 : vector<128x128xf32>
    %82 = arith.mulf %70, %81 : vector<128x128xf32>
    %83 = arith.addf %79, %82 : vector<128x128xf32>
    %84 = math.tanh %83 : vector<128x128xf32>
    %cst_31 = arith.constant 1.000000e+00 : f32
    %85 = vector.broadcast %cst_31 : f32 to vector<128x128xf32>
    %86 = arith.subf %85, %78 : vector<128x128xf32>
    %87 = arith.mulf %86, %84 : vector<128x128xf32>
    %88 = arith.mulf %78, %46 : vector<128x128xf32>
    %89 = arith.addf %87, %88 : vector<128x128xf32>
    %90 = vector.extract_strided_slice %89 {offsets = [0, 0], sizes = [128, 64], strides = [1, 1]} : vector<128x128xf32> to vector<128x64xf32>
    %91 = arith.index_cast %c1_i32_25 : i32 to index
    %c0_32 = arith.constant 0 : index
    %c0_33 = arith.constant 0 : index
    %92 = vector.load %arg11[%91, %c0_32, %c0_33] : memref<2x128x64xf32, #tpu.memory_space<vmem>>, vector<1x128x64xf32>
    %93 = vector.shape_cast %92 : vector<1x128x64xf32> to vector<128x64xf32>
    %94 = vector.shape_cast %90 : vector<128x64xf32> to vector<1x128x64xf32>
    tpu.vector_store %arg11[%91, %c0_32, %c0_33], %94 {strides = array<i32>} : memref<2x128x64xf32, #tpu.memory_space<vmem>>, vector<1x128x64xf32>,
    %95 = vector.extract_strided_slice %89 {offsets = [0, 64], sizes = [128, 64], strides = [1, 1]} : vector<128x128xf32> to vector<128x64xf32>
    %c1_i32_34 = arith.constant 1 : i32
    %96 = arith.subi %c1_i32_34, %c1_i32_25 : i32
    %97 = arith.index_cast %96 : i32 to index
    %c0_35 = arith.constant 0 : index
    %c0_36 = arith.constant 0 : index
    %98 = vector.load %arg12[%97, %c0_35, %c0_36] : memref<2x128x64xf32, #tpu.memory_space<vmem>>, vector<1x128x64xf32>
    %99 = vector.shape_cast %98 : vector<1x128x64xf32> to vector<128x64xf32>
    %100 = vector.shape_cast %95 : vector<128x64xf32> to vector<1x128x64xf32>
    tpu.vector_store %arg12[%97, %c0_35, %c0_36], %100 {strides = array<i32>} : memref<2x128x64xf32, #tpu.memory_space<vmem>>, vector<1x128x64xf32>,
    %c2_i32 = arith.constant 2 : i32
    %c0_37 = arith.constant 0 : index
    %c0_38 = arith.constant 0 : index
    %c0_39 = arith.constant 0 : index
    %101 = vector.load %arg11[%c0_37, %c0_38, %c0_39] : memref<2x128x64xf32, #tpu.memory_space<vmem>>, vector<2x128x64xf32>
    %c0_40 = arith.constant 0 : index
    %c0_41 = arith.constant 0 : index
    %c0_42 = arith.constant 0 : index
    %102 = vector.load %arg12[%c0_40, %c0_41, %c0_42] : memref<2x128x64xf32, #tpu.memory_space<vmem>>, vector<2x128x64xf32>
    %103 = tpu.concatenate %101, %102 in 2 : vector<2x128x64xf32>, vector<2x128x64xf32> -> vector<2x128x128xf32>
    %104 = vector.shape_cast %103 : vector<2x128x128xf32> to vector<16x16x128xf32>
    %c0_43 = arith.constant 0 : index
    %c0_44 = arith.constant 0 : index
    %105 = vector.load %arg6[%c0_43, %c0_44] : memref<128x128xbf16, #tpu.memory_space<vmem>>, vector<128x128xbf16>
    %c0_45 = arith.constant 0 : index
    %c0_46 = arith.constant 0 : index
    %106 = vector.load %arg7[%c0_45, %c0_46] : memref<1x128xf32, #tpu.memory_space<vmem>>, vector<1x128xf32>
    %c0_47 = arith.constant 0 : index
    %c0_48 = arith.constant 0 : index
    %107 = vector.load %arg8[%c0_47, %c0_48] : memref<1x128xf32, #tpu.memory_space<vmem>>, vector<1x128xf32>
    %108 = vector.shape_cast %104 : vector<16x16x128xf32> to vector<256x128xf32>
    %109 = arith.truncf %108 : vector<256x128xf32> to vector<256x128xbf16>
    %cst_49 = arith.constant dense<0.000000e+00> : vector<256x128xf32>
    %110 = tpu.matmul %109, %105, %cst_49 {dimension_numbers = #tpu.dot_dimension_numbers<[1], [0], [0], [1], [0, 0, 1, 1], [], []>} : vector<256x128xbf16>, vector<128x128xbf16>, vector<256x128xf32> -> vector<256x128xf32>
    %111 = vector.broadcast %106 : vector<1x128xf32> to vector<256x128xf32>
    %112 = arith.addf %110, %111 : vector<256x128xf32>
    %113 = math.tanh %112 : vector<256x128xf32>
    %114 = vector.shape_cast %113 : vector<256x128xf32> to vector<16x16x128xf32>
    %115 = vector.shape_cast %107 : vector<1x128xf32> to vector<1x1x128xf32>
    %116 = vector.broadcast %115 : vector<1x1x128xf32> to vector<16x16x128xf32>
    %117 = arith.mulf %114, %116 : vector<16x16x128xf32>
    %cst_50 = arith.constant dense<0.000000e+00> : vector<16x16xf32>
    %118 = vector.multi_reduction <add>, %117, %cst_50 [2] : vector<16x16x128xf32> to vector<16x16xf32>
    %cst_51 = arith.constant dense<0xFF800000> : vector<16xf32>
    %119 = vector.multi_reduction <maximumf>, %118, %cst_51 [1] : vector<16x16xf32> to vector<16xf32>
    %120 = vector.shape_cast %119 : vector<16xf32> to vector<16x1xf32>
    %121 = vector.broadcast %120 : vector<16x1xf32> to vector<16x16xf32>
    %122 = arith.subf %118, %121 : vector<16x16xf32>
    %123 = math.exp %122 : vector<16x16xf32>
    %cst_52 = arith.constant dense<0.000000e+00> : vector<16xf32>
    %124 = vector.multi_reduction <add>, %123, %cst_52 [1] : vector<16x16xf32> to vector<16xf32>
    %125 = vector.shape_cast %124 : vector<16xf32> to vector<16x1xf32>
    %126 = tpu.reciprocal %125 {approx = true} : vector<16x1xf32> -> vector<16x1xf32>
    %127 = vector.broadcast %126 : vector<16x1xf32> to vector<16x16xf32>
    %128 = arith.mulf %123, %127 : vector<16x16xf32>
    %129 = vector.shape_cast %128 : vector<16x16xf32> to vector<16x16x1xf32>
    %130 = vector.broadcast %129 : vector<16x16x1xf32> to vector<16x16x128xf32>
    %131 = arith.mulf %130, %104 : vector<16x16x128xf32>
    %cst_53 = arith.constant dense<0.000000e+00> : vector<16x128xf32>
    %132 = vector.multi_reduction <add>, %131, %cst_53 [1] : vector<16x16x128xf32> to vector<16x128xf32>
    %133 = vector.shape_cast %132 : vector<16x128xf32> to vector<2x8x128xf32>
    %c0_54 = arith.constant 0 : index
    %c0_55 = arith.constant 0 : index
    %c0_56 = arith.constant 0 : index
    %134 = vector.load %arg9[%c0_54, %c0_55, %c0_56] : memref<2x8x128xf32, #tpu.memory_space<vmem>>, vector<2x8x128xf32>
    tpu.vector_store %arg9[%c0_54, %c0_55, %c0_56], %133 {strides = array<i32>} : memref<2x8x128xf32, #tpu.memory_space<vmem>>, vector<2x8x128xf32>,
    return
  }
  func.func @transform_0(%arg0: i32) -> (i32, i32, i32, i32) {
    %c0_i32 = arith.constant 0 : i32
    %c0_i32_0 = arith.constant 0 : i32
    %c0_i32_1 = arith.constant 0 : i32
    %c0_i32_2 = arith.constant 0 : i32
    return %c0_i32, %arg0, %c0_i32_0, %c0_i32_1 : i32, i32, i32, i32
  }
  func.func @transform_1(%arg0: i32) -> (i32, i32) {
    %c0_i32 = arith.constant 0 : i32
    %c0_i32_0 = arith.constant 0 : i32
    %c0_i32_1 = arith.constant 0 : i32
    return %c0_i32, %c0_i32_0 : i32, i32
  }
  func.func @transform_2(%arg0: i32) -> (i32, i32) {
    %c0_i32 = arith.constant 0 : i32
    %c0_i32_0 = arith.constant 0 : i32
    %c0_i32_1 = arith.constant 0 : i32
    return %c0_i32, %c0_i32_0 : i32, i32
  }
  func.func @transform_3(%arg0: i32) -> (i32, i32) {
    %c0_i32 = arith.constant 0 : i32
    %c0_i32_0 = arith.constant 0 : i32
    %c0_i32_1 = arith.constant 0 : i32
    return %c0_i32, %c0_i32_0 : i32, i32
  }
  func.func @transform_4(%arg0: i32) -> (i32, i32) {
    %c0_i32 = arith.constant 0 : i32
    %c0_i32_0 = arith.constant 0 : i32
    %c0_i32_1 = arith.constant 0 : i32
    return %c0_i32, %c0_i32_0 : i32, i32
  }
  func.func @transform_5(%arg0: i32) -> (i32, i32) {
    %c0_i32 = arith.constant 0 : i32
    %c0_i32_0 = arith.constant 0 : i32
    %c0_i32_1 = arith.constant 0 : i32
    return %c0_i32, %c0_i32_0 : i32, i32
  }
  func.func @transform_6(%arg0: i32) -> (i32, i32) {
    %c0_i32 = arith.constant 0 : i32
    %c0_i32_0 = arith.constant 0 : i32
    %c0_i32_1 = arith.constant 0 : i32
    return %c0_i32, %c0_i32_0 : i32, i32
  }
  func.func @transform_7(%arg0: i32) -> (i32, i32) {
    %c0_i32 = arith.constant 0 : i32
    %c0_i32_0 = arith.constant 0 : i32
    %c0_i32_1 = arith.constant 0 : i32
    return %c0_i32, %c0_i32_0 : i32, i32
  }
  func.func @transform_8(%arg0: i32) -> (i32, i32, i32) {
    %c0_i32 = arith.constant 0 : i32
    %c0_i32_0 = arith.constant 0 : i32
    %c0_i32_1 = arith.constant 0 : i32
    return %c0_i32, %arg0, %c0_i32_0 : i32, i32, i32
  }
}

module attributes {stable_mosaic.version = 11 : i64} {
  func.func @_sent_kernel(%arg0: memref<2x16x256xbf16, #tpu.memory_space<vmem>>, %arg1: memref<256x384xbf16, #tpu.memory_space<vmem>>, %arg2: memref<128x384xbf16, #tpu.memory_space<vmem>>, %arg3: memref<1x384xf32, #tpu.memory_space<vmem>>, %arg4: memref<1x128xf32, #tpu.memory_space<vmem>>, %arg5: memref<128x128xbf16, #tpu.memory_space<vmem>>, %arg6: memref<1x128xf32, #tpu.memory_space<vmem>>, %arg7: memref<1x128xf32, #tpu.memory_space<vmem>>, %arg8: memref<128x2xf32, #tpu.memory_space<vmem>>, %arg9: memref<1x2xf32, #tpu.memory_space<vmem>>, %arg10: memref<2x2xf32, #tpu.memory_space<vmem>>, %arg11: memref<2x16x384xf32, #tpu.memory_space<vmem>>, %arg12: memref<2x16x64xf32, #tpu.memory_space<vmem>>, %arg13: memref<2x16x64xf32, #tpu.memory_space<vmem>>) attributes {dimension_semantics = [], scalar_prefetch = 0 : i64, scratch_operands = 3 : i64, tpu.core_type = #tpu.core_type<tc>} {
    %c0 = arith.constant 0 : index
    %c0_0 = arith.constant 0 : index
    %c0_1 = arith.constant 0 : index
    %0 = vector.load %arg0[%c0, %c0_0, %c0_1] : memref<2x16x256xbf16, #tpu.memory_space<vmem>>, vector<2x16x256xbf16>
    %c0_2 = arith.constant 0 : index
    %c0_3 = arith.constant 0 : index
    %1 = vector.load %arg1[%c0_2, %c0_3] : memref<256x384xbf16, #tpu.memory_space<vmem>>, vector<256x384xbf16>
    %c0_4 = arith.constant 0 : index
    %c0_5 = arith.constant 0 : index
    %2 = vector.load %arg2[%c0_4, %c0_5] : memref<128x384xbf16, #tpu.memory_space<vmem>>, vector<128x384xbf16>
    %c0_6 = arith.constant 0 : index
    %c0_7 = arith.constant 0 : index
    %3 = vector.load %arg3[%c0_6, %c0_7] : memref<1x384xf32, #tpu.memory_space<vmem>>, vector<1x384xf32>
    %c0_8 = arith.constant 0 : index
    %c0_9 = arith.constant 0 : index
    %4 = vector.load %arg4[%c0_8, %c0_9] : memref<1x128xf32, #tpu.memory_space<vmem>>, vector<1x128xf32>
    %5 = vector.shape_cast %0 : vector<2x16x256xbf16> to vector<32x256xbf16>
    %cst = arith.constant dense<0.000000e+00> : vector<32x384xf32>
    %6 = tpu.matmul %5, %1, %cst {dimension_numbers = #tpu.dot_dimension_numbers<[1], [0], [0], [1], [0, 0, 1, 1], [], []>} : vector<32x256xbf16>, vector<256x384xbf16>, vector<32x384xf32> -> vector<32x384xf32>
    %7 = vector.broadcast %3 : vector<1x384xf32> to vector<32x384xf32>
    %8 = arith.addf %6, %7 : vector<32x384xf32>
    %9 = vector.shape_cast %8 : vector<32x384xf32> to vector<2x16x384xf32>
    %c0_10 = arith.constant 0 : index
    %c0_11 = arith.constant 0 : index
    %c0_12 = arith.constant 0 : index
    %10 = vector.load %arg11[%c0_10, %c0_11, %c0_12] : memref<2x16x384xf32, #tpu.memory_space<vmem>>, vector<2x16x384xf32>
    tpu.vector_store %arg11[%c0_10, %c0_11, %c0_12], %9 {strides = array<i32>} : memref<2x16x384xf32, #tpu.memory_space<vmem>>, vector<2x16x384xf32>,
    %11 = vector.shape_cast %4 : vector<1x128xf32> to vector<1x128xf32>
    %12 = vector.broadcast %11 : vector<1x128xf32> to vector<16x128xf32>
    %cst_13 = arith.constant 0.000000e+00 : f32
    %13 = vector.broadcast %cst_13 : f32 to vector<16x128xf32>
    %c0_i32 = arith.constant 0 : i32
    %14 = arith.index_cast %c0_i32 : i32 to index
    %c0_14 = arith.constant 0 : index
    %c0_15 = arith.constant 0 : index
    %15 = vector.load %arg11[%14, %c0_14, %c0_15] : memref<2x16x384xf32, #tpu.memory_space<vmem>>, vector<1x16x384xf32>
    %16 = vector.shape_cast %15 : vector<1x16x384xf32> to vector<16x384xf32>
    %17 = arith.truncf %13 : vector<16x128xf32> to vector<16x128xbf16>
    %cst_16 = arith.constant dense<0.000000e+00> : vector<16x384xf32>
    %18 = tpu.matmul %17, %2, %cst_16 {dimension_numbers = #tpu.dot_dimension_numbers<[1], [0], [0], [1], [0, 0, 1, 1], [], []>} : vector<16x128xbf16>, vector<128x384xbf16>, vector<16x384xf32> -> vector<16x384xf32>
    %19 = vector.extract_strided_slice %16 {offsets = [0, 0], sizes = [16, 128], strides = [1, 1]} : vector<16x384xf32> to vector<16x128xf32>
    %20 = vector.extract_strided_slice %18 {offsets = [0, 0], sizes = [16, 128], strides = [1, 1]} : vector<16x384xf32> to vector<16x128xf32>
    %21 = arith.addf %19, %20 : vector<16x128xf32>
    %22 = arith.negf %21 : vector<16x128xf32>
    %23 = math.exp %22 : vector<16x128xf32>
    %cst_17 = arith.constant 1.000000e+00 : f32
    %24 = vector.broadcast %cst_17 : f32 to vector<16x128xf32>
    %25 = arith.addf %24, %23 : vector<16x128xf32>
    %26 = arith.divf %24, %25 : vector<16x128xf32>
    %27 = vector.extract_strided_slice %16 {offsets = [0, 128], sizes = [16, 128], strides = [1, 1]} : vector<16x384xf32> to vector<16x128xf32>
    %28 = vector.extract_strided_slice %18 {offsets = [0, 128], sizes = [16, 128], strides = [1, 1]} : vector<16x384xf32> to vector<16x128xf32>
    %29 = arith.addf %27, %28 : vector<16x128xf32>
    %30 = arith.negf %29 : vector<16x128xf32>
    %31 = math.exp %30 : vector<16x128xf32>
    %cst_18 = arith.constant 1.000000e+00 : f32
    %32 = vector.broadcast %cst_18 : f32 to vector<16x128xf32>
    %33 = arith.addf %32, %31 : vector<16x128xf32>
    %34 = arith.divf %32, %33 : vector<16x128xf32>
    %35 = vector.extract_strided_slice %16 {offsets = [0, 256], sizes = [16, 128], strides = [1, 1]} : vector<16x384xf32> to vector<16x128xf32>
    %36 = vector.extract_strided_slice %18 {offsets = [0, 256], sizes = [16, 128], strides = [1, 1]} : vector<16x384xf32> to vector<16x128xf32>
    %37 = arith.addf %36, %12 : vector<16x128xf32>
    %38 = arith.mulf %26, %37 : vector<16x128xf32>
    %39 = arith.addf %35, %38 : vector<16x128xf32>
    %40 = math.tanh %39 : vector<16x128xf32>
    %cst_19 = arith.constant 1.000000e+00 : f32
    %41 = vector.broadcast %cst_19 : f32 to vector<16x128xf32>
    %42 = arith.subf %41, %34 : vector<16x128xf32>
    %43 = arith.mulf %42, %40 : vector<16x128xf32>
    %44 = arith.mulf %34, %13 : vector<16x128xf32>
    %45 = arith.addf %43, %44 : vector<16x128xf32>
    %46 = vector.extract_strided_slice %45 {offsets = [0, 0], sizes = [16, 64], strides = [1, 1]} : vector<16x128xf32> to vector<16x64xf32>
    %47 = arith.index_cast %c0_i32 : i32 to index
    %c0_20 = arith.constant 0 : index
    %c0_21 = arith.constant 0 : index
    %48 = vector.load %arg12[%47, %c0_20, %c0_21] : memref<2x16x64xf32, #tpu.memory_space<vmem>>, vector<1x16x64xf32>
    %49 = vector.shape_cast %48 : vector<1x16x64xf32> to vector<16x64xf32>
    %50 = vector.shape_cast %46 : vector<16x64xf32> to vector<1x16x64xf32>
    tpu.vector_store %arg12[%47, %c0_20, %c0_21], %50 {strides = array<i32>} : memref<2x16x64xf32, #tpu.memory_space<vmem>>, vector<1x16x64xf32>,
    %51 = vector.extract_strided_slice %45 {offsets = [0, 64], sizes = [16, 64], strides = [1, 1]} : vector<16x128xf32> to vector<16x64xf32>
    %c1_i32 = arith.constant 1 : i32
    %52 = arith.subi %c1_i32, %c0_i32 : i32
    %53 = arith.index_cast %52 : i32 to index
    %c0_22 = arith.constant 0 : index
    %c0_23 = arith.constant 0 : index
    %54 = vector.load %arg13[%53, %c0_22, %c0_23] : memref<2x16x64xf32, #tpu.memory_space<vmem>>, vector<1x16x64xf32>
    %55 = vector.shape_cast %54 : vector<1x16x64xf32> to vector<16x64xf32>
    %56 = vector.shape_cast %51 : vector<16x64xf32> to vector<1x16x64xf32>
    tpu.vector_store %arg13[%53, %c0_22, %c0_23], %56 {strides = array<i32>} : memref<2x16x64xf32, #tpu.memory_space<vmem>>, vector<1x16x64xf32>,
    %c1_i32_24 = arith.constant 1 : i32
    %57 = arith.index_cast %c1_i32_24 : i32 to index
    %c0_25 = arith.constant 0 : index
    %c0_26 = arith.constant 0 : index
    %58 = vector.load %arg11[%57, %c0_25, %c0_26] : memref<2x16x384xf32, #tpu.memory_space<vmem>>, vector<1x16x384xf32>
    %59 = vector.shape_cast %58 : vector<1x16x384xf32> to vector<16x384xf32>
    %60 = arith.truncf %45 : vector<16x128xf32> to vector<16x128xbf16>
    %cst_27 = arith.constant dense<0.000000e+00> : vector<16x384xf32>
    %61 = tpu.matmul %60, %2, %cst_27 {dimension_numbers = #tpu.dot_dimension_numbers<[1], [0], [0], [1], [0, 0, 1, 1], [], []>} : vector<16x128xbf16>, vector<128x384xbf16>, vector<16x384xf32> -> vector<16x384xf32>
    %62 = vector.extract_strided_slice %59 {offsets = [0, 0], sizes = [16, 128], strides = [1, 1]} : vector<16x384xf32> to vector<16x128xf32>
    %63 = vector.extract_strided_slice %61 {offsets = [0, 0], sizes = [16, 128], strides = [1, 1]} : vector<16x384xf32> to vector<16x128xf32>
    %64 = arith.addf %62, %63 : vector<16x128xf32>
    %65 = arith.negf %64 : vector<16x128xf32>
    %66 = math.exp %65 : vector<16x128xf32>
    %cst_28 = arith.constant 1.000000e+00 : f32
    %67 = vector.broadcast %cst_28 : f32 to vector<16x128xf32>
    %68 = arith.addf %67, %66 : vector<16x128xf32>
    %69 = arith.divf %67, %68 : vector<16x128xf32>
    %70 = vector.extract_strided_slice %59 {offsets = [0, 128], sizes = [16, 128], strides = [1, 1]} : vector<16x384xf32> to vector<16x128xf32>
    %71 = vector.extract_strided_slice %61 {offsets = [0, 128], sizes = [16, 128], strides = [1, 1]} : vector<16x384xf32> to vector<16x128xf32>
    %72 = arith.addf %70, %71 : vector<16x128xf32>
    %73 = arith.negf %72 : vector<16x128xf32>
    %74 = math.exp %73 : vector<16x128xf32>
    %cst_29 = arith.constant 1.000000e+00 : f32
    %75 = vector.broadcast %cst_29 : f32 to vector<16x128xf32>
    %76 = arith.addf %75, %74 : vector<16x128xf32>
    %77 = arith.divf %75, %76 : vector<16x128xf32>
    %78 = vector.extract_strided_slice %59 {offsets = [0, 256], sizes = [16, 128], strides = [1, 1]} : vector<16x384xf32> to vector<16x128xf32>
    %79 = vector.extract_strided_slice %61 {offsets = [0, 256], sizes = [16, 128], strides = [1, 1]} : vector<16x384xf32> to vector<16x128xf32>
    %80 = arith.addf %79, %12 : vector<16x128xf32>
    %81 = arith.mulf %69, %80 : vector<16x128xf32>
    %82 = arith.addf %78, %81 : vector<16x128xf32>
    %83 = math.tanh %82 : vector<16x128xf32>
    %cst_30 = arith.constant 1.000000e+00 : f32
    %84 = vector.broadcast %cst_30 : f32 to vector<16x128xf32>
    %85 = arith.subf %84, %77 : vector<16x128xf32>
    %86 = arith.mulf %85, %83 : vector<16x128xf32>
    %87 = arith.mulf %77, %45 : vector<16x128xf32>
    %88 = arith.addf %86, %87 : vector<16x128xf32>
    %89 = vector.extract_strided_slice %88 {offsets = [0, 0], sizes = [16, 64], strides = [1, 1]} : vector<16x128xf32> to vector<16x64xf32>
    %90 = arith.index_cast %c1_i32_24 : i32 to index
    %c0_31 = arith.constant 0 : index
    %c0_32 = arith.constant 0 : index
    %91 = vector.load %arg12[%90, %c0_31, %c0_32] : memref<2x16x64xf32, #tpu.memory_space<vmem>>, vector<1x16x64xf32>
    %92 = vector.shape_cast %91 : vector<1x16x64xf32> to vector<16x64xf32>
    %93 = vector.shape_cast %89 : vector<16x64xf32> to vector<1x16x64xf32>
    tpu.vector_store %arg12[%90, %c0_31, %c0_32], %93 {strides = array<i32>} : memref<2x16x64xf32, #tpu.memory_space<vmem>>, vector<1x16x64xf32>,
    %94 = vector.extract_strided_slice %88 {offsets = [0, 64], sizes = [16, 64], strides = [1, 1]} : vector<16x128xf32> to vector<16x64xf32>
    %c1_i32_33 = arith.constant 1 : i32
    %95 = arith.subi %c1_i32_33, %c1_i32_24 : i32
    %96 = arith.index_cast %95 : i32 to index
    %c0_34 = arith.constant 0 : index
    %c0_35 = arith.constant 0 : index
    %97 = vector.load %arg13[%96, %c0_34, %c0_35] : memref<2x16x64xf32, #tpu.memory_space<vmem>>, vector<1x16x64xf32>
    %98 = vector.shape_cast %97 : vector<1x16x64xf32> to vector<16x64xf32>
    %99 = vector.shape_cast %94 : vector<16x64xf32> to vector<1x16x64xf32>
    tpu.vector_store %arg13[%96, %c0_34, %c0_35], %99 {strides = array<i32>} : memref<2x16x64xf32, #tpu.memory_space<vmem>>, vector<1x16x64xf32>,
    %c2_i32 = arith.constant 2 : i32
    %c0_36 = arith.constant 0 : index
    %c0_37 = arith.constant 0 : index
    %c0_38 = arith.constant 0 : index
    %100 = vector.load %arg12[%c0_36, %c0_37, %c0_38] : memref<2x16x64xf32, #tpu.memory_space<vmem>>, vector<2x16x64xf32>
    %c0_39 = arith.constant 0 : index
    %c0_40 = arith.constant 0 : index
    %c0_41 = arith.constant 0 : index
    %101 = vector.load %arg13[%c0_39, %c0_40, %c0_41] : memref<2x16x64xf32, #tpu.memory_space<vmem>>, vector<2x16x64xf32>
    %102 = tpu.concatenate %100, %101 in 2 : vector<2x16x64xf32>, vector<2x16x64xf32> -> vector<2x16x128xf32>
    %c0_42 = arith.constant 0 : index
    %c0_43 = arith.constant 0 : index
    %103 = vector.load %arg5[%c0_42, %c0_43] : memref<128x128xbf16, #tpu.memory_space<vmem>>, vector<128x128xbf16>
    %c0_44 = arith.constant 0 : index
    %c0_45 = arith.constant 0 : index
    %104 = vector.load %arg6[%c0_44, %c0_45] : memref<1x128xf32, #tpu.memory_space<vmem>>, vector<1x128xf32>
    %c0_46 = arith.constant 0 : index
    %c0_47 = arith.constant 0 : index
    %105 = vector.load %arg7[%c0_46, %c0_47] : memref<1x128xf32, #tpu.memory_space<vmem>>, vector<1x128xf32>
    %106 = vector.shape_cast %102 : vector<2x16x128xf32> to vector<32x128xf32>
    %107 = arith.truncf %106 : vector<32x128xf32> to vector<32x128xbf16>
    %cst_48 = arith.constant dense<0.000000e+00> : vector<32x128xf32>
    %108 = tpu.matmul %107, %103, %cst_48 {dimension_numbers = #tpu.dot_dimension_numbers<[1], [0], [0], [1], [0, 0, 1, 1], [], []>} : vector<32x128xbf16>, vector<128x128xbf16>, vector<32x128xf32> -> vector<32x128xf32>
    %109 = vector.broadcast %104 : vector<1x128xf32> to vector<32x128xf32>
    %110 = arith.addf %108, %109 : vector<32x128xf32>
    %111 = math.tanh %110 : vector<32x128xf32>
    %112 = vector.shape_cast %111 : vector<32x128xf32> to vector<2x16x128xf32>
    %113 = vector.shape_cast %105 : vector<1x128xf32> to vector<1x1x128xf32>
    %114 = vector.broadcast %113 : vector<1x1x128xf32> to vector<2x16x128xf32>
    %115 = arith.mulf %112, %114 : vector<2x16x128xf32>
    %cst_49 = arith.constant dense<0.000000e+00> : vector<2x16xf32>
    %116 = vector.multi_reduction <add>, %115, %cst_49 [2] : vector<2x16x128xf32> to vector<2x16xf32>
    %cst_50 = arith.constant dense<0xFF800000> : vector<2xf32>
    %117 = vector.multi_reduction <maximumf>, %116, %cst_50 [1] : vector<2x16xf32> to vector<2xf32>
    %118 = vector.shape_cast %117 : vector<2xf32> to vector<2x1xf32>
    %119 = vector.broadcast %118 : vector<2x1xf32> to vector<2x16xf32>
    %120 = arith.subf %116, %119 : vector<2x16xf32>
    %121 = math.exp %120 : vector<2x16xf32>
    %cst_51 = arith.constant dense<0.000000e+00> : vector<2xf32>
    %122 = vector.multi_reduction <add>, %121, %cst_51 [1] : vector<2x16xf32> to vector<2xf32>
    %123 = vector.shape_cast %122 : vector<2xf32> to vector<2x1xf32>
    %124 = tpu.reciprocal %123 {approx = true} : vector<2x1xf32> -> vector<2x1xf32>
    %125 = vector.broadcast %124 : vector<2x1xf32> to vector<2x16xf32>
    %126 = arith.mulf %121, %125 : vector<2x16xf32>
    %127 = vector.shape_cast %126 : vector<2x16xf32> to vector<2x16x1xf32>
    %128 = vector.broadcast %127 : vector<2x16x1xf32> to vector<2x16x128xf32>
    %129 = arith.mulf %128, %102 : vector<2x16x128xf32>
    %cst_52 = arith.constant dense<0.000000e+00> : vector<2x128xf32>
    %130 = vector.multi_reduction <add>, %129, %cst_52 [1] : vector<2x16x128xf32> to vector<2x128xf32>
    %c0_53 = arith.constant 0 : index
    %c0_54 = arith.constant 0 : index
    %131 = vector.load %arg8[%c0_53, %c0_54] : memref<128x2xf32, #tpu.memory_space<vmem>>, vector<128x2xf32>
    %cst_55 = arith.constant dense<0.000000e+00> : vector<2x2xf32>
    %132 = tpu.matmul %130, %131, %cst_55 {dimension_numbers = #tpu.dot_dimension_numbers<[1], [0], [0], [1], [0, 0, 1, 1], [], []>} : vector<2x128xf32>, vector<128x2xf32>, vector<2x2xf32> -> vector<2x2xf32>
    %c0_56 = arith.constant 0 : index
    %c0_57 = arith.constant 0 : index
    %133 = vector.load %arg9[%c0_56, %c0_57] : memref<1x2xf32, #tpu.memory_space<vmem>>, vector<1x2xf32>
    %134 = vector.broadcast %133 : vector<1x2xf32> to vector<2x2xf32>
    %135 = arith.addf %132, %134 : vector<2x2xf32>
    %cst_58 = arith.constant dense<0xFF800000> : vector<2xf32>
    %136 = vector.multi_reduction <maximumf>, %135, %cst_58 [1] : vector<2x2xf32> to vector<2xf32>
    %137 = vector.shape_cast %136 : vector<2xf32> to vector<2x1xf32>
    %138 = vector.broadcast %137 : vector<2x1xf32> to vector<2x2xf32>
    %139 = arith.subf %135, %138 : vector<2x2xf32>
    %140 = math.exp %139 : vector<2x2xf32>
    %cst_59 = arith.constant dense<0.000000e+00> : vector<2xf32>
    %141 = vector.multi_reduction <add>, %140, %cst_59 [1] : vector<2x2xf32> to vector<2xf32>
    %142 = vector.shape_cast %141 : vector<2xf32> to vector<2x1xf32>
    %143 = vector.broadcast %142 : vector<2x1xf32> to vector<2x2xf32>
    %144 = arith.divf %140, %143 : vector<2x2xf32>
    %c0_60 = arith.constant 0 : index
    %c0_61 = arith.constant 0 : index
    %145 = vector.load %arg10[%c0_60, %c0_61] : memref<2x2xf32, #tpu.memory_space<vmem>>, vector<2x2xf32>
    tpu.vector_store %arg10[%c0_60, %c0_61], %144 {strides = array<i32>} : memref<2x2xf32, #tpu.memory_space<vmem>>, vector<2x2xf32>,
    return
  }
}

</mosaic_0001>

<bundles_post_ra>
// kernel: han_forward.3
= control target key start
LH: loop header
LB: loop body
LE: loop exit
PB: predicated region body
PF: predicated region fallthrough
CT: control target
= control target key end

     0   :  { %v1887_v2 = vmov 0   ;;  %s2475_s0 = inlined_call_operand.vmem [shape: bf16[2,16,256], index: 0, kind: input, shape index: {}]   ;;  %s2476_s1 = inlined_call_operand.vmem [shape: bf16[256,384], index: 1, kind: input, shape index: {}]   ;;  %s2477_s2 = inlined_call_operand.vmem [shape: bf16[128,384], index: 2, kind: input, shape index: {}]   ;;  %s2478_s3 = inlined_call_operand.vmem [shape: f32[1,384], index: 3, kind: input, shape index: {}]   ;;  %s2479_s4 = inlined_call_operand.vmem [shape: f32[1,128], index: 4, kind: input, shape index: {}]   ;;  %s2480_s5 = inlined_call_operand.vmem [shape: bf16[128,128], index: 5, kind: input, shape index: {}]   ;;  %s2481_s6 = inlined_call_operand.vmem [shape: f32[1,128], index: 6, kind: input, shape index: {}]   ;;  %s2482_s7 = inlined_call_operand.vmem [shape: f32[1,128], index: 7, kind: input, shape index: {}]   ;;  %s2483_s8 = inlined_call_operand.vmem [shape: f32[128,2], index: 8, kind: input, shape index: {}]   ;;  %s2484_s9 = inlined_call_operand.vmem [shape: f32[1,2], index: 9, kind: input, shape index: {}]   ;;  %s2485_s10 = inlined_call_operand.hbm [shape: f32[2,2], index: 10, kind: output, shape index: {}]  }
   0x1   :  { %v1693_v0 = vld [vmem:[%s2476_s1 + $0xac] ss:$12 sps:$4 sm:$0xff]   ;;  %v1695_v1 = vld [vmem:[%s2476_s1 + $0x170] ss:$12 sps:$4 sm:$0xff]   ;;  %1692 = vset.pattern.permute.xlu1 %v1887_v2  ;;  %1691 = vset.pattern.permute.xlu0 %v1887_v2  ;;  %v1696_v3 = vld [vmem:[%s2476_s1 + $0xa8] ss:$12 sps:$4 sm:$0xff]  }
   0x2   :  { %431 = vmatprep.subr.bf16.mxu0 %v1693_v0  ;;  %1518 = vmatprep.subr.bf16.mxu1 %v1695_v1  ;;  %v1697_v4 = vld [vmem:[%s2476_s1 + $0xb0] ss:$12 sps:$4 sm:$0xff]   ;;  %v1698_v5 = vld [vmem:[%s2476_s1 + $0x94] ss:$12 sps:$4 sm:$0xff]   ;;  %v1700_v6 = vld [vmem:[%s2476_s1 + $0x158] ss:$12 sps:$4 sm:$0xff]  }
   0x3   :  { %432 = vmatpush1.bf16.msra.mxu0 %v1696_v3  ;;  %1519 = vmatpush3.bf16.msra.mxu1 %v1697_v4  ;;  %v1701_v7 = vld [vmem:[%s2476_s1 + $0x90] ss:$12 sps:$4 sm:$0xff]   ;;  %v1702_v8 = vld [vmem:[%s2476_s1 + $0x98] ss:$12 sps:$4 sm:$0xff]   ;;  %v1705_v10 = vld [vmem:[%s2476_s1 + $0x140] ss:$12 sps:$4 sm:$0xff]  }
   0x4   :  { %433 = vmatprep.subr.bf16.mxu0 %v1698_v5  ;;  %1520 = vmatprep.subr.bf16.mxu1 %v1700_v6  ;;  %v1703_v9 = vld [vmem:[%s2476_s1 + $0x7c] ss:$12 sps:$4 sm:$0xff]   ;;  %v1706_v11 = vld [vmem:[%s2476_s1 + $0x78] ss:$12 sps:$4 sm:$0xff]   ;;  %v1707_v12 = vld [vmem:[%s2476_s1 + $0x80] ss:$12 sps:$4 sm:$0xff]  }
   0x5   :  { %v1708_v13 = vld [vmem:[%s2476_s1 + $0x64] ss:$12 sps:$4 sm:$0xff]   ;;  %v1710_v14 = vld [vmem:[%s2476_s1 + $0x128] ss:$12 sps:$4 sm:$0xff]   ;;  %v1711_v15 = vld [vmem:[%s2476_s1 + $0x60] ss:$12 sps:$4 sm:$0xff]  }
   0x6   :  { %v1712_v16 = vld [vmem:[%s2476_s1 + $0x68] ss:$12 sps:$4 sm:$0xff]   ;;  %v1713_v17 = vld [vmem:[%s2476_s1 + $0x4c] ss:$12 sps:$4 sm:$0xff]   ;;  %v1715_v18 = vld [vmem:[%s2476_s1 + $0x110] ss:$12 sps:$4 sm:$0xff]  }
   0x7   :  { %434 = vmatpush1.bf16.msra.mxu0 %v1701_v7  ;;  %1521 = vmatpush3.bf16.msra.mxu1 %v1702_v8  ;;  %v1716_v19 = vld [vmem:[%s2476_s1 + $0x48] ss:$12 sps:$4 sm:$0xff]   ;;  %v1717_v20 = vld [vmem:[%s2476_s1 + $0x50] ss:$12 sps:$4 sm:$0xff]   ;;  %v1720_v22 = vld [vmem:[%s2476_s1 + $0xf8] ss:$12 sps:$4 sm:$0xff]  }
   0x8   :  { %435 = vmatprep.subr.bf16.mxu0 %v1703_v9  ;;  %1522 = vmatprep.subr.bf16.mxu1 %v1705_v10  ;;  %v1718_v21 = vld [vmem:[%s2476_s1 + $0x34] ss:$12 sps:$4 sm:$0xff]   ;;  %v1721_v23 = vld [vmem:[%s2476_s1 + $0x30] ss:$12 sps:$4 sm:$0xff]   ;;  %v1722_v24 = vld [vmem:[%s2476_s1 + $0x38] ss:$12 sps:$4 sm:$0xff]  }
   0x9   :  { %v1723_v25 = vld [vmem:[%s2476_s1 + $0x1c] ss:$12 sps:$4 sm:$0xff]   ;;  %v1725_v26 = vld [vmem:[%s2476_s1 + $0xe0] ss:$12 sps:$4 sm:$0xff]   ;;  %v1726_v27 = vld [vmem:[%s2476_s1 + $0x18] ss:$12 sps:$4 sm:$0xff]  }
   0xa   :  { %v1727_v28 = vld [vmem:[%s2476_s1 + $0x20] ss:$12 sps:$4 sm:$0xff]   ;;  %v1728_v29 = vld [vmem:[%s2476_s1 + $0x4] ss:$12 sps:$4 sm:$0xff]   ;;  %v1730_v30 = vld [vmem:[%s2476_s1 + $0xc8] ss:$12 sps:$4 sm:$0xff]  }
   0xb   :  { %436 = vmatpush1.bf16.msra.mxu0 %v1706_v11  ;;  %1523 = vmatpush3.bf16.msra.mxu1 %v1707_v12  ;;  %v1731_v31 = vld [vmem:[%s2476_s1] ss:$12 sps:$4 sm:$0xff]   ;;  %v1732_v33 = vld [vmem:[%s2476_s1 + $0x8] ss:$12 sps:$4 sm:$0xff]   ;;  %v2081_v41 = vld [vmem:[%s2477_s2 + $0x90] ss:$12 sps:$4 sm:$0xff]  }
   0xc   :  { %437 = vmatprep.subr.bf16.mxu0 %v1708_v13  ;;  %1524 = vmatprep.subr.bf16.mxu1 %v1710_v14  ;;  %v1735_v32 = vld [vmem:[%s2475_s0 + $0x4] ss:$8 sps:$4 sm:$0xff]   ;;  %v2059_v36 = vld [vmem:[%s2475_s0] ss:$8 sps:$4 sm:$0xff]   ;;  %v1747_v42 = vld [vmem:[%s2476_s1 + $0x150] ss:$12 sps:$4 sm:$0xff]  }
   0xd   :  { %v1736_v34 = vld [vmem:[%s2476_s1 + $0x16c] ss:$12 sps:$4 sm:$0xff]   ;;  %516 = vmatprep.mubr.bf16.mxu1 %v1735_v32  ;;  %463 = vmatprep.mubr.bf16.mxu0 %v1735_v32  ;;  %v2064_v37 = vld [vmem:[%s2477_s2 + $0xa8] ss:$12 sps:$4 sm:$0xff]   ;;  %v1754_v47 = vld [vmem:[%s2476_s1 + $0x124] ss:$12 sps:$4 sm:$0xff]  }
   0xe   :  { %v2054_v35 = vld [vmem:[%s2477_s2 + $0xac] ss:$12 sps:$4 sm:$0xff]   ;;  %v1741_v38 = vld [vmem:[%s2476_s1 + $0x168] ss:$12 sps:$4 sm:$0xff]   ;;  %v2112_v48 = vld [vmem:[%s2477_s2 + $0x64] ss:$12 sps:$4 sm:$0xff]  }
   0xf   :  { %438 = vmatpush1.bf16.msra.mxu0 %v1711_v15  ;;  %1525 = vmatpush3.bf16.msra.mxu1 %v1712_v16  ;;  %v1742_v39 = vld [vmem:[%s2476_s1 + $0x154] ss:$12 sps:$4 sm:$0xff]   ;;  %v1748_v43 = vld [vmem:[%s2476_s1 + $0x13c] ss:$12 sps:$4 sm:$0xff]   ;;  %v2100_v45 = vld [vmem:[%s2477_s2 + $0x78] ss:$12 sps:$4 sm:$0xff]  }
  0x10   :  { %439 = vmatprep.subr.bf16.mxu0 %v1713_v17  ;;  %1526 = vmatprep.subr.bf16.mxu1 %v1715_v18  ;;  %v2076_v40 = vld [vmem:[%s2477_s2 + $0x94] ss:$12 sps:$4 sm:$0xff]   ;;  %v2095_v44 = vld [vmem:[%s2477_s2 + $0x7c] ss:$12 sps:$4 sm:$0xff]   ;;  %v1753_v46 = vld [vmem:[%s2476_s1 + $0x138] ss:$12 sps:$4 sm:$0xff]  }
  0x11   :  { %v1766_v49 = vld [vmem:[%s2475_s0 + $0x14] ss:$8 sps:$4 sm:$0xff]   ;;  %v1770_v50 = vld [vmem:[%s2475_s0 + $0x10] ss:$8 sps:$4 sm:$0xff]   ;;  %v2124_v51 = vld [vmem:[%s2477_s2 + $0x60] ss:$12 sps:$4 sm:$0xff]  }
  0x12   :  { %v1759_v52 = vld [vmem:[%s2476_s1 + $0x120] ss:$12 sps:$4 sm:$0xff]   ;;  %v2142_v55 = vld [vmem:[%s2477_s2 + $0x48] ss:$12 sps:$4 sm:$0xff]   ;;  %v2159_v59 = vld [vmem:[%s2477_s2 + $0x30] ss:$12 sps:$4 sm:$0xff]  }
  0x13   :  { %440 = vmatpush1.bf16.msra.mxu0 %v1716_v19  ;;  %1527 = vmatpush3.bf16.msra.mxu1 %v1717_v20  ;;  %v1760_v53 = vld [vmem:[%s2476_s1 + $0x10c] ss:$12 sps:$4 sm:$0xff]   ;;  %v1765_v56 = vld [vmem:[%s2476_s1 + $0x108] ss:$12 sps:$4 sm:$0xff]   ;;  %v1774_v60 = vld [vmem:[%s2476_s1 + $0xf0] ss:$12 sps:$4 sm:$0xff]  }
  0x14   :  { %441 = vmatprep.subr.bf16.mxu0 %v1718_v21  ;;  %1528 = vmatprep.subr.bf16.mxu1 %v1720_v22  ;;  %v2137_v54 = vld [vmem:[%s2477_s2 + $0x4c] ss:$12 sps:$4 sm:$0xff]   ;;  %v1768_v57 = vld [vmem:[%s2476_s1 + $0xf4] ss:$12 sps:$4 sm:$0xff]   ;;  %v1775_v61 = vld [vmem:[%s2476_s1 + $0xdc] ss:$12 sps:$4 sm:$0xff]  }
  0x15   :  { %v1773_v58 = vld [vmem:[%s2477_s2 + $0x34] ss:$12 sps:$4 sm:$0xff]   ;;  %v1779_v62 = vld [vmem:[%s2477_s2 + $0x1c] ss:$12 sps:$4 sm:$0xff]   ;;  %v1777_v63 = vld [vmem:[%s2477_s2 + $0x18] ss:$12 sps:$4 sm:$0xff]  }
  0x16   :  { %v1780_v0 = vld [vmem:[%s2476_s1 + $0xd8] ss:$12 sps:$4 sm:$0xff]   ;;  %v1786_v4 = vld [vmem:[%s2476_s1 + $0xc0] ss:$12 sps:$4 sm:$0xff]   ;;  %v1787_v6 = vld [vmem:[%s2477_s2 + $0xb0] ss:$12 sps:$4 sm:$0xff]  }
  0x17   :  { %442 = vmatpush1.bf16.msra.mxu0 %v1721_v23  ;;  %1529 = vmatpush3.bf16.msra.mxu1 %v1722_v24  ;;  %v1781_v1 = vld [vmem:[%s2476_s1 + $0xc4] ss:$12 sps:$4 sm:$0xff]   ;;  %v1783_v5 = vld [vmem:[%s2477_s2] ss:$12 sps:$4 sm:$0xff]  }
  0x18   :  { %443 = vmatprep.subr.bf16.mxu0 %v1723_v25  ;;  %1530 = vmatprep.subr.bf16.mxu1 %v1725_v26  ;;  %v1785_v3 = vld [vmem:[%s2477_s2 + $0x4] ss:$12 sps:$4 sm:$0xff]  }
  0x1b   :  { %444 = vmatpush1.bf16.msra.mxu0 %v1726_v27  ;;  %1531 = vmatpush3.bf16.msra.mxu1 %v1727_v28 }
  0x1c   :  { %445 = vmatprep.subr.bf16.mxu0 %v1728_v29  ;;  %1532 = vmatprep.subr.bf16.mxu1 %v1730_v30 }
  0x1f   :  { %446 = vmatpush1.bf16.msra.mxu0 %v1731_v31  ;;  %1533 = vmatpush3.bf16.msra.mxu1 %v1732_v33 }
  0x20   :  { %447 = vmatprep.subr.bf16.mxu0 %v1736_v34  ;;  %685 = vmatprep.subr.bf16.mxu1 %v2054_v35 }
  0x22   :  { %517 = vmatmul.mubr.bf16.vlgmr.msra.gmra.mxu1 %v2059_v36 }
  0x23   :  { %448 = vmatpush2.bf16.msra.mxu0 %v1741_v38  ;;  %686 = vmatpush1.bf16.msra.mxu1 %v2064_v37 }
  0x24   :  { %449 = vmatprep.subr.bf16.mxu0 %v1742_v39  ;;  %687 = vmatprep.subr.bf16.mxu1 %v2076_v40 }
  0x25   :  { %524 = vmatprep.mubr.bf16.mxu1 %v1766_v49 }
  0x27   :  { %450 = vmatpush2.bf16.msra.mxu0 %v1747_v42  ;;  %688 = vmatpush1.bf16.msra.mxu1 %v2081_v41 }
  0x28   :  { %451 = vmatprep.subr.bf16.mxu0 %v1748_v43  ;;  %689 = vmatprep.subr.bf16.mxu1 %v2095_v44 }
  0x2a   :  { %525 = vmatmul.mubr.bf16.gmra.mxu1 %v1770_v50 }
  0x2b   :  { %452 = vmatpush2.bf16.msra.mxu0 %v1753_v46  ;;  %690 = vmatpush1.bf16.msra.mxu1 %v2100_v45 }
  0x2c   :  { %453 = vmatprep.subr.bf16.mxu0 %v1754_v47  ;;  %691 = vmatprep.subr.bf16.mxu1 %v2112_v48 }
  0x2d   :  { %717 = vmatprep.mubr.bf16.mxu1 %v1887_v2 }
  0x2f   :  { %454 = vmatpush2.bf16.msra.mxu0 %v1759_v52  ;;  %692 = vmatpush1.bf16.msra.mxu1 %v2124_v51 }
  0x30   :  { %455 = vmatprep.subr.bf16.mxu0 %v1760_v53  ;;  %693 = vmatprep.subr.bf16.mxu1 %v2137_v54 }
  0x33   :  { %456 = vmatpush2.bf16.msra.mxu0 %v1765_v56  ;;  %694 = vmatpush1.bf16.msra.mxu1 %v2142_v55 }
  0x34   :  { %457 = vmatprep.subr.bf16.mxu0 %v1768_v57  ;;  %695 = vmatprep.subr.bf16.mxu1 %v1773_v58 }
  0x37   :  { %458 = vmatpush2.bf16.msra.mxu0 %v1774_v60  ;;  %696 = vmatpush1.bf16.msra.mxu1 %v2159_v59 }
  0x38   :  { %459 = vmatprep.subr.bf16.mxu0 %v1775_v61  ;;  %697 = vmatprep.subr.bf16.mxu1 %v1779_v62 }
  0x3b   :  { %460 = vmatpush2.bf16.msra.mxu0 %v1780_v0  ;;  %698 = vmatpush1.bf16.msra.mxu1 %v1777_v63 }
  0x3c   :  { %461 = vmatprep.subr.bf16.mxu0 %v1781_v1  ;;  %699 = vmatprep.subr.bf16.mxu1 %v1785_v3 }
  0x3f   :  { %462 = vmatpush2.bf16.msra.mxu0 %v1786_v4 }
  0x40   :  { %15 = vsyncpa [#allocation6], 0  ;;  %700 = vmatpush1.bf16.msra.mxu1 %v1783_v5  ;;  %v1888_v7 = vmov 0.0   ;;  %v1788_v8 = vld [vmem:[%s2477_s2 + $0x98] ss:$12 sps:$4 sm:$0xff]   ;;  %vm1889_vm0 = vmmov 0   ;;  %v140_v15 = vlaneseq }
  0x41   :  { %1591 = vmatprep.subr.bf16.mxu0 %v1888_v7  ;;  %835 = vmatprep.subr.bf16.mxu1 %v2054_v35  ;;  %v1789_v9 = vld [vmem:[%s2477_s2 + $0x80] ss:$12 sps:$4 sm:$0xff]   ;;  %v1790_v10 = vld [vmem:[%s2477_s2 + $0x68] ss:$12 sps:$4 sm:$0xff]   ;;  %v1791_v11 = vld [vmem:[%s2477_s2 + $0x50] ss:$12 sps:$4 sm:$0xff]  }
  0x42   :  { %464 = vmatmul.mubr.bf16.vlgmr.msra.gmra.mxu0 %v2059_v36  ;;  %v1792_v12 = vld [vmem:[%s2477_s2 + $0x38] ss:$12 sps:$4 sm:$0xff]   ;;  %v1793_v13 = vld [vmem:[%s2477_s2 + $0x20] ss:$12 sps:$4 sm:$0xff]   ;;  %v1794_v14 = vld [vmem:[%s2477_s2 + $0x8] ss:$12 sps:$4 sm:$0xff]  }
  0x43   :  { %718 = vmatmul.mubr.bf16.vlgmr.msra.gmra.mxu1 %v1887_v2  ;;  %1592 = vmatpush3.bf16.msra.mxu0 %v1787_v6  ;;  %v2255_v18 = vshrl.u32 %v140_v15, 7  ;;  %v137_v21 = vld [vmem:[%s2478_s3] sm:$0x7]  ;;  %vm813_vm1 = vcmask 523264   ;;  %vm1164_vm2 = vcmask 130112   ;;  %vm1175_vm3 = vcmask 1041409  }
  0x44   :  { %1593 = vmatprep.subr.bf16.mxu0 %v1888_v7  ;;  %473 = vmatprep.mubr.bf16.mxu0 %v1766_v49  ;;  %vm1178_vm4 = vcmask 123904   ;;  %vm1395_vm5 = vcmask 9216   ;;  %s1891_s3 = smov [#allocation5]  }
  0x45   :  { %836 = vmatpush1.bf16.msra.mxu1 %v2064_v37  ;;  %867 = vmatprep.mubr.bf16.mxu1 %v1887_v2  ;;  %v150_v20 = vsub.s32 2, %v2255_v18  ;;  %v2272_v31 = vsub.s32 0, %v2255_v18  ;;  %v2276_v33 = vsub.s32 1, %v2255_v18  ;;  %s1414_s22 = sshll.u32 %s1891_s3, 4  ;;  %s1415_s22 = int_to_ptr.vmem [resolvable:$true] %s1414_s22 }
  0x46   :  { %837 = vmatprep.subr.bf16.mxu1 %v2076_v40  ;;  %p1870_p1 = scmp.lt.s32.totalorder %s1415_s22, %s1415_s22 }
  0x47   :  { %1594 = vmatpush3.bf16.msra.mxu0 %v1788_v8  ;;  %v2263_v24 = vrot.slane %v137_v21, %v150_v20  ;;  %v143_v32 = vrot.slane %v137_v21, %v2272_v31  ;;  %v147_v37 = vrot.slane %v137_v21, %v2276_v33 }
  0x48   :  { %1595 = vmatprep.subr.bf16.mxu0 %v1888_v7 }
  0x49   :  { %838 = vmatpush1.bf16.msra.mxu1 %v2081_v41 }
  0x4a   :  { %474 = vmatmul.mubr.bf16.gmra.mxu0 %v1770_v50  ;;  %839 = vmatprep.subr.bf16.mxu1 %v2095_v44 }
  0x4b   :  { %1596 = vmatpush3.bf16.msra.mxu0 %v1789_v9  ;;  %1607 = vmatprep.mubr.msk.bf16.mxu0 %vm1889_vm0, %v1888_v7 }
  0x4c   :  { %1597 = vmatprep.subr.bf16.mxu0 %v1888_v7 }
  0x4d   :  { %840 = vmatpush1.bf16.msra.mxu1 %v2100_v45 }
  0x4e   :  { %841 = vmatprep.subr.bf16.mxu1 %v2112_v48 }
  0x4f   :  { %1598 = vmatpush3.bf16.msra.mxu0 %v1790_v10 }
  0x50   :  { %1599 = vmatprep.subr.bf16.mxu0 %v1888_v7 }
  0x51   :  { %842 = vmatpush1.bf16.msra.mxu1 %v2124_v51 }
  0x52   :  { %843 = vmatprep.subr.bf16.mxu1 %v2137_v54 }
  0x53   :  { %1600 = vmatpush3.bf16.msra.mxu0 %v1791_v11 }
  0x54   :  { %1601 = vmatprep.subr.bf16.mxu0 %v1888_v7 }
  0x55   :  { %844 = vmatpush1.bf16.msra.mxu1 %v2142_v55 }
  0x56   :  { %845 = vmatprep.subr.bf16.mxu1 %v1773_v58 }
  0x57   :  { %1602 = vmatpush3.bf16.msra.mxu0 %v1792_v12 }
  0x58   :  { %1603 = vmatprep.subr.bf16.mxu0 %v1888_v7 }
  0x59   :  { %846 = vmatpush1.bf16.msra.mxu1 %v2159_v59 }
  0x5a   :  { %847 = vmatprep.subr.bf16.mxu1 %v1779_v62 }
  0x5b   :  { %1604 = vmatpush3.bf16.msra.mxu0 %v1793_v13 }
  0x5c   :  { %1605 = vmatprep.subr.bf16.mxu0 %v1888_v7 }
  0x5d   :  { %848 = vmatpush1.bf16.msra.mxu1 %v1777_v63 }
  0x5e   :  { %849 = vmatprep.subr.bf16.mxu1 %v1785_v3 }
  0x5f   :  { %1606 = vmatpush3.bf16.msra.mxu0 %v1794_v14 }
  0x60   :  { %1611 = vmatprep.subr.bf16.mxu0 %v1888_v7 }
  0x61   :  { %850 = vmatpush1.bf16.msra.mxu1 %v1783_v5  ;;  %v2290_v5 = vld [vmem:[%s2479_s4] ss:$0 sm:$0xff]  ;;  %s1890_s4 = smov 64  }
  0x62   :  { %1608 = vmatmul.mubr.bf16.vlgmr.msra.gmra.mxu0 %v1887_v2 }
  0x63   :  { %1612 = vmatpush3.bf16.msra.mxu0 %v1787_v6  ;;  %1627 = vmatprep.mubr.msk.bf16.mxu0 %vm1889_vm0, %v1888_v7 }
  0x64   :  { %1613 = vmatprep.subr.bf16.mxu0 %v1888_v7 }
  0x67   :  { %1614 = vmatpush3.bf16.msra.mxu0 %v1788_v8 }
  0x68   :  { %1615 = vmatprep.subr.bf16.mxu0 %v1888_v7 }
  0x6b   :  { %1616 = vmatpush3.bf16.msra.mxu0 %v1789_v9 }
  0x6c   :  { %1617 = vmatprep.subr.bf16.mxu0 %v1888_v7 }
  0x6f   :  { %1618 = vmatpush3.bf16.msra.mxu0 %v1790_v10 }
  0x70   :  { %1619 = vmatprep.subr.bf16.mxu0 %v1888_v7 }
  0x73   :  { %1620 = vmatpush3.bf16.msra.mxu0 %v1791_v11 }
  0x74   :  { %1621 = vmatprep.subr.bf16.mxu0 %v1888_v7 }
  0x77   :  { %1622 = vmatpush3.bf16.msra.mxu0 %v1792_v12 }
  0x78   :  { %1623 = vmatprep.subr.bf16.mxu0 %v1888_v7 }
  0x7b   :  { %1624 = vmatpush3.bf16.msra.mxu0 %v1793_v13 }
  0x7c   :  { %1625 = vmatprep.subr.bf16.mxu0 %v1888_v7 }
  0x7f   :  { %1626 = vmatpush3.bf16.msra.mxu0 %v1794_v14 }
  0x80   :  { %1651 = vmatprep.subr.mxu0 %v1888_v7 }
  0xe2   :  { %v2250_v2 = vpop.f32.mrf.mxu1 }
  0xe4   :  { %v1535_v16 = vpop.f32.mrf.mxu1 }
  0xe5   :  { %v1536_v9 = vadd.f32 %v1535_v16, %v2250_v2 }
  0xe6   :  { %v2252_v17 = vpop.f32.mrf.mxu1 }
  0xe7   :  { %v519_v21 = vadd.f32 %v1536_v9, %v2263_v24 }
  0xe8   :  { %v2257_v19 = vpop.f32.mrf.mxu1 }
  0xea   :  { %v1540_v22 = vpop.f32.mrf.mxu1 }
  0xec   :  { %v1541_v23 = vpop.f32.mrf.mxu1 }
  0xed   :  { %v1542_v25 = vadd.f32 %v1541_v23, %v1540_v22  ;;  %v1539_v22 = vadd.f32 %v2257_v19, %v2252_v17 }
  0xee   :  { %v1543_v26 = vpop.f32.mrf.mxu1 }
  0xef   :  { %v2266_v27 = vadd.f32 %v1542_v25, %v2263_v24  ;;  %v522_v2 = vadd.f32 %v1539_v22, %v2263_v24 }
  0xf0   :  { %v1544_v28 = vpop.f32.mrf.mxu1 }
  0xf1   :  { %v1545_v29 = vadd.f32 %v1544_v28, %v1543_v26 }
  0xf3   :  { %v2269_v30 = vadd.f32 %v1545_v29, %v2263_v24 }
 0x102   :  { %v465_v34 = vpop.f32.mrf.mxu0 }
 0x103   :  { %v466_v35 = vadd.f32 %v465_v34, %v143_v32  ;;  %v719_v36 = vpop.f32.mrf.mxu1 }
 0x104   :  { %v467_v38 = vpop.f32.mrf.mxu0 }
 0x105   :  { %v769_v39 = vadd.f32 %v719_v36, %v466_v35  ;;  %v721_v40 = vpop.f32.mrf.mxu1  ;;  %v468_v43 = vadd.f32 %v467_v38, %v147_v37 }
 0x106   :  { %v469_v41 = vpop.f32.mrf.mxu0 }
 0x107   :  { %v1499_v42 = vmul.f32 -1.442695, %v769_v39  ;;  %v470_v44 = vadd.f32 %v469_v41, %v143_v32  ;;  %v723_v45 = vpop.f32.mrf.mxu1  ;;  %v783_v50 = vadd.f32 %v721_v40, %v468_v43 }
 0x108   :  { %v471_v46 = vpop.f32.mrf.mxu0 }
 0x109   :  { %1803 = vpow2.f32 %v1499_v42  ;;  %v770_v47 = vadd.f32 %v723_v45, %v470_v44  ;;  %v472_v48 = vadd.f32 %v471_v46, %v147_v37  ;;  %v725_v54 = vpop.f32.mrf.mxu1  ;;  %v1501_v58 = vmul.f32 -1.442695, %v783_v50 }
 0x10a   :  { %v475_v49 = vpop.f32.mrf.mxu0 }
 0x10b   :  { %v1500_v51 = vmul.f32 -1.442695, %v770_v47  ;;  %v2279_v52 = vadd.f32 %v475_v49, %v143_v32  ;;  %v784_v56 = vadd.f32 %v725_v54, %v472_v48 }
 0x10c   :  { %v477_v53 = vpop.f32.mrf.mxu0 }
 0x10d   :  { %1805 = vpow2.f32 %v1500_v51  ;;  %v2281_v55 = vadd.f32 %v477_v53, %v147_v37  ;;  %v1502_v62 = vmul.f32 -1.442695, %v784_v56 }
 0x10e   :  { %v479_v57 = vpop.f32.mrf.mxu0  ;;  %1807 = vpow2.f32 %v1501_v58 }
 0x10f   :  { %v2283_v59 = vadd.f32 %v479_v57, %v143_v32  ;;  %1809 = vpow2.f32 %v1502_v62 }
 0x110   :  { %v481_v60 = vpop.f32.mrf.mxu0 }
 0x111   :  { %v2285_v61 = vadd.f32 %v481_v60, %v147_v37 }
 0x116   :  { %v1804_v63 = vpop.eup %1803 }
 0x117   :  { %v777_v0 = vadd.f32 1.0, %v1804_v63 }
 0x119   :  { %1811 = vrcp.f32 %v777_v0 }
 0x11a   :  { %v1806_v1 = vpop.eup %1805 }
 0x11b   :  { %v778_v3 = vadd.f32 1.0, %v1806_v1  ;;  %v1808_v4 = vpop.eup %1807 }
 0x11c   :  { %v1810_v8 = vpop.eup %1809  ;;  %v791_v10 = vadd.f32 1.0, %v1808_v4 }
 0x11d   :  { %1813 = vrcp.f32 %v778_v3  ;;  %v792_v14 = vadd.f32 1.0, %v1810_v8 }
 0x11e   :  { %1815 = vrcp.f32 %v791_v10 }
 0x11f   :  { %1817 = vrcp.f32 %v792_v14 }
 0x122   :  { %v762_v6 = vpop.f32.mrf.mxu0 }
 0x123   :  { %v797_v11 = vadd.f32 %v2290_v5, %v762_v6 }
 0x124   :  { %v1609_v12 = vpop.f32.mrf.mxu0 }
 0x126   :  { %v1812_v13 = vpop.eup %1811  ;;  %v765_v20 = vpop.f32.mrf.mxu0 }
 0x127   :  { %v799_v23 = vmul.f32 %v1812_v13, %v797_v11  ;;  %v798_v28 = vadd.f32 %v2290_v5, %v765_v20 }
 0x128   :  { %v1610_v25 = vpop.f32.mrf.mxu0 }
 0x129   :  { %v801_v26 = vadd.f32 %v799_v23, %v519_v21 }
 0x12a   :  { %v1814_v29 = vpop.eup %1813 }
 0x12b   :  { %1819 = vtanh.f32 %v801_v26  ;;  %v800_v16 = vmul.f32 %v1814_v29, %v798_v28  ;;  %v1816_v34 = vpop.eup %1815 }
 0x12c   :  { %v1818_v35 = vpop.eup %1817  ;;  %v805_v36 = vsub.f32 1.0, %v1816_v34  ;;  %v809_v17 = vmul.f32 0.0, %v1816_v34 }
 0x12d   :  { %v802_v32 = vadd.f32 %v800_v16, %v522_v2  ;;  %v806_v39 = vsub.f32 1.0, %v1818_v35  ;;  %v810_v41 = vmul.f32 0.0, %v1818_v35  ;;  %v1796_v35 = vld [vmem:[%s2480_s5 + $0x30] sm:$0xff]  }
 0x12f   :  { %1821 = vtanh.f32 %v802_v32 }
 0x138   :  { %v1820_v37 = vpop.eup %1819 }
 0x139   :  { %v807_v38 = vmul.f32 %v1820_v37, %v805_v36  ;;  %v1797_v36 = vld [vmem:[%s2480_s5 + $0x28] sm:$0xff]   ;;  %v1798_v37 = vld [vmem:[%s2480_s5 + $0x20] sm:$0xff]  }
 0x13b   :  { %v2299_v19 = vadd.f32 %v809_v17, %v807_v38  ;;  %v1799_v38 = vld [vmem:[%s2480_s5 + $0x18] sm:$0xff]   ;;  %v1800_v17 = vld [vmem:[%s2480_s5 + $0x10] sm:$0xff]  }
 0x13c   :  { %v1822_v40 = vpop.eup %1821 }
 0x13d   :  { %818 = vrot.lane.b32.xlu1 %v2299_v19, %s1890_s4  ;;  %814 = vst.msk [vmem:[#allocation3] sm:$0xff] %vm813_vm1, %v2299_v19  ;;  %v808_v24 = vmul.f32 %v1822_v40, %v806_v39  ;;  %v1802_v40 = vld [vmem:[%s2480_s5] sm:$0xff]  }
 0x13f   :  { %v2305_v42 = vadd.f32 %v810_v41, %v808_v24 }
 0x141   :  { %815 = vst.msk [vmem:[#allocation3 + $0x8] sm:$0xff] %vm813_vm1, %v2305_v42  ;;  %820 = vrot.lane.b32.xlu1 %v2305_v42, %s1890_s4  ;;  %v834_v43 = vpack.c.bf16 %v2305_v42, %v2299_v19 }
 0x143   :  { %868 = vmatmul.mubr.bf16.vlgmr.msra.gmra.mxu1 %v834_v43  ;;  %1628 = vmatmul.mubr.bf16.vlgmr.msra.gmra.mxu0 %v834_v43 }
 0x144   :  { %1683 = vmatprep.mubr.msk.f32.mxu0 %vm1889_vm0, %v1888_v7 }
 0x1af   :  { %v819_v44 = vpop.permute.xlu1 %818 }
 0x1b0   :  { %825 = vst.msk [vmem:[#allocation4 + $0x10] sm:$0xff] %vm813_vm1, %v819_v44 }
 0x1b3   :  { %v821_v45 = vpop.permute.xlu1 %820 }
 0x1b4   :  { %826 = vst.msk [vmem:[#allocation4 + $0x18] sm:$0xff] %vm813_vm1, %v821_v45 }
 0x1bb   :  { %v983_v44 = vld [vmem:[#allocation4 + $0x18] sm:$0xff] }
 0x203   :  { %v869_v46 = vpop.f32.mrf.mxu1  ;;  %v912_v47 = vpop.f32.mrf.mxu0 }
 0x204   :  { %v919_v48 = vadd.f32 %v869_v46, %v2279_v52  ;;  %v976_v46 = vld [vmem:[#allocation3] sm:$0xff] }
 0x205   :  { %v871_v49 = vpop.f32.mrf.mxu1  ;;  %v1629_v50 = vpop.f32.mrf.mxu0 }
 0x206   :  { %v1503_v51 = vmul.f32 -1.442695, %v919_v48  ;;  %v933_v58 = vadd.f32 %v871_v49, %v2281_v55  ;;  %v947_v55 = vadd.f32 %v2290_v5, %v912_v47  ;;  %v977_v47 = vld [vmem:[#allocation3 + $0x8] sm:$0xff] }
 0x207   :  { %v873_v53 = vpop.f32.mrf.mxu1  ;;  %v915_v54 = vpop.f32.mrf.mxu0 }
 0x208   :  { %1823 = vpow2.f32 %v1503_v51  ;;  %v920_v56 = vadd.f32 %v873_v53, %v2283_v59  ;;  %v1505_v0 = vmul.f32 -1.442695, %v933_v58  ;;  %v948_v13 = vadd.f32 %v2290_v5, %v915_v54 }
 0x209   :  { %v1630_v57 = vpop.f32.mrf.mxu0  ;;  %v875_v62 = vpop.f32.mrf.mxu1 }
 0x20a   :  { %v1504_v60 = vmul.f32 -1.442695, %v920_v56  ;;  %v934_v63 = vadd.f32 %v875_v62, %v2285_v61 }
 0x20c   :  { %1825 = vpow2.f32 %v1504_v60  ;;  %v1506_v1 = vmul.f32 -1.442695, %v934_v63 }
 0x20d   :  { %1827 = vpow2.f32 %v1505_v0  ;;  %v1507_v0 = vld [vmem:[%s2481_s6] ss:$0 sm:$0xff] }
 0x20e   :  { %1829 = vpow2.f32 %v1506_v1 }
 0x215   :  { %v1824_v52 = vpop.eup %1823 }
 0x216   :  { %v927_v3 = vadd.f32 1.0, %v1824_v52 }
 0x218   :  { %1831 = vrcp.f32 %v927_v3 }
 0x219   :  { %v1826_v4 = vpop.eup %1825 }
 0x21a   :  { %v928_v6 = vadd.f32 1.0, %v1826_v4  ;;  %v1828_v8 = vpop.eup %1827 }
 0x21b   :  { %v1830_v59 = vpop.eup %1829  ;;  %v941_v9 = vadd.f32 1.0, %v1828_v8 }
 0x21c   :  { %1833 = vrcp.f32 %v928_v6  ;;  %v942_v11 = vadd.f32 1.0, %v1830_v59 }
 0x21d   :  { %1835 = vrcp.f32 %v941_v9 }
 0x21e   :  { %1837 = vrcp.f32 %v942_v11 }
 0x225   :  { %v1832_v10 = vpop.eup %1831 }
 0x226   :  { %v949_v12 = vmul.f32 %v1832_v10, %v947_v55  ;;  %v1516_v55 = vld [vmem:[%s2482_s7] ss:$0 sm:$0xff] }
 0x228   :  { %v951_v61 = vadd.f32 %v949_v12, %v2266_v27 }
 0x229   :  { %v1834_v14 = vpop.eup %1833 }
 0x22a   :  { %1839 = vtanh.f32 %v951_v61  ;;  %v950_v20 = vmul.f32 %v1834_v14, %v948_v13  ;;  %v1836_v22 = vpop.eup %1835 }
 0x22b   :  { %v1838_v23 = vpop.eup %1837  ;;  %v955_v25 = vsub.f32 1.0, %v1836_v22  ;;  %v959_v29 = vmul.f32 %v1836_v22, %v2299_v19  ;;  %v1801_v19 = vld [vmem:[%s2480_s5 + $0x8] sm:$0xff]  }
 0x22c   :  { %v952_v21 = vadd.f32 %v950_v20, %v2269_v30  ;;  %v956_v16 = vsub.f32 1.0, %v1838_v23  ;;  %v960_v5 = vmul.f32 %v1838_v23, %v2305_v42  ;;  %v1795_v30 = vld [vmem:[%s2480_s5 + $0x38] sm:$0xff]   ;;  %v982_v42 = vld [vmem:[#allocation4 + $0x10] sm:$0xff] }
 0x22d   :  { %1631 = vmatprep.subr.bf16.mxu1 %v1795_v30 }
 0x22e   :  { %1841 = vtanh.f32 %v952_v21  ;;  %1632 = vmatpush3.bf16.msra.mxu1 %v1795_v30  ;;  %v1154_v21 = vand.u32 127, %v140_v15 }
 0x22f   :  { %1633 = vmatprep.subr.bf16.mxu1 %v1796_v35 }
 0x230   :  { %v1159_v22 = vadd.s32 4294967288, %v1154_v21 }
 0x232   :  { %1634 = vmatpush3.bf16.msra.mxu1 %v1796_v35 }
 0x233   :  { %1635 = vmatprep.subr.bf16.mxu1 %v1797_v36 }
 0x236   :  { %1636 = vmatpush3.bf16.msra.mxu1 %v1797_v36 }
 0x237   :  { %v1840_v26 = vpop.eup %1839  ;;  %1637 = vmatprep.subr.bf16.mxu1 %v1798_v37 }
 0x238   :  { %v957_v28 = vmul.f32 %v1840_v26, %v955_v25  ;;  %v1162_v25 = vsub.s32 %v1159_v22, %v2255_v18  ;;  %v1304_v22 = vld [vmem:[%s2483_s8 + $0x30] sm:$0xff] }
 0x23a   :  { %v961_v2 = vadd.f32 %v959_v29, %v957_v28  ;;  %1638 = vmatpush3.bf16.msra.mxu1 %v1798_v37  ;;  %v1157_v29 = vsub.s32 %v1154_v21, %v2255_v18  ;;  %v1305_v21 = vld [vmem:[%s2483_s8 + $0x38] sm:$0xff] }
 0x23b   :  { %v1842_v32 = vpop.eup %1841  ;;  %1639 = vmatprep.subr.bf16.mxu1 %v1799_v38 }
 0x23c   :  { %968 = vrot.lane.b32.xlu0 %v961_v2, %s1890_s4  ;;  %964 = vst.msk [vmem:[#allocation3 + $0x10] sm:$0xff] %vm813_vm1, %v961_v2  ;;  %v958_v27 = vmul.f32 %v1842_v32, %v956_v16 }
 0x23e   :  { %v962_v34 = vadd.f32 %v960_v5, %v958_v27  ;;  %1640 = vmatpush3.bf16.msra.mxu1 %v1799_v38 }
 0x23f   :  { %1641 = vmatprep.subr.bf16.mxu1 %v1800_v17 }
 0x240   :  { %970 = vrot.lane.b32.xlu0 %v962_v34, %s1890_s4  ;;  %965 = vst.msk [vmem:[#allocation3 + $0x18] sm:$0xff] %vm813_vm1, %v962_v34 }
 0x242   :  { %1642 = vmatpush3.bf16.msra.mxu1 %v1800_v17 }
 0x243   :  { %1643 = vmatprep.subr.bf16.mxu1 %v1801_v19  ;;  %v978_v54 = vld [vmem:[#allocation3 + $0x10] sm:$0xff] }
 0x246   :  { %1644 = vmatpush3.bf16.msra.mxu1 %v1801_v19 }
 0x247   :  { %1645 = vmatprep.subr.bf16.mxu1 %v1802_v40  ;;  %v979_v57 = vld [vmem:[#allocation3 + $0x18] sm:$0xff] }
 0x24a   :  { %1646 = vmatpush3.bf16.msra.mxu1 %v1802_v40 }
 0x2ae   :  { %v969_v39 = vpop.permute.xlu0 %968 }
 0x2af   :  { %974 = vst.msk [vmem:[#allocation4] sm:$0xff] %vm813_vm1, %v969_v39 }
 0x2b2   :  { %v971_v24 = vpop.permute.xlu0 %970 }
 0x2b3   :  { %975 = vst.msk [vmem:[#allocation4 + $0x8] sm:$0xff] %vm813_vm1, %v971_v24 }
 0x2b6   :  { %v980_v41 = vld [vmem:[#allocation4] sm:$0xff] }
 0x2b7   :  { %988 = vrot.lane.b32.xlu0 %v980_v41, %s1890_s4 }
 0x2ba   :  { %v981_v43 = vld [vmem:[#allocation4 + $0x8] sm:$0xff] }
 0x2bb   :  { %992 = vrot.lane.b32.xlu0 %v982_v42, %s1890_s4  ;;  %990 = vrot.lane.b32.xlu1 %v981_v43, %s1890_s4 }
 0x2bf   :  { %994 = vrot.lane.b32.xlu1 %v983_v44, %s1890_s4 }
 0x329   :  { %v989_v45 = vpop.permute.xlu0 %988 }
 0x32a   :  { %v2362_v49 = vsel %vm813_vm1, %v976_v46, %v989_v45 }
 0x32d   :  { %v991_v48 = vpop.permute.xlu1 %990  ;;  %v993_v53 = vpop.permute.xlu0 %992 }
 0x32e   :  { %v2365_v50 = vsel %vm813_vm1, %v977_v47, %v991_v48  ;;  %v2370_v58 = vsel %vm813_vm1, %v978_v54, %v993_v53 }
 0x32f   :  { %v1022_v51 = vpack.c.bf16 %v2365_v50, %v2362_v49 }
 0x331   :  { %v995_v56 = vpop.permute.xlu1 %994  ;;  %1647 = vmatprep.mubr.bf16.mxu1 %v1022_v51 }
 0x332   :  { %v2373_v60 = vsel %vm813_vm1, %v979_v57, %v995_v56 }
 0x333   :  { %v1023_v62 = vpack.c.bf16 %v2373_v60, %v2370_v58 }
 0x335   :  { %1648 = vmatmul.mubr.bf16.vlgmr.msra.gmra.mxu1 %v1023_v62 }
 0x3f5   :  { %v1649_v63 = vpop.f32.mrf.mxu1 }
 0x3f6   :  { %v1121_v52 = vadd.f32 %v1649_v63, %v1507_v0 }
 0x3f7   :  { %v1112_v1 = vpop.f32.mrf.mxu1 }
 0x3f8   :  { %v1113_v3 = vadd.f32 %v1507_v0, %v1112_v1 }
 0x3f9   :  { %v1650_v4 = vpop.f32.mrf.mxu1 }
 0x3fa   :  { %1843 = vtanh.f32 %v1113_v3  ;;  %v1124_v8 = vadd.f32 %v1650_v4, %v1507_v0  ;;  %v1313_v3 = vld [vmem:[%s2483_s8 + $0x78] sm:$0xff] }
 0x3fb   :  { %v1115_v6 = vpop.f32.mrf.mxu1  ;;  %1845 = vtanh.f32 %v1121_v52  ;;  %1652 = vmatpush3.msra.mxu0 %v1313_v3 }
 0x3fc   :  { %v1116_v59 = vadd.f32 %v1507_v0, %v1115_v6  ;;  %1653 = vmatprep.subr.mxu0 %v1888_v7 }
 0x3fe   :  { %1847 = vtanh.f32 %v1116_v59  ;;  %v1312_v59 = vld [vmem:[%s2483_s8 + $0x70] sm:$0xff] }
 0x3ff   :  { %1849 = vtanh.f32 %v1124_v8  ;;  %1654 = vmatpush3.msra.mxu0 %v1312_v59 }
 0x400   :  { %1655 = vmatprep.subr.mxu0 %v1888_v7 }
 0x407   :  { %v1844_v9 = vpop.eup %1843 }
 0x408   :  { %v1137_v10 = vmul.f32 %v1844_v9, %v1516_v55  ;;  %v1846_v11 = vpop.eup %1845  ;;  %v1311_v9 = vld [vmem:[%s2483_s8 + $0x68] sm:$0xff] }
 0x409   :  { %v1139_v13 = vmul.f32 %v1846_v11, %v1516_v55  ;;  %1656 = vmatpush3.msra.mxu0 %v1311_v9 }
 0x40a   :  { %1141 = vadd.xlane.f32.xlu0 %v1137_v10  ;;  %1657 = vmatprep.subr.mxu0 %v1888_v7 }
 0x40b   :  { %v1848_v12 = vpop.eup %1847 }
 0x40c   :  { %v1138_v61 = vmul.f32 %v1848_v12, %v1516_v55  ;;  %v1850_v14 = vpop.eup %1849  ;;  %v1309_v12 = vld [vmem:[%s2483_s8 + $0x58] sm:$0xff] }
 0x40d   :  { %v1140_v20 = vmul.f32 %v1850_v14, %v1516_v55  ;;  %v1306_v14 = vld [vmem:[%s2483_s8 + $0x40] sm:$0xff] }
 0x40e   :  { %1143 = vadd.xlane.f32.xlu1 %v1138_v61  ;;  %1145 = vadd.xlane.f32.xlu0 %v1139_v13  ;;  %v1308_v61 = vld [vmem:[%s2483_s8 + $0x50] sm:$0xff] }
 0x412   :  { %1147 = vadd.xlane.f32.xlu0 %v1140_v20 }
 0x493   :  { %v1142_v23 = vpop.xlane.xlu0 %1141 }
 0x494   :  { %v1158_v32 = vrot.slane %v1142_v23, %v1157_v29 }
 0x497   :  { %v1144_v26 = vpop.xlane.xlu1 %1143  ;;  %v1146_v28 = vpop.xlane.xlu0 %1145 }
 0x498   :  { %v1163_v2 = vrot.slane %v1144_v26, %v1162_v25  ;;  %v1169_v27 = vrot.slane %v1146_v28, %v1157_v29 }
 0x49a   :  { %v1165_v34 = vsel %vm1164_vm2, %v1163_v2, %v1158_v32  ;;  %v1298_v2 = vld [vmem:[%s2483_s8] sm:$0xff] }
 0x49b   :  { %v1148_v16 = vpop.xlane.xlu0 %1147 }
 0x49c   :  { %v1173_v5 = vrot.slane %v1148_v16, %v1162_v25 }
 0x49e   :  { %v1174_v15 = vsel %vm1164_vm2, %v1173_v5, %v1169_v27 }
 0x49f   :  { %v1176_v30 = vsel %vm1175_vm3, %v1174_v15, %v1165_v34 }
 0x4a0   :  { %v1179_v35 = vsel %vm1178_vm4, %v1176_v30, -inf }
 0x4a1   :  { %1180 = vmax.xlane.f32.xlu1 %v1179_v35 }
 0x52a   :  { %v1181_v36 = vpop.xlane.xlu1 %1180 }
 0x52b   :  { %v1186_v18 = vrot.slane %v1181_v36, %v2272_v31  ;;  %v1190_v37 = vrot.slane %v1181_v36, %v2276_v33 }
 0x52d   :  { %v1193_v38 = vsub.f32 %v1142_v23, %v1186_v18  ;;  %v1194_v17 = vsub.f32 %v1144_v26, %v1186_v18  ;;  %v1195_v19 = vsub.f32 %v1146_v28, %v1190_v37  ;;  %v1196_v24 = vsub.f32 %v1148_v16, %v1190_v37  ;;  %v1303_v23 = vld [vmem:[%s2483_s8 + $0x28] sm:$0xff]  ;;  %v1301_v26 = vld [vmem:[%s2483_s8 + $0x18] sm:$0xff]  ;;  %v1300_v28 = vld [vmem:[%s2483_s8 + $0x10] sm:$0xff] }
 0x52f   :  { %v1197_v39 = vmul.f32 1.442695, %v1193_v38  ;;  %v1199_v40 = vmul.f32 1.442695, %v1194_v17  ;;  %v1201_v41 = vmul.f32 1.442695, %v1195_v19 }
 0x530   :  { %v1203_v42 = vmul.f32 1.442695, %v1196_v24 }
 0x531   :  { %1851 = vpow2.f32 %v1197_v39 }
 0x532   :  { %1853 = vpow2.f32 %v1199_v40 }
 0x533   :  { %1855 = vpow2.f32 %v1201_v41 }
 0x534   :  { %1857 = vpow2.f32 %v1203_v42 }
 0x53e   :  { %v1852_v43 = vpop.eup %1851 }
 0x53f   :  { %v1854_v44 = vpop.eup %1853  ;;  %1210 = vperm.xlu0 %1691, %v1852_v43  }
 0x540   :  { %1213 = vperm.xlu1 %1692, %v1854_v44   ;;  %v1856_v45 = vpop.eup %1855 }
 0x541   :  { %v1858_v46 = vpop.eup %1857 }
 0x544   :  { %1216 = vperm.xlu1 %1692, %v1856_v45  }
 0x548   :  { %1219 = vperm.xlu1 %1692, %v1858_v46  }
 0x5ba   :  { %v1211_v48 = vpop.permute.xlu0 %1210 }
 0x5bb   :  { %v1214_v47 = vpop.permute.xlu1 %1213  ;;  %v1224_v54 = vrot.slane %v1211_v48, %v1157_v29 }
 0x5bc   :  { %v1228_v53 = vrot.slane %v1214_v47, %v1162_v25 }
 0x5be   :  { %v1229_v63 = vsel %vm1164_vm2, %v1228_v53, %v1224_v54 }
 0x5bf   :  { %v1217_v51 = vpop.permute.xlu1 %1216 }
 0x5c0   :  { %v1233_v57 = vrot.slane %v1217_v51, %v1157_v29  ;;  %v1299_v29 = vld [vmem:[%s2483_s8 + $0x8] sm:$0xff] }
 0x5c3   :  { %v1220_v56 = vpop.permute.xlu1 %1219 }
 0x5c4   :  { %v1237_v62 = vrot.slane %v1220_v56, %v1162_v25  ;;  %v1302_v25 = vld [vmem:[%s2483_s8 + $0x20] sm:$0xff] }
 0x5c6   :  { %v1238_v0 = vsel %vm1164_vm2, %v1237_v62, %v1233_v57 }
 0x5c7   :  { %v1239_v1 = vsel %vm1175_vm3, %v1238_v0, %v1229_v63 }
 0x5c8   :  { %v1241_v52 = vsel %vm1178_vm4, %v1239_v1, 0.0 }
 0x5c9   :  { %1242 = vadd.xlane.f32.xlu1 %v1241_v52 }
 0x652   :  { %v1243_v4 = vpop.xlane.xlu1 %1242 }
 0x653   :  { %1859 = vrcp.f32 %v1243_v4 }
 0x660   :  { %v1860_v6 = vpop.eup %1859 }
 0x661   :  { %v1249_v8 = vrot.slane %v1860_v6, %v2272_v31  ;;  %v1310_v31 = vld [vmem:[%s2483_s8 + $0x60] sm:$0xff]  ;;  %v1253_v11 = vrot.slane %v1860_v6, %v2276_v33  ;;  %v1307_v33 = vld [vmem:[%s2483_s8 + $0x48] sm:$0xff] }
 0x662   :  { %1658 = vmatpush3.msra.mxu0 %v1310_v31 }
 0x663   :  { %v1256_v55 = vmul.f32 %v1852_v43, %v1249_v8  ;;  %v1257_v10 = vmul.f32 %v1854_v44, %v1249_v8  ;;  %1659 = vmatprep.subr.mxu0 %v1888_v7  ;;  %v1258_v13 = vmul.f32 %v1856_v45, %v1253_v11  ;;  %v1259_v20 = vmul.f32 %v1858_v46, %v1253_v11 }
 0x664   :  { %1660 = vmatpush3.msra.mxu0 %v1309_v12 }
 0x665   :  { %1262 = vperm.xlu0 %1691, %v1256_v55   ;;  %1661 = vmatprep.subr.mxu0 %v1888_v7 }
 0x666   :  { %1662 = vmatpush3.msra.mxu0 %v1308_v61 }
 0x667   :  { %1663 = vmatprep.subr.mxu0 %v1888_v7 }
 0x668   :  { %1664 = vmatpush3.msra.mxu0 %v1307_v33 }
 0x669   :  { %1267 = vperm.xlu0 %1691, %v1257_v10   ;;  %1665 = vmatprep.subr.mxu0 %v1888_v7 }
 0x66a   :  { %1666 = vmatpush3.msra.mxu0 %v1306_v14 }
 0x66b   :  { %1667 = vmatprep.subr.mxu0 %v1888_v7 }
 0x66c   :  { %1668 = vmatpush3.msra.mxu0 %v1305_v21 }
 0x66d   :  { %1272 = vperm.xlu0 %1691, %v1258_v13   ;;  %1669 = vmatprep.subr.mxu0 %v1888_v7 }
 0x66e   :  { %1670 = vmatpush3.msra.mxu0 %v1304_v22 }
 0x66f   :  { %1671 = vmatprep.subr.mxu0 %v1888_v7 }
 0x670   :  { %1672 = vmatpush3.msra.mxu0 %v1303_v23 }
 0x671   :  { %1277 = vperm.xlu0 %1691, %v1259_v20   ;;  %1673 = vmatprep.subr.mxu0 %v1888_v7 }
 0x672   :  { %1674 = vmatpush3.msra.mxu0 %v1302_v25 }
 0x673   :  { %1675 = vmatprep.subr.mxu0 %v1888_v7 }
 0x674   :  { %1676 = vmatpush3.msra.mxu0 %v1301_v26 }
 0x675   :  { %1677 = vmatprep.subr.mxu0 %v1888_v7 }
 0x676   :  { %1678 = vmatpush3.msra.mxu0 %v1300_v28 }
 0x677   :  { %1679 = vmatprep.subr.mxu0 %v1888_v7 }
 0x678   :  { %1680 = vmatpush3.msra.mxu0 %v1299_v29 }
 0x679   :  { %1681 = vmatprep.subr.mxu0 %v1888_v7 }
 0x67a   :  { %1682 = vmatpush3.msra.mxu0 %v1298_v2 }
 0x6e0   :  { %v1263_v16 = vpop.permute.xlu0 %1262 }
 0x6e1   :  { %v1280_v27 = vmul.f32 %v1263_v16, %v2362_v49 }
 0x6e4   :  { %v1268_v32 = vpop.permute.xlu0 %1267 }
 0x6e5   :  { %v1281_v5 = vmul.f32 %v1268_v32, %v2365_v50 }
 0x6e7   :  { %v1284_v34 = vadd.f32 %v1281_v5, %v1280_v27 }
 0x6e8   :  { %v1273_v15 = vpop.permute.xlu0 %1272 }
 0x6e9   :  { %v1285_v30 = vrot.slane %v1284_v34, 4  ;;  %v1282_v18 = vmul.f32 %v1273_v15, %v2370_v58  ;;  %v1517_v58 = vld [vmem:[%s2484_s9] ss:$0 sm:$0xff]  ;;  %s1865_s9 = scalar_lea.vmem %s1415_s22, 32 }
 0x6ea   :  { %p1866_p0 = scmp.ne.s32.totalorder %s1415_s22, %s1865_s9  ;;  %p1871_p2 = scmp.lt.s32.totalorder %s1865_s9, %s1865_s9 }
 0x6eb   :  { %v1286_v35 = vadd.f32 %v1285_v30, %v1284_v34 }
 0x6ec   :  { %v1278_v36 = vpop.permute.xlu0 %1277  ;;  %p1872_p3 = por %p1871_p2, %p1870_p1 }
 0x6ed   :  { %v1283_v37 = vmul.f32 %v1278_v36, %v2373_v60  ;;  %v1287_v38 = vrot.slane %v1286_v35, 2 }
 0x6ee   :  { %p1873_p4 = pnand %p1872_p3, %p1866_p0 }
 0x6ef   :  { %v1291_v17 = vadd.f32 %v1283_v37, %v1282_v18  ;;  %v1288_v7 = vadd.f32 %v1287_v38, %v1286_v35 }
 0x6f1   :  { %v1292_v19 = vrot.slane %v1291_v17, 4  ;;  %v1289_v24 = vrot.slane %v1288_v7, 1 }
 0x6f3   :  { %v1293_v39 = vadd.f32 %v1292_v19, %v1291_v17  ;;  %v1290_v42 = vadd.f32 %v1289_v24, %v1288_v7 }
 0x6f5   :  { %v1294_v40 = vrot.slane %v1293_v39, 2 }
 0x6f7   :  { %v1295_v41 = vadd.f32 %v1294_v40, %v1293_v39 }
 0x6f9   :  { %v1296_v49 = vrot.slane %v1295_v41, 1 }
 0x6fb   :  { %v1297_v50 = vadd.f32 %v1296_v49, %v1295_v41 }
 0x6fd   :  { %v1323_v43 = vsel %vm1175_vm3, %v1297_v50, %v1290_v42 }
 0x6fe   :  { %1684 = vmatmul.mubr.f32.vlgmr.msra.gmra.mxu0 %v1323_v43 }
 0x7be   :  { %v1391_v44 = vpop.f32.mrf.mxu0 }
 0x7bf   :  { %v1392_v60 = vadd.f32 %v1517_v58, %v1391_v44 }
 0x7c0   :  { %v1685_v45 = vpop.f32.mrf.mxu0 }
 0x7c1   :  { %v1396_v46 = vsel %vm1395_vm5, %v1392_v60, -inf }
 0x7c2   :  { %1397 = vmax.xlane.f32.xlu0 %v1396_v46 }
 0x84b   :  { %v1398_v47 = vpop.xlane.xlu0 %1397 }
 0x84c   :  { %v1399_v48 = vsub.f32 %v1392_v60, %v1398_v47 }
 0x84e   :  { %v1400_v51 = vmul.f32 1.442695, %v1399_v48 }
 0x850   :  { %1861 = vpow2.f32 %v1400_v51 }
 0x85d   :  { %v1862_v53 = vpop.eup %1861 }
 0x85e   :  { %v1402_v54 = vsel %vm1395_vm5, %v1862_v53, 0.0 }
 0x85f   :  { %1403 = vadd.xlane.f32.xlu1 %v1402_v54 }
 0x8e8   :  { %v1404_v56 = vpop.xlane.xlu1 %1403 }
 0x8e9   :  { %1863 = vrcp.f32 %v1404_v56 }
 0x8f6   :  { %v1864_v57 = vpop.eup %1863 }
 0x8f7   :  { %v1406_v62 = vmul.f32 %v1864_v57, %v1862_v53 }
 0x8f9   :  { %1407 = vst.msk [vmem:[#allocation5] sm:$0x3] %vm1395_vm5, %v1406_v62 }
 0x8fa   :  { %1876 = shalt.err (!%p1873_p4)
}
 0x8fb   :  { %1417 = dma.vmem_to_hbm [thread:$0]  %s1415_s22, 32, %s2485_s10, [#allocation6]  }
 0x8fc   :  { %1885 = dma.done.wait [#allocation6], 32  }
 0x8fd   :  { %1886 = vsyncadd [#allocation6], 4294967264 }
 0x8fe   :  { %1421 = vsyncpa [#allocation6], 1 }

// kernel: han_forward.2
= control target key start
LH: loop header
LB: loop body
LE: loop exit
PB: predicated region body
PF: predicated region fallthrough
CT: control target
= control target key end

     0   :  { %s6074_s27 = smov 0   ;;  %s6076_s28 = smov 0   ;;  %s8329_s0 = inlined_call_operand.vmem [shape: bf16[2,16,16,256], index: 0, kind: input, shape index: {}]   ;;  %s8330_s1 = inlined_call_operand.vmem [shape: bf16[256,384], index: 1, kind: input, shape index: {}]   ;;  %s8331_s2 = inlined_call_operand.vmem [shape: bf16[128,384], index: 2, kind: input, shape index: {}]   ;;  %s8332_s3 = inlined_call_operand.vmem [shape: f32[1,384], index: 3, kind: input, shape index: {}]   ;;  %s8333_s4 = inlined_call_operand.vmem [shape: f32[1,128], index: 4, kind: input, shape index: {}]   ;;  %s8334_s5 = inlined_call_operand.vmem [shape: bf16[128,128], index: 5, kind: input, shape index: {}]   ;;  %s8335_s6 = inlined_call_operand.vmem [shape: f32[1,128], index: 6, kind: input, shape index: {}]   ;;  %s8336_s7 = inlined_call_operand.vmem [shape: f32[1,128], index: 7, kind: input, shape index: {}]   ;;  %s8337_s8 = inlined_call_operand.vmem [shape: f32[2,16,128], index: 8, kind: output, shape index: {}]  }
   0x1   :  { %s6078_s29 = smov 0  }
   0x2 LB: > { %s4878_s30 = sadd.s32 4294967295, %s6025_s29   ;;  %s6091_s9 = sadd.s32 1, %s6025_s29   ;;  %s6025_s29 = sphi %s6078_s29, %s8561_s29   ;;  %s6021_s28 = sphi %s6076_s28, %s8560_s28   ;;  %s6017_s27 = sphi %s6074_s27, %s8559_s27  }
   0x3   : > { %s22_s10 = ssub.s32 %s6025_s29, %s6091_s9  ;;  %s25_s11 = sadd.s32 1, %s6021_s28 }
   0x4   : > { %p23_p0 = scmp.eq.s32.totalorder %s22_s10, 0  ;;  %p32_p1 = scmp.ne.s32.totalorder %s6021_s28, %s6017_s27 }
   0x5   : > { %p33_p2 = scmp.eq.s32.totalorder %s6025_s29, 0  ;;  %p209_p3 = scmp.eq.s32.totalorder %s4878_s30, 1 }
   0x6   : > { %s6102_s12 = scalar_select %p23_p0, %s6021_s28, %s25_s11  }
   0x7   : > { %p34_p4 = por %p33_p2, %p32_p1  ;;  %p6104_p5 = por %p209_p3, %p32_p1 }
   0x8   : > { %p4881_p6 = scmp.ge.s32.totalorder %s6025_s29, 2 }
   0xa   : > { %252 = sbr.rel (%p4881_p6) target bundleno = 35 (0x23), region = 44 }
   0xf   : > { %255 = sbr.rel (!%p34_p4) target bundleno = 35 (0x23), region = 48  ;;  %s257_s14 = sand.u32 (%p34_p4), 1, %s6021_s28  }
  0x10   : > { %s5073_s15 = sshll.u32 (%p34_p4), %s6025_s29, 7  ;;  %s4882_s16 = sshll.u32 (%p34_p4), %s257_s14, 8 }
  0x11   : > { %s6114_s19 = scalar_lea.vmem (%p34_p4), %s8329_s0, %s5073_s15  ;;  %s6119_s20 = scalar_lea.vmem (%p34_p4), [#allocation5], %s4882_s16 }
  0x12   : > { %v354_v0 = vld [vmem:[%s6114_s19] sm:$0xff] (%p34_p4)  ;;  %v356_v1 = vld [vmem:[%s6114_s19 + $0x8] sm:$0xff] (%p34_p4)  ;;  %v358_v2 = vld [vmem:[%s6114_s19 + $0x10] sm:$0xff] (%p34_p4) }
  0x13   : > { %355 = vst [vmem:[%s6119_s20] sm:$0xff] (%p34_p4), %v354_v0  ;;  %357 = vst [vmem:[%s6119_s20 + $0x8] sm:$0xff] (%p34_p4), %v356_v1  ;;  %v360_v3 = vld [vmem:[%s6114_s19 + $0x18] sm:$0xff] (%p34_p4)  ;;  %v362_v4 = vld [vmem:[%s6114_s19 + $0x20] sm:$0xff] (%p34_p4) }
  0x14   : > { %359 = vst [vmem:[%s6119_s20 + $0x10] sm:$0xff] %v358_v2  ;;  %v364_v5 = vld [vmem:[%s6114_s19 + $0x28] sm:$0xff]  ;;  %361 = vst [vmem:[%s6119_s20 + $0x18] sm:$0xff] %v360_v3  ;;  %v366_v6 = vld [vmem:[%s6114_s19 + $0x30] sm:$0xff] }
  0x15   : > { %363 = vst [vmem:[%s6119_s20 + $0x20] sm:$0xff] %v362_v4  ;;  %365 = vst [vmem:[%s6119_s20 + $0x28] sm:$0xff] %v364_v5  ;;  %v368_v7 = vld [vmem:[%s6114_s19 + $0x38] sm:$0xff]  ;;  %v370_v8 = vld [vmem:[%s6114_s19 + $0x40] sm:$0xff] }
  0x16   : > { %367 = vst [vmem:[%s6119_s20 + $0x30] sm:$0xff] %v366_v6  ;;  %369 = vst [vmem:[%s6119_s20 + $0x38] sm:$0xff] %v368_v7  ;;  %v372_v9 = vld [vmem:[%s6114_s19 + $0x48] sm:$0xff]  ;;  %v374_v10 = vld [vmem:[%s6114_s19 + $0x50] sm:$0xff] }
  0x17   : > { %371 = vst [vmem:[%s6119_s20 + $0x40] sm:$0xff] %v370_v8  ;;  %v376_v11 = vld [vmem:[%s6114_s19 + $0x58] sm:$0xff]  ;;  %373 = vst [vmem:[%s6119_s20 + $0x48] sm:$0xff] %v372_v9  ;;  %v378_v12 = vld [vmem:[%s6114_s19 + $0x60] sm:$0xff] }
  0x18   : > { %375 = vst [vmem:[%s6119_s20 + $0x50] sm:$0xff] %v374_v10  ;;  %377 = vst [vmem:[%s6119_s20 + $0x58] sm:$0xff] %v376_v11  ;;  %v380_v13 = vld [vmem:[%s6114_s19 + $0x68] sm:$0xff]  ;;  %v382_v14 = vld [vmem:[%s6114_s19 + $0x70] sm:$0xff] }
  0x19   : > { %379 = vst [vmem:[%s6119_s20 + $0x60] sm:$0xff] %v378_v12  ;;  %381 = vst [vmem:[%s6119_s20 + $0x68] sm:$0xff] %v380_v13  ;;  %v384_v15 = vld [vmem:[%s6114_s19 + $0x78] sm:$0xff]  ;;  %v386_v16 = vld [vmem:[%s6114_s19 + $0x100] sm:$0xff] }
  0x1a   : > { %383 = vst [vmem:[%s6119_s20 + $0x70] sm:$0xff] %v382_v14  ;;  %v388_v17 = vld [vmem:[%s6114_s19 + $0x108] sm:$0xff]  ;;  %385 = vst [vmem:[%s6119_s20 + $0x78] sm:$0xff] %v384_v15  ;;  %v390_v18 = vld [vmem:[%s6114_s19 + $0x110] sm:$0xff] }
  0x1b   : > { %387 = vst [vmem:[%s6119_s20 + $0x80] sm:$0xff] %v386_v16  ;;  %389 = vst [vmem:[%s6119_s20 + $0x88] sm:$0xff] %v388_v17  ;;  %v392_v19 = vld [vmem:[%s6114_s19 + $0x118] sm:$0xff]  ;;  %v394_v20 = vld [vmem:[%s6114_s19 + $0x120] sm:$0xff] }
  0x1c   : > { %391 = vst [vmem:[%s6119_s20 + $0x90] sm:$0xff] %v390_v18  ;;  %393 = vst [vmem:[%s6119_s20 + $0x98] sm:$0xff] %v392_v19  ;;  %v396_v21 = vld [vmem:[%s6114_s19 + $0x128] sm:$0xff]  ;;  %v398_v22 = vld [vmem:[%s6114_s19 + $0x130] sm:$0xff] }
  0x1d   : > { %395 = vst [vmem:[%s6119_s20 + $0xa0] sm:$0xff] %v394_v20  ;;  %v400_v23 = vld [vmem:[%s6114_s19 + $0x138] sm:$0xff]  ;;  %397 = vst [vmem:[%s6119_s20 + $0xa8] sm:$0xff] %v396_v21  ;;  %v402_v24 = vld [vmem:[%s6114_s19 + $0x140] sm:$0xff] }
  0x1e   : > { %399 = vst [vmem:[%s6119_s20 + $0xb0] sm:$0xff] %v398_v22  ;;  %401 = vst [vmem:[%s6119_s20 + $0xb8] sm:$0xff] %v400_v23  ;;  %v404_v25 = vld [vmem:[%s6114_s19 + $0x148] sm:$0xff]  ;;  %v406_v26 = vld [vmem:[%s6114_s19 + $0x150] sm:$0xff] }
  0x1f   : > { %403 = vst [vmem:[%s6119_s20 + $0xc0] sm:$0xff] %v402_v24  ;;  %405 = vst [vmem:[%s6119_s20 + $0xc8] sm:$0xff] %v404_v25  ;;  %v408_v27 = vld [vmem:[%s6114_s19 + $0x158] sm:$0xff]  ;;  %v410_v28 = vld [vmem:[%s6114_s19 + $0x160] sm:$0xff] }
  0x20   : > { %407 = vst [vmem:[%s6119_s20 + $0xd0] sm:$0xff] %v406_v26  ;;  %v412_v29 = vld [vmem:[%s6114_s19 + $0x168] sm:$0xff]  ;;  %409 = vst [vmem:[%s6119_s20 + $0xd8] sm:$0xff] %v408_v27  ;;  %v414_v30 = vld [vmem:[%s6114_s19 + $0x170] sm:$0xff] }
  0x21   : > { %411 = vst [vmem:[%s6119_s20 + $0xe0] sm:$0xff] %v410_v28  ;;  %413 = vst [vmem:[%s6119_s20 + $0xe8] sm:$0xff] %v412_v29  ;;  %v416_v31 = vld [vmem:[%s6114_s19 + $0x178] sm:$0xff] }
  0x22   : > { %415 = vst [vmem:[%s6119_s20 + $0xf0] sm:$0xff] %v414_v30  ;;  %417 = vst [vmem:[%s6119_s20 + $0xf8] sm:$0xff] %v416_v31 }
  0x23 PF: > { %p4886_p7 = scmp.ge.s32.totalorder %s6025_s29, 1  ;;  %p422_p8 = scmp.lt.s32.totalorder %s6025_s29, 3 }
  0x25   : > { %p423_p9 = pnand %p4886_p7, %p422_p8 }
  0x27   : > { %426 = sbr.rel (%p423_p9) target bundleno = 2121 (0x849), region = 86 }
  0x2c   : > { %v5398_v32 = vld [vmem:[%s8330_s1 + $0xac] ss:$12 sps:$4 sm:$0xff]   ;;  %v5400_v33 = vld [vmem:[%s8330_s1 + $0x170] ss:$12 sps:$4 sm:$0xff]   ;;  %v5401_v34 = vld [vmem:[%s8330_s1 + $0xa8] ss:$12 sps:$4 sm:$0xff]  }
  0x2d   : > { %1025 = vmatprep.subr.bf16.mxu0 %v5398_v32  ;;  %5074 = vmatprep.subr.bf16.mxu1 %v5400_v33  ;;  %v5402_v35 = vld [vmem:[%s8330_s1 + $0xb0] ss:$12 sps:$4 sm:$0xff]   ;;  %v5403_v36 = vld [vmem:[%s8330_s1 + $0x94] ss:$12 sps:$4 sm:$0xff]   ;;  %v5405_v37 = vld [vmem:[%s8330_s1 + $0x158] ss:$12 sps:$4 sm:$0xff]  }
  0x2e   : > { %1026 = vmatpush1.bf16.msra.mxu0 %v5401_v34  ;;  %5075 = vmatpush3.bf16.msra.mxu1 %v5402_v35  ;;  %v5406_v38 = vld [vmem:[%s8330_s1 + $0x90] ss:$12 sps:$4 sm:$0xff]   ;;  %v5407_v39 = vld [vmem:[%s8330_s1 + $0x98] ss:$12 sps:$4 sm:$0xff]   ;;  %v5410_v41 = vld [vmem:[%s8330_s1 + $0x140] ss:$12 sps:$4 sm:$0xff]  }
  0x2f   : > { %1027 = vmatprep.subr.bf16.mxu0 %v5403_v36  ;;  %5076 = vmatprep.subr.bf16.mxu1 %v5405_v37  ;;  %v5408_v40 = vld [vmem:[%s8330_s1 + $0x7c] ss:$12 sps:$4 sm:$0xff]   ;;  %v5411_v42 = vld [vmem:[%s8330_s1 + $0x78] ss:$12 sps:$4 sm:$0xff]   ;;  %v5412_v43 = vld [vmem:[%s8330_s1 + $0x80] ss:$12 sps:$4 sm:$0xff]  }
  0x30   : > { %v5413_v44 = vld [vmem:[%s8330_s1 + $0x64] ss:$12 sps:$4 sm:$0xff]   ;;  %v5415_v45 = vld [vmem:[%s8330_s1 + $0x128] ss:$12 sps:$4 sm:$0xff]   ;;  %v5416_v46 = vld [vmem:[%s8330_s1 + $0x60] ss:$12 sps:$4 sm:$0xff]  }
  0x31   : > { %v5417_v47 = vld [vmem:[%s8330_s1 + $0x68] ss:$12 sps:$4 sm:$0xff]   ;;  %v5418_v48 = vld [vmem:[%s8330_s1 + $0x4c] ss:$12 sps:$4 sm:$0xff]   ;;  %v5420_v49 = vld [vmem:[%s8330_s1 + $0x110] ss:$12 sps:$4 sm:$0xff]  }
  0x32   : > { %1028 = vmatpush1.bf16.msra.mxu0 %v5406_v38  ;;  %5077 = vmatpush3.bf16.msra.mxu1 %v5407_v39  ;;  %v5421_v50 = vld [vmem:[%s8330_s1 + $0x48] ss:$12 sps:$4 sm:$0xff]   ;;  %v5422_v51 = vld [vmem:[%s8330_s1 + $0x50] ss:$12 sps:$4 sm:$0xff]   ;;  %s429_s18 = sand.u32 1, %s6017_s27   ;;  %v8338_v5 = vmov 0  }
  0x33   : > { %1029 = vmatprep.subr.bf16.mxu0 %v5408_v40  ;;  %5078 = vmatprep.subr.bf16.mxu1 %v5410_v41  ;;  %v5423_v52 = vld [vmem:[%s8330_s1 + $0x34] ss:$12 sps:$4 sm:$0xff]   ;;  %v5425_v53 = vld [vmem:[%s8330_s1 + $0xf8] ss:$12 sps:$4 sm:$0xff]   ;;  %v5426_v54 = vld [vmem:[%s8330_s1 + $0x30] ss:$12 sps:$4 sm:$0xff]  }
  0x34   : > { %v5427_v55 = vld [vmem:[%s8330_s1 + $0x38] ss:$12 sps:$4 sm:$0xff]   ;;  %s4887_s25 = sshll.u32 %s429_s18, 8  ;;  %v5428_v56 = vld [vmem:[%s8330_s1 + $0x1c] ss:$12 sps:$4 sm:$0xff]   ;;  %5397 = vset.pattern.permute.xlu0 %v8338_v5  ;;  %5396 = vset.pattern.permute.xlu1 %v8338_v5  ;;  %vm2219_vm0 = vcmask 523264  }
  0x35   : > { %v5430_v57 = vld [vmem:[%s8330_s1 + $0xe0] ss:$12 sps:$4 sm:$0xff]   ;;  %v5431_v58 = vld [vmem:[%s8330_s1 + $0x18] ss:$12 sps:$4 sm:$0xff]   ;;  %v5435_v61 = vld [vmem:[%s8330_s1 + $0xc8] ss:$12 sps:$4 sm:$0xff]  }
  0x36   : > { %1030 = vmatpush1.bf16.msra.mxu0 %v5411_v42  ;;  %5079 = vmatpush3.bf16.msra.mxu1 %v5412_v43  ;;  %v5432_v59 = vld [vmem:[%s8330_s1 + $0x20] ss:$12 sps:$4 sm:$0xff]   ;;  %v5433_v60 = vld [vmem:[%s8330_s1 + $0x4] ss:$12 sps:$4 sm:$0xff]   ;;  %s6277_s24 = scalar_lea.vmem [#allocation5], %s4887_s25  ;;  %s6028_s20 = smov 64  }
  0x37   : > { %1031 = vmatprep.subr.bf16.mxu0 %v5413_v44  ;;  %5080 = vmatprep.subr.bf16.mxu1 %v5415_v45  ;;  %v5436_v62 = vld [vmem:[%s8330_s1] ss:$12 sps:$4 sm:$0xff]   ;;  %v5437_v0 = vld [vmem:[%s8330_s1 + $0x8] ss:$12 sps:$4 sm:$0xff]   ;;  %v5449_v9 = vld [vmem:[%s8330_s1 + $0x150] ss:$12 sps:$4 sm:$0xff]  }
  0x38   : > { %v5440_v63 = vld [vmem:[%s6277_s24 + $0x4] ss:$8 sps:$4 sm:$0xff]   ;;  %v6295_v3 = vld [vmem:[%s6277_s24] ss:$8 sps:$4 sm:$0xff]   ;;  %v6312_v8 = vld [vmem:[%s6277_s24 + $0x14] ss:$8 sps:$4 sm:$0xff]  }
  0x39   : > { %v5441_v1 = vld [vmem:[%s8330_s1 + $0x16c] ss:$12 sps:$4 sm:$0xff]   ;;  %1250 = vmatprep.mubr.bf16.mxu1 %v5440_v63  ;;  %v5443_v4 = vld [vmem:[%s8330_s1 + $0x168] ss:$12 sps:$4 sm:$0xff]   ;;  %1057 = vmatprep.mubr.bf16.mxu0 %v5440_v63  ;;  %v6332_v13 = vld [vmem:[%s8331_s2 + $0x90] ss:$12 sps:$4 sm:$0xff]  }
  0x3a   : > { %1032 = vmatpush1.bf16.msra.mxu0 %v5416_v46  ;;  %5081 = vmatpush3.bf16.msra.mxu1 %v5417_v47  ;;  %v6292_v2 = vld [vmem:[%s8331_s2 + $0xac] ss:$12 sps:$4 sm:$0xff]   ;;  %v6304_v6 = vld [vmem:[%s8331_s2 + $0xa8] ss:$12 sps:$4 sm:$0xff]   ;;  %v5456_v15 = vld [vmem:[%s8330_s1 + $0x124] ss:$12 sps:$4 sm:$0xff]  }
  0x3b   : > { %1033 = vmatprep.subr.bf16.mxu0 %v5418_v48  ;;  %5082 = vmatprep.subr.bf16.mxu1 %v5420_v49  ;;  %v5447_v7 = vld [vmem:[%s8330_s1 + $0x154] ss:$12 sps:$4 sm:$0xff]   ;;  %v5452_v10 = vld [vmem:[%s8330_s1 + $0x13c] ss:$12 sps:$4 sm:$0xff]   ;;  %v6324_v11 = vld [vmem:[%s6277_s24 + $0x10] ss:$8 sps:$4 sm:$0xff]  }
  0x3c   : > { %v5455_v12 = vld [vmem:[%s8330_s1 + $0x138] ss:$12 sps:$4 sm:$0xff]   ;;  %v6337_v14 = vld [vmem:[%s8331_s2 + $0x94] ss:$12 sps:$4 sm:$0xff]   ;;  %v6372_v23 = vld [vmem:[%s8331_s2 + $0x7c] ss:$12 sps:$4 sm:$0xff]  }
  0x3d   : > { %v6343_v16 = vld [vmem:[%s6277_s24 + $0x24] ss:$8 sps:$4 sm:$0xff]   ;;  %v6356_v19 = vld [vmem:[%s6277_s24 + $0x20] ss:$8 sps:$4 sm:$0xff]   ;;  %v6375_v24 = vld [vmem:[%s6277_s24 + $0x34] ss:$8 sps:$4 sm:$0xff]  }
  0x3e   : > { %1034 = vmatpush1.bf16.msra.mxu0 %v5421_v50  ;;  %5083 = vmatpush3.bf16.msra.mxu1 %v5422_v51  ;;  %v5458_v17 = vld [vmem:[%s8330_s1 + $0x120] ss:$12 sps:$4 sm:$0xff]   ;;  %v5464_v20 = vld [vmem:[%s8330_s1 + $0x108] ss:$12 sps:$4 sm:$0xff]   ;;  %v6367_v22 = vld [vmem:[%s8331_s2 + $0x78] ss:$12 sps:$4 sm:$0xff]  }
  0x3f   : > { %1035 = vmatprep.subr.bf16.mxu0 %v5423_v52  ;;  %5084 = vmatprep.subr.bf16.mxu1 %v5425_v53  ;;  %v5461_v18 = vld [vmem:[%s8330_s1 + $0x10c] ss:$12 sps:$4 sm:$0xff]   ;;  %v5468_v21 = vld [vmem:[%s8330_s1 + $0xf4] ss:$12 sps:$4 sm:$0xff]   ;;  %v5470_v25 = vld [vmem:[%s8330_s1 + $0xf0] ss:$12 sps:$4 sm:$0xff]  }
  0x40   : > { %v5473_v26 = vld [vmem:[%s8330_s1 + $0xdc] ss:$12 sps:$4 sm:$0xff]   ;;  %v6390_v27 = vld [vmem:[%s8331_s2 + $0x60] ss:$12 sps:$4 sm:$0xff]   ;;  %v6395_v28 = vld [vmem:[%s8331_s2 + $0x64] ss:$12 sps:$4 sm:$0xff]  }
  0x41   : > { %v6398_v29 = vld [vmem:[%s6277_s24 + $0x30] ss:$8 sps:$4 sm:$0xff]   ;;  %v6409_v32 = vld [vmem:[%s6277_s24 + $0x44] ss:$8 sps:$4 sm:$0xff]   ;;  %v6419_v34 = vld [vmem:[%s8331_s2 + $0x48] ss:$12 sps:$4 sm:$0xff]  }
  0x42   : > { %1036 = vmatpush1.bf16.msra.mxu0 %v5426_v54  ;;  %5085 = vmatpush3.bf16.msra.mxu1 %v5427_v55  ;;  %v5476_v30 = vld [vmem:[%s8330_s1 + $0xd8] ss:$12 sps:$4 sm:$0xff]   ;;  %v5479_v35 = vld [vmem:[%s8330_s1 + $0xc0] ss:$12 sps:$4 sm:$0xff]   ;;  %v6429_v36 = vld [vmem:[%s8331_s2 + $0xb0] ss:$12 sps:$4 sm:$0xff]  }
  0x43   : > { %1037 = vmatprep.subr.bf16.mxu0 %v5428_v56  ;;  %5086 = vmatprep.subr.bf16.mxu1 %v5430_v57  ;;  %v5477_v31 = vld [vmem:[%s8330_s1 + $0xc4] ss:$12 sps:$4 sm:$0xff]   ;;  %v6414_v33 = vld [vmem:[%s8331_s2 + $0x4c] ss:$12 sps:$4 sm:$0xff]   ;;  %v6441_v38 = vld [vmem:[%s8331_s2 + $0x34] ss:$12 sps:$4 sm:$0xff]  }
  0x44   : > { %v6436_v37 = vld [vmem:[%s8331_s2 + $0x30] ss:$12 sps:$4 sm:$0xff]   ;;  %v5482_v39 = vld [vmem:[%s6277_s24 + $0x40] ss:$8 sps:$4 sm:$0xff]   ;;  %v6450_v41 = vld [vmem:[%s8331_s2 + $0x98] ss:$12 sps:$4 sm:$0xff]  }
  0x45   : > { %v5487_v40 = vld [vmem:[%s6277_s24 + $0x54] ss:$8 sps:$4 sm:$0xff]   ;;  %v6458_v42 = vld [vmem:[%s8331_s2 + $0x18] ss:$12 sps:$4 sm:$0xff]   ;;  %v6469_v44 = vld [vmem:[%s8331_s2 + $0x80] ss:$12 sps:$4 sm:$0xff]  }
  0x46   : > { %1038 = vmatpush1.bf16.msra.mxu0 %v5431_v58  ;;  %5087 = vmatpush3.bf16.msra.mxu1 %v5432_v59  ;;  %v6463_v43 = vld [vmem:[%s8331_s2 + $0x1c] ss:$12 sps:$4 sm:$0xff]   ;;  %v5489_v45 = vld [vmem:[%s6277_s24 + $0x50] ss:$8 sps:$4 sm:$0xff]   ;;  %v5490_v46 = vld [vmem:[%s6277_s24 + $0x64] ss:$8 sps:$4 sm:$0xff]  }
  0x47   : > { %1039 = vmatprep.subr.bf16.mxu0 %v5433_v60  ;;  %5088 = vmatprep.subr.bf16.mxu1 %v5435_v61  ;;  %v6481_v47 = vld [vmem:[%s8331_s2 + $0x68] ss:$12 sps:$4 sm:$0xff]   ;;  %v6486_v48 = vld [vmem:[%s8331_s2 + $0x4] ss:$12 sps:$4 sm:$0xff]   ;;  %v6491_v49 = vld [vmem:[%s8331_s2] ss:$12 sps:$4 sm:$0xff]  }
  0x48   : > { %v6500_v50 = vld [vmem:[%s8331_s2 + $0x50] ss:$12 sps:$4 sm:$0xff]   ;;  %v5492_v51 = vld [vmem:[%s6277_s24 + $0x60] ss:$8 sps:$4 sm:$0xff]   ;;  %v6512_v53 = vld [vmem:[%s8331_s2 + $0x38] ss:$12 sps:$4 sm:$0xff]  }
  0x49   : > { %v5497_v52 = vld [vmem:[%s6277_s24 + $0x74] ss:$8 sps:$4 sm:$0xff]   ;;  %v6521_v54 = vld [vmem:[%s8331_s2 + $0x20] ss:$12 sps:$4 sm:$0xff]   ;;  %v5499_v55 = vld [vmem:[%s6277_s24 + $0x70] ss:$8 sps:$4 sm:$0xff]  }
  0x4a   : > { %1040 = vmatpush1.bf16.msra.mxu0 %v5436_v62  ;;  %5089 = vmatpush3.bf16.msra.mxu1 %v5437_v0  ;;  %v5500_v56 = vld [vmem:[%s6277_s24 + $0x84] ss:$8 sps:$4 sm:$0xff]   ;;  %v6530_v57 = vld [vmem:[%s8331_s2 + $0x8] ss:$12 sps:$4 sm:$0xff]   ;;  %v5509_v60 = vld [vmem:[%s6277_s24 + $0x90] ss:$8 sps:$4 sm:$0xff]  }
  0x4b   : > { %1041 = vmatprep.subr.bf16.mxu0 %v5441_v1  ;;  %1657 = vmatprep.subr.bf16.mxu1 %v6292_v2  ;;  %v5502_v58 = vld [vmem:[%s6277_s24 + $0x80] ss:$8 sps:$4 sm:$0xff]   ;;  %v5507_v59 = vld [vmem:[%s6277_s24 + $0x94] ss:$8 sps:$4 sm:$0xff]   ;;  %v5510_v61 = vld [vmem:[%s6277_s24 + $0xa4] ss:$8 sps:$4 sm:$0xff]  }
  0x4c   : > { %v5512_v62 = vld [vmem:[%s6277_s24 + $0xa0] ss:$8 sps:$4 sm:$0xff]   ;;  %v5517_v63 = vld [vmem:[%s6277_s24 + $0xb4] ss:$8 sps:$4 sm:$0xff]   ;;  %v5519_v0 = vld [vmem:[%s6277_s24 + $0xb0] ss:$8 sps:$4 sm:$0xff]  }
  0x4d   : > { %1251 = vmatmul.mubr.bf16.vlgmr.msra.gmra.mxu1 %v6295_v3  ;;  %v5520_v1 = vld [vmem:[%s6277_s24 + $0xc4] ss:$8 sps:$4 sm:$0xff]   ;;  %vm3683_vm1 = vcmask 130112   ;;  %vm3820_vm2 = vcmask 1041409   ;;  %vm3822_vm3 = vcmask 1042434   ;;  %vm3824_vm4 = vcmask 1043459  }
  0x4e   : > { %1042 = vmatpush2.bf16.msra.mxu0 %v5443_v4  ;;  %1658 = vmatpush1.bf16.msra.mxu1 %v6304_v6  ;;  %v5529_v4 = vld [vmem:[%s6277_s24 + $0xd0] ss:$8 sps:$4 sm:$0xff]   ;;  %vm3826_vm5 = vcmask 1044484   ;;  %vm3828_vm6 = vcmask 1045509   ;;  %vm3830_vm7 = vcmask 1046534   ;;  %vm3832_vm8 = vcmask 1047559  }
  0x4f   : > { %1043 = vmatprep.subr.bf16.mxu0 %v5447_v7  ;;  %1258 = vmatprep.mubr.bf16.mxu1 %v6312_v8  ;;  %v5530_v7 = vld [vmem:[%s6277_s24 + $0xe4] ss:$8 sps:$4 sm:$0xff]   ;;  %vm3843_vm9 = vcmask 130048   ;;  %s4888_s16 = sshll.u32 %s429_s18, 4  ;;  %s5069_s18 = sshll.u32 (%p6104_p5), %s4878_s30, 3 }
  0x50   : > { %1659 = vmatprep.subr.bf16.mxu1 %v6337_v14  ;;  %s8291_s27 = scalar_lea.vmem [#allocation6], %s4888_s16  ;;  %s4784_s17 = scalar_lea.vmem (%p6104_p5), %s8337_s8, %s5069_s18 }
  0x52   : > { %1044 = vmatpush2.bf16.msra.mxu0 %v5449_v9  ;;  %1660 = vmatpush1.bf16.msra.mxu1 %v6332_v13  ;;  %v5537_v9 = vld [vmem:[%s6277_s24 + $0xf4] ss:$8 sps:$4 sm:$0xff]  }
  0x53   : > { %1045 = vmatprep.subr.bf16.mxu0 %v5452_v10  ;;  %1661 = vmatprep.subr.bf16.mxu1 %v6372_v23  ;;  %v5539_v10 = vld [vmem:[%s6277_s24 + $0xf0] ss:$8 sps:$4 sm:$0xff]  }
  0x55   : > { %1259 = vmatmul.mubr.bf16.gmra.mxu1 %v6324_v11 }
  0x56   : > { %1046 = vmatpush2.bf16.msra.mxu0 %v5455_v12  ;;  %1266 = vmatprep.mubr.bf16.mxu1 %v6343_v16 }
  0x57   : > { %1047 = vmatprep.subr.bf16.mxu0 %v5456_v15  ;;  %1662 = vmatpush1.bf16.msra.mxu1 %v6367_v22 }
  0x58   : > { %1663 = vmatprep.subr.bf16.mxu1 %v6395_v28 }
  0x5a   : > { %1048 = vmatpush2.bf16.msra.mxu0 %v5458_v17 }
  0x5b   : > { %1049 = vmatprep.subr.bf16.mxu0 %v5461_v18  ;;  %1664 = vmatpush1.bf16.msra.mxu1 %v6390_v27 }
  0x5c   : > { %1665 = vmatprep.subr.bf16.mxu1 %v6414_v33 }
  0x5d   : > { %1267 = vmatmul.mubr.bf16.gmra.mxu1 %v6356_v19 }
  0x5e   : > { %1050 = vmatpush2.bf16.msra.mxu0 %v5464_v20  ;;  %1274 = vmatprep.mubr.bf16.mxu1 %v6375_v24 }
  0x5f   : > { %1051 = vmatprep.subr.bf16.mxu0 %v5468_v21  ;;  %1666 = vmatpush1.bf16.msra.mxu1 %v6419_v34 }
  0x60   : > { %1667 = vmatprep.subr.bf16.mxu1 %v6441_v38 }
  0x62   : > { %1052 = vmatpush2.bf16.msra.mxu0 %v5470_v25 }
  0x63   : > { %1053 = vmatprep.subr.bf16.mxu0 %v5473_v26  ;;  %1668 = vmatpush1.bf16.msra.mxu1 %v6436_v37 }
  0x64   : > { %1669 = vmatprep.subr.bf16.mxu1 %v6463_v43 }
  0x65   : > { %1275 = vmatmul.mubr.bf16.gmra.mxu1 %v6398_v29 }
  0x66   : > { %1054 = vmatpush2.bf16.msra.mxu0 %v5476_v30  ;;  %1282 = vmatprep.mubr.bf16.mxu1 %v6409_v32 }
  0x67   : > { %1055 = vmatprep.subr.bf16.mxu0 %v5477_v31  ;;  %1670 = vmatpush1.bf16.msra.mxu1 %v6458_v42 }
  0x68   : > { %1671 = vmatprep.subr.bf16.mxu1 %v6486_v48 }
  0x6a   : > { %1056 = vmatpush2.bf16.msra.mxu0 %v5479_v35 }
  0x6b   : > { %5242 = vmatprep.subr.bf16.mxu0 %v6429_v36  ;;  %1672 = vmatpush1.bf16.msra.mxu1 %v6491_v49 }
  0x6c   : > { %5274 = vmatprep.subr.bf16.mxu1 %v6429_v36 }
  0x6d   : > { %1058 = vmatmul.mubr.bf16.vlgmr.msra.gmra.mxu0 %v6295_v3  ;;  %1283 = vmatmul.mubr.bf16.gmra.mxu1 %v5482_v39  ;;  %v5527_v3 = vld [vmem:[%s6277_s24 + $0xd4] ss:$8 sps:$4 sm:$0xff]  }
  0x6e   : > { %5243 = vmatpush3.bf16.msra.mxu0 %v6429_v36  ;;  %1067 = vmatprep.mubr.bf16.mxu0 %v6312_v8  ;;  %v5532_v8 = vld [vmem:[%s6277_s24 + $0xe0] ss:$8 sps:$4 sm:$0xff]  }
  0x6f   : > { %1290 = vmatprep.mubr.bf16.mxu1 %v5487_v40  ;;  %5244 = vmatprep.subr.bf16.mxu0 %v6450_v41 }
  0x72   : > { %5245 = vmatpush3.bf16.msra.mxu0 %v6450_v41 }
  0x73   : > { %5246 = vmatprep.subr.bf16.mxu0 %v6469_v44 }
  0x75   : > { %1068 = vmatmul.mubr.bf16.gmra.mxu0 %v6324_v11  ;;  %1291 = vmatmul.mubr.bf16.gmra.mxu1 %v5489_v45 }
  0x76   : > { %1077 = vmatprep.mubr.bf16.mxu0 %v6343_v16  ;;  %1298 = vmatprep.mubr.bf16.mxu1 %v5490_v46 }
  0x77   : > { %5247 = vmatpush3.bf16.msra.mxu0 %v6469_v44 }
  0x78   : > { %5248 = vmatprep.subr.bf16.mxu0 %v6481_v47 }
  0x7b   : > { %5249 = vmatpush3.bf16.msra.mxu0 %v6481_v47 }
  0x7c   : > { %5250 = vmatprep.subr.bf16.mxu0 %v6500_v50 }
  0x7d   : > { %1078 = vmatmul.mubr.bf16.gmra.mxu0 %v6356_v19  ;;  %1299 = vmatmul.mubr.bf16.gmra.mxu1 %v5492_v51 }
  0x7e   : > { %1087 = vmatprep.mubr.bf16.mxu0 %v6375_v24  ;;  %1306 = vmatprep.mubr.bf16.mxu1 %v5497_v52 }
  0x7f   : > { %5251 = vmatpush3.bf16.msra.mxu0 %v6500_v50 }
  0x80   : > { %5252 = vmatprep.subr.bf16.mxu0 %v6512_v53 }
  0x83   : > { %5253 = vmatpush3.bf16.msra.mxu0 %v6512_v53 }
  0x84   : > { %5254 = vmatprep.subr.bf16.mxu0 %v6521_v54 }
  0x85   : > { %1088 = vmatmul.mubr.bf16.gmra.mxu0 %v6398_v29  ;;  %1307 = vmatmul.mubr.bf16.gmra.mxu1 %v5499_v55 }
  0x86   : > { %1097 = vmatprep.mubr.bf16.mxu0 %v6409_v32  ;;  %1314 = vmatprep.mubr.bf16.mxu1 %v5500_v56 }
  0x87   : > { %5255 = vmatpush3.bf16.msra.mxu0 %v6521_v54 }
  0x88   : > { %5256 = vmatprep.subr.bf16.mxu0 %v6530_v57 }
  0x8b   : > { %5257 = vmatpush3.bf16.msra.mxu0 %v6530_v57 }
  0x8c   : > { %2374 = vmatprep.subr.bf16.mxu0 %v6292_v2  ;;  %v5522_v2 = vld [vmem:[%s6277_s24 + $0xc0] ss:$8 sps:$4 sm:$0xff]  }
  0x8d   : > { %1098 = vmatmul.mubr.bf16.gmra.mxu0 %v5482_v39  ;;  %1315 = vmatmul.mubr.bf16.gmra.mxu1 %v5502_v58 }
  0x8e   : > { %1107 = vmatprep.mubr.bf16.mxu0 %v5487_v40  ;;  %1322 = vmatprep.mubr.bf16.mxu1 %v5507_v59 }
  0x95   : > { %1108 = vmatmul.mubr.bf16.gmra.mxu0 %v5489_v45  ;;  %1323 = vmatmul.mubr.bf16.gmra.mxu1 %v5509_v60 }
  0x96   : > { %1117 = vmatprep.mubr.bf16.mxu0 %v5490_v46  ;;  %1330 = vmatprep.mubr.bf16.mxu1 %v5510_v61 }
  0x9d   : > { %1118 = vmatmul.mubr.bf16.gmra.mxu0 %v5492_v51  ;;  %1331 = vmatmul.mubr.bf16.gmra.mxu1 %v5512_v62 }
  0x9e   : > { %1127 = vmatprep.mubr.bf16.mxu0 %v5497_v52  ;;  %1338 = vmatprep.mubr.bf16.mxu1 %v5517_v63 }
  0xa5   : > { %1128 = vmatmul.mubr.bf16.gmra.mxu0 %v5499_v55  ;;  %1339 = vmatmul.mubr.bf16.gmra.mxu1 %v5519_v0 }
  0xa6   : > { %1137 = vmatprep.mubr.bf16.mxu0 %v5500_v56  ;;  %1346 = vmatprep.mubr.bf16.mxu1 %v5520_v1 }
  0xad   : > { %1138 = vmatmul.mubr.bf16.gmra.mxu0 %v5502_v58  ;;  %1347 = vmatmul.mubr.bf16.gmra.mxu1 %v5522_v2 }
  0xae   : > { %1147 = vmatprep.mubr.bf16.mxu0 %v5507_v59  ;;  %1354 = vmatprep.mubr.bf16.mxu1 %v5527_v3 }
  0xb5   : > { %1148 = vmatmul.mubr.bf16.gmra.mxu0 %v5509_v60  ;;  %1355 = vmatmul.mubr.bf16.gmra.mxu1 %v5529_v4 }
  0xb6   : > { %1157 = vmatprep.mubr.bf16.mxu0 %v5510_v61  ;;  %1362 = vmatprep.mubr.bf16.mxu1 %v5530_v7 }
  0xbd   : > { %1158 = vmatmul.mubr.bf16.gmra.mxu0 %v5512_v62  ;;  %1363 = vmatmul.mubr.bf16.gmra.mxu1 %v5532_v8 }
  0xbe   : > { %1167 = vmatprep.mubr.bf16.mxu0 %v5517_v63  ;;  %1370 = vmatprep.mubr.bf16.mxu1 %v5537_v9 }
  0xc5   : > { %1168 = vmatmul.mubr.bf16.gmra.mxu0 %v5519_v0  ;;  %1371 = vmatmul.mubr.bf16.gmra.mxu1 %v5539_v10 }
  0xc6   : > { %1177 = vmatprep.mubr.bf16.mxu0 %v5520_v1  ;;  %1689 = vmatprep.mubr.bf16.mxu1 %v8338_v5 }
  0xcd   : > { %1178 = vmatmul.mubr.bf16.gmra.mxu0 %v5522_v2  ;;  %1690 = vmatmul.mubr.bf16.vlgmr.msra.gmra.mxu1 %v8338_v5 }
  0xce   : > { %1187 = vmatprep.mubr.bf16.mxu0 %v5527_v3  ;;  %1699 = vmatprep.mubr.bf16.mxu1 %v8338_v5 }
  0xcf   : > { %5275 = vmatpush3.bf16.msra.mxu1 %v6429_v36 }
  0xd0   : > { %5276 = vmatprep.subr.bf16.mxu1 %v6450_v41 }
  0xd3   : > { %5277 = vmatpush3.bf16.msra.mxu1 %v6450_v41 }
  0xd4   : > { %5278 = vmatprep.subr.bf16.mxu1 %v6469_v44 }
  0xd5   : > { %1188 = vmatmul.mubr.bf16.gmra.mxu0 %v5529_v4  ;;  %1700 = vmatmul.mubr.bf16.gmra.mxu1 %v8338_v5 }
  0xd6   : > { %1197 = vmatprep.mubr.bf16.mxu0 %v5530_v7  ;;  %1709 = vmatprep.mubr.bf16.mxu1 %v8338_v5 }
  0xd7   : > { %5279 = vmatpush3.bf16.msra.mxu1 %v6469_v44 }
  0xd8   : > { %5280 = vmatprep.subr.bf16.mxu1 %v6481_v47 }
  0xdb   : > { %5281 = vmatpush3.bf16.msra.mxu1 %v6481_v47 }
  0xdc   : > { %5282 = vmatprep.subr.bf16.mxu1 %v6500_v50 }
  0xdd   : > { %1198 = vmatmul.mubr.bf16.gmra.mxu0 %v5532_v8  ;;  %1710 = vmatmul.mubr.bf16.gmra.mxu1 %v8338_v5 }
  0xde   : > { %1207 = vmatprep.mubr.bf16.mxu0 %v5537_v9  ;;  %1719 = vmatprep.mubr.bf16.mxu1 %v8338_v5 }
  0xdf   : > { %5283 = vmatpush3.bf16.msra.mxu1 %v6500_v50 }
  0xe0   : > { %5284 = vmatprep.subr.bf16.mxu1 %v6512_v53 }
  0xe3   : > { %5285 = vmatpush3.bf16.msra.mxu1 %v6512_v53 }
  0xe4   : > { %5286 = vmatprep.subr.bf16.mxu1 %v6521_v54 }
  0xe5   : > { %1208 = vmatmul.mubr.bf16.gmra.mxu0 %v5539_v10  ;;  %1720 = vmatmul.mubr.bf16.gmra.mxu1 %v8338_v5 }
  0xe6   : > { %5258 = vmatprep.mubr.bf16.mxu0 %v8338_v5  ;;  %1729 = vmatprep.mubr.bf16.mxu1 %v8338_v5 }
  0xe7   : > { %5287 = vmatpush3.bf16.msra.mxu1 %v6521_v54 }
  0xe8   : > { %5288 = vmatprep.subr.bf16.mxu1 %v6530_v57 }
  0xeb   : > { %5289 = vmatpush3.bf16.msra.mxu1 %v6530_v57 }
  0xed   : > { %5259 = vmatmul.mubr.bf16.vlgmr.msra.gmra.mxu0 %v8338_v5  ;;  %1730 = vmatmul.mubr.bf16.gmra.mxu1 %v8338_v5 }
  0xee   : > { %5262 = vmatprep.mubr.bf16.mxu0 %v8338_v5  ;;  %1739 = vmatprep.mubr.bf16.mxu1 %v8338_v5 }
  0xef   : > { %2375 = vmatpush1.bf16.msra.mxu0 %v6304_v6 }
  0xf0   : > { %2376 = vmatprep.subr.bf16.mxu0 %v6337_v14 }
  0xf3   : > { %2377 = vmatpush1.bf16.msra.mxu0 %v6332_v13 }
  0xf4   : > { %2378 = vmatprep.subr.bf16.mxu0 %v6372_v23 }
  0xf5   : > { %5263 = vmatmul.mubr.bf16.gmra.mxu0 %v8338_v5  ;;  %1740 = vmatmul.mubr.bf16.gmra.mxu1 %v8338_v5 }
  0xf6   : > { %5266 = vmatprep.mubr.bf16.mxu0 %v8338_v5  ;;  %1749 = vmatprep.mubr.bf16.mxu1 %v8338_v5 }
  0xf7   : > { %2379 = vmatpush1.bf16.msra.mxu0 %v6367_v22 }
  0xf8   : > { %2380 = vmatprep.subr.bf16.mxu0 %v6395_v28 }
  0xfb   : > { %2381 = vmatpush1.bf16.msra.mxu0 %v6390_v27 }
  0xfc   : > { %2382 = vmatprep.subr.bf16.mxu0 %v6414_v33 }
  0xfd   : > { %5267 = vmatmul.mubr.bf16.gmra.mxu0 %v8338_v5  ;;  %1750 = vmatmul.mubr.bf16.gmra.mxu1 %v8338_v5 }
  0xfe   : > { %5270 = vmatprep.mubr.bf16.mxu0 %v8338_v5  ;;  %1759 = vmatprep.mubr.bf16.mxu1 %v8338_v5 }
  0xff   : > { %2383 = vmatpush1.bf16.msra.mxu0 %v6419_v34 }
 0x100   : > { %2384 = vmatprep.subr.bf16.mxu0 %v6441_v38 }
 0x103   : > { %2385 = vmatpush1.bf16.msra.mxu0 %v6436_v37 }
 0x104   : > { %2386 = vmatprep.subr.bf16.mxu0 %v6463_v43 }
 0x105   : > { %5271 = vmatmul.mubr.bf16.gmra.mxu0 %v8338_v5  ;;  %1760 = vmatmul.mubr.bf16.gmra.mxu1 %v8338_v5 }
 0x106   : > { %2406 = vmatprep.mubr.bf16.mxu0 %v8338_v5 }
 0x107   : > { %2387 = vmatpush1.bf16.msra.mxu0 %v6458_v42 }
 0x108   : > { %2388 = vmatprep.subr.bf16.mxu0 %v6486_v48 }
 0x10b   : > { %2389 = vmatpush1.bf16.msra.mxu0 %v6491_v49 }
 0x10d   : > { %v5090_v6 = vpop.f32.mrf.mxu1 }
 0x10f   : > { %v5091_v11 = vpop.f32.mrf.mxu1 }
 0x110   : > { %v6608_v12 = vadd.f32 %v5091_v11, %v5090_v6 }
 0x111   : > { %v6610_v13 = vpop.f32.mrf.mxu1 }
 0x113   : > { %v6612_v14 = vpop.f32.mrf.mxu1 }
 0x115   : > { %v5096_v15 = vpop.f32.mrf.mxu1 }
 0x117   : > { %v5097_v16 = vpop.f32.mrf.mxu1 }
 0x118   : > { %v6614_v17 = vadd.f32 %v5097_v16, %v5096_v15 }
 0x119   : > { %v6616_v18 = vpop.f32.mrf.mxu1 }
 0x11b   : > { %v6618_v19 = vpop.f32.mrf.mxu1 }
 0x11d   : > { %v5102_v20 = vpop.f32.mrf.mxu1 }
 0x11f   : > { %v5103_v21 = vpop.f32.mrf.mxu1 }
 0x120   : > { %v6620_v22 = vadd.f32 %v5103_v21, %v5102_v20 }
 0x121   : > { %v6622_v23 = vpop.f32.mrf.mxu1 }
 0x123   : > { %v6624_v24 = vpop.f32.mrf.mxu1 }
 0x125   : > { %v5108_v25 = vpop.f32.mrf.mxu1 }
 0x127   : > { %v5109_v26 = vpop.f32.mrf.mxu1 }
 0x128   : > { %v6626_v27 = vadd.f32 %v5109_v26, %v5108_v25 }
 0x129   : > { %v6628_v28 = vpop.f32.mrf.mxu1 }
 0x12b   : > { %v6630_v29 = vpop.f32.mrf.mxu1 }
 0x12d   : > { %v6632_v30 = vpop.f32.mrf.mxu0  ;;  %v5114_v31 = vpop.f32.mrf.mxu1 }
 0x12f   : > { %v6634_v32 = vpop.f32.mrf.mxu0  ;;  %v5115_v33 = vpop.f32.mrf.mxu1 }
 0x130   : > { %v6636_v34 = vadd.f32 %v5115_v33, %v5114_v31 }
 0x131   : > { %v6638_v35 = vpop.f32.mrf.mxu0  ;;  %v6640_v36 = vpop.f32.mrf.mxu1 }
 0x133   : > { %v6642_v37 = vpop.f32.mrf.mxu0  ;;  %v6644_v38 = vpop.f32.mrf.mxu1 }
 0x135   : > { %v6646_v39 = vpop.f32.mrf.mxu0  ;;  %v5120_v40 = vpop.f32.mrf.mxu1 }
 0x137   : > { %v6648_v41 = vpop.f32.mrf.mxu0  ;;  %v5121_v42 = vpop.f32.mrf.mxu1 }
 0x138   : > { %v6650_v43 = vadd.f32 %v5121_v42, %v5120_v40 }
 0x139   : > { %v6652_v44 = vpop.f32.mrf.mxu0  ;;  %v6654_v45 = vpop.f32.mrf.mxu1 }
 0x13a   : > { %8385 = vst [vmem:[#allocation7_spill] sm:$0xff] %v6650_v43  ;;  %8386 = vst [vmem:[#allocation8_spill] sm:$0xff] %v6654_v45 }
 0x13b   : > { %v6656_v46 = vpop.f32.mrf.mxu0  ;;  %v6658_v47 = vpop.f32.mrf.mxu1 }
 0x13c   : > { %8387 = vst [vmem:[#allocation9_spill] sm:$0xff] %v6658_v47 }
 0x13d   : > { %v6660_v48 = vpop.f32.mrf.mxu0  ;;  %v5126_v49 = vpop.f32.mrf.mxu1 }
 0x13f   : > { %v6662_v50 = vpop.f32.mrf.mxu0  ;;  %v5127_v51 = vpop.f32.mrf.mxu1 }
 0x140   : > { %v6664_v52 = vadd.f32 %v5127_v51, %v5126_v49 }
 0x141   : > { %v6666_v53 = vpop.f32.mrf.mxu0  ;;  %v5129_v54 = vpop.f32.mrf.mxu1 }
 0x142   : > { %8388 = vst [vmem:[#allocation10_spill] sm:$0xff] %v6664_v52 }
 0x143   : > { %v6668_v55 = vpop.f32.mrf.mxu0  ;;  %v5130_v56 = vpop.f32.mrf.mxu1 }
 0x144   : > { %v6670_v57 = vadd.f32 %v5130_v56, %v5129_v54 }
 0x145   : > { %v6672_v58 = vpop.f32.mrf.mxu0  ;;  %v5132_v59 = vpop.f32.mrf.mxu1 }
 0x146   : > { %8389 = vst [vmem:[#allocation11_spill] sm:$0xff] %v6670_v57 }
 0x147   : > { %v6674_v60 = vpop.f32.mrf.mxu0  ;;  %v5133_v61 = vpop.f32.mrf.mxu1 }
 0x148   : > { %v6676_v62 = vadd.f32 %v5133_v61, %v5132_v59 }
 0x149   : > { %v6678_v63 = vpop.f32.mrf.mxu0  ;;  %v5135_v0 = vpop.f32.mrf.mxu1 }
 0x14a   : > { %8390 = vst [vmem:[#allocation12_spill] sm:$0xff] %v6676_v62 }
 0x14b   : > { %v6680_v1 = vpop.f32.mrf.mxu0  ;;  %v5136_v2 = vpop.f32.mrf.mxu1 }
 0x14c   : > { %v6682_v3 = vadd.f32 %v5136_v2, %v5135_v0 }
 0x14d   : > { %v6684_v4 = vpop.f32.mrf.mxu0  ;;  %v5138_v7 = vpop.f32.mrf.mxu1 }
 0x14e   : > { %8391 = vst [vmem:[#allocation13_spill] sm:$0xff] %v6682_v3 }
 0x14f   : > { %v6686_v8 = vpop.f32.mrf.mxu0  ;;  %v5139_v9 = vpop.f32.mrf.mxu1 }
 0x150   : > { %v6688_v10 = vadd.f32 %v5139_v9, %v5138_v7 }
 0x151   : > { %v6690_v6 = vpop.f32.mrf.mxu0  ;;  %v5141_v11 = vpop.f32.mrf.mxu1 }
 0x152   : > { %8392 = vst [vmem:[#allocation14_spill] sm:$0xff] %v6688_v10 }
 0x153   : > { %v6692_v15 = vpop.f32.mrf.mxu0  ;;  %v5142_v16 = vpop.f32.mrf.mxu1 }
 0x154   : > { %v6694_v20 = vadd.f32 %v5142_v16, %v5141_v11 }
 0x155   : > { %v6696_v21 = vpop.f32.mrf.mxu0  ;;  %v5144_v25 = vpop.f32.mrf.mxu1 }
 0x156   : > { %8393 = vst [vmem:[#allocation15_spill] sm:$0xff] %v6694_v20 }
 0x157   : > { %v6698_v26 = vpop.f32.mrf.mxu0  ;;  %v5145_v31 = vpop.f32.mrf.mxu1 }
 0x158   : > { %v6700_v33 = vadd.f32 %v5145_v31, %v5144_v25 }
 0x159   : > { %v6702_v40 = vpop.f32.mrf.mxu0  ;;  %v5147_v42 = vpop.f32.mrf.mxu1 }
 0x15a   : > { %8394 = vst [vmem:[#allocation16_spill] sm:$0xff] %v6700_v33 }
 0x15b   : > { %v6704_v49 = vpop.f32.mrf.mxu0  ;;  %v5148_v51 = vpop.f32.mrf.mxu1 }
 0x15c   : > { %v6706_v54 = vadd.f32 %v5148_v51, %v5147_v42 }
 0x15d   : > { %v6708_v56 = vpop.f32.mrf.mxu0  ;;  %v5150_v59 = vpop.f32.mrf.mxu1 }
 0x15e   : > { %8395 = vst [vmem:[#allocation17_spill] sm:$0xff] %v6706_v54 }
 0x15f   : > { %v6710_v61 = vpop.f32.mrf.mxu0  ;;  %v5151_v0 = vpop.f32.mrf.mxu1 }
 0x160   : > { %v6712_v2 = vadd.f32 %v5151_v0, %v5150_v59 }
 0x161   : > { %v6714_v7 = vpop.f32.mrf.mxu0  ;;  %v5153_v9 = vpop.f32.mrf.mxu1 }
 0x162   : > { %8396 = vst [vmem:[#allocation18_spill] sm:$0xff] %v6712_v2 }
 0x163   : > { %v6716_v11 = vpop.f32.mrf.mxu0  ;;  %v5154_v16 = vpop.f32.mrf.mxu1 }
 0x164   : > { %v6718_v25 = vadd.f32 %v5154_v16, %v5153_v9 }
 0x165   : > { %v6720_v31 = vpop.f32.mrf.mxu0  ;;  %v5156_v42 = vpop.f32.mrf.mxu1 }
 0x166   : > { %8397 = vst [vmem:[#allocation19_spill] sm:$0xff] %v6718_v25 }
 0x167   : > { %v6722_v51 = vpop.f32.mrf.mxu0  ;;  %v5157_v5 = vpop.f32.mrf.mxu1 }
 0x168   : > { %v6724_v54 = vadd.f32 %v5157_v5, %v5156_v42 }
 0x169   : > { %v6726_v33 = vpop.f32.mrf.mxu0  ;;  %v5159_v59 = vpop.f32.mrf.mxu1 }
 0x16a   : > { %8398 = vst [vmem:[#allocation20_spill] sm:$0xff] %v6724_v54 }
 0x16b   : > { %v6728_v0 = vpop.f32.mrf.mxu0  ;;  %v5160_v2 = vpop.f32.mrf.mxu1 }
 0x16c   : > { %8399 = vst [vmem:[#allocation21_spill] sm:$0xff] %v6728_v0  ;;  %v6730_v20 = vadd.f32 %v5160_v2, %v5159_v59 }
 0x16d   : > { %v6732_v10 = vpop.f32.mrf.mxu0  ;;  %v5162_v9 = vpop.f32.mrf.mxu1 }
 0x16e   : > { %8400 = vst [vmem:[#allocation22_spill] sm:$0xff] %v6730_v20  ;;  %8401 = vst [vmem:[#allocation23_spill] sm:$0xff] %v6732_v10 }
 0x16f   : > { %v6734_v16 = vpop.f32.mrf.mxu0  ;;  %v5163_v25 = vpop.f32.mrf.mxu1 }
 0x170   : > { %8402 = vst [vmem:[#allocation24_spill] sm:$0xff] %v6734_v16  ;;  %v6736_v3 = vadd.f32 %v5163_v25, %v5162_v9 }
 0x171   : > { %v6738_v62 = vpop.f32.mrf.mxu0  ;;  %v5165_v5 = vpop.f32.mrf.mxu1 }
 0x172   : > { %8403 = vst [vmem:[#allocation25_spill] sm:$0xff] %v6736_v3  ;;  %8404 = vst [vmem:[#allocation26_spill] sm:$0xff] %v6738_v62 }
 0x173   : > { %v6740_v42 = vpop.f32.mrf.mxu0  ;;  %v5166_v54 = vpop.f32.mrf.mxu1 }
 0x174   : > { %8405 = vst [vmem:[#allocation27_spill] sm:$0xff] %v6740_v42  ;;  %v6742_v57 = vadd.f32 %v5166_v54, %v5165_v5  ;;  %v8340_v5 = vlaneseq }
 0x175   : > { %v6744_v52 = vpop.f32.mrf.mxu0  ;;  %v5168_v2 = vpop.f32.mrf.mxu1 }
 0x176   : > { %8406 = vst [vmem:[#allocation28_spill] sm:$0xff] %v6742_v57  ;;  %8407 = vst [vmem:[#allocation29_spill] sm:$0xff] %v6744_v52 }
 0x177   : > { %v6746_v59 = vpop.f32.mrf.mxu0  ;;  %v5169_v20 = vpop.f32.mrf.mxu1 }
 0x178   : > { %8408 = vst [vmem:[#allocation30_spill] sm:$0xff] %v6746_v59  ;;  %v6748_v10 = vadd.f32 %v5169_v20, %v5168_v2  ;;  %v6765_v2 = vshrl.u32 %v8340_v5, 7  ;;  %v6784_v5 = vld [vmem:[%s8332_s3] sm:$0x7] }
 0x179   : > { %v6750_v16 = vpop.f32.mrf.mxu0  ;;  %v5171_v25 = vpop.f32.mrf.mxu1 }
 0x17a   : > { %8409 = vst [vmem:[#allocation31_spill] sm:$0xff] %v6748_v10  ;;  %8410 = vst [vmem:[#allocation32_spill] sm:$0xff] %v6750_v16 }
 0x17b   : > { %v6752_v9 = vpop.f32.mrf.mxu0  ;;  %v5172_v3 = vpop.f32.mrf.mxu1  ;;  %8417 = vst [vmem:[#allocation39_spill] sm:$0xff] %v6765_v2 }
 0x17c   : > { %8411 = vst [vmem:[#allocation33_spill] sm:$0xff] %v6752_v9  ;;  %v6754_v62 = vadd.f32 %v5172_v3, %v5171_v25  ;;  %v6770_v3 = vsub.s32 0, %v6765_v2 }
 0x17d   : > { %v6756_v42 = vpop.f32.mrf.mxu0  ;;  %v5174_v54 = vpop.f32.mrf.mxu1 }
 0x17e   : > { %8412 = vst [vmem:[#allocation34_spill] sm:$0xff] %v6754_v62  ;;  %8413 = vst [vmem:[#allocation35_spill] sm:$0xff] %v6756_v42 }
 0x17f   : > { %v6758_v57 = vpop.f32.mrf.mxu0  ;;  %v5175_v52 = vpop.f32.mrf.mxu1  ;;  %8419 = vst [vmem:[#allocation41_spill] sm:$0xff] %v6770_v3 }
 0x180   : > { %8414 = vst [vmem:[#allocation36_spill] sm:$0xff] %v6758_v57  ;;  %v6760_v43 = vadd.f32 %v5175_v52, %v5174_v54  ;;  %v6777_v52 = vsub.s32 1, %v6765_v2 }
 0x181   : > { %v6762_v59 = vpop.f32.mrf.mxu0  ;;  %v5177_v20 = vpop.f32.mrf.mxu1 }
 0x182   : > { %8415 = vst [vmem:[#allocation37_spill] sm:$0xff] %v6760_v43  ;;  %8416 = vst [vmem:[#allocation38_spill] sm:$0xff] %v6762_v59 }
 0x183   : > { %v6767_v10 = vpop.f32.mrf.mxu0  ;;  %v5178_v9 = vpop.f32.mrf.mxu1  ;;  %8422 = vst [vmem:[#allocation44_spill] sm:$0xff] %v6777_v52 }
 0x184   : > { %8418 = vst [vmem:[#allocation40_spill] sm:$0xff] %v6767_v10  ;;  %v6772_v25 = vadd.f32 %v5178_v9, %v5177_v20  ;;  %v6788_v10 = vrot.slane %v6784_v5, %v6770_v3 }
 0x185   : > { %v6774_v62 = vpop.f32.mrf.mxu0  ;;  %v5180_v57 = vpop.f32.mrf.mxu1 }
 0x186   : > { %8420 = vst [vmem:[#allocation42_spill] sm:$0xff] %v6772_v25  ;;  %8421 = vst [vmem:[#allocation43_spill] sm:$0xff] %v6774_v62  ;;  %v6796_v62 = vrot.slane %v6784_v5, %v6777_v52  ;;  %v1060_v42 = vadd.f32 %v6632_v30, %v6788_v10  ;;  %v1064_v52 = vadd.f32 %v6638_v35, %v6788_v10 }
 0x187   : > { %v6779_v54 = vpop.f32.mrf.mxu0  ;;  %v5181_v43 = vpop.f32.mrf.mxu1 }
 0x188   : > { %8423 = vst [vmem:[#allocation45_spill] sm:$0xff] %v6779_v54  ;;  %v6790_v9 = vadd.f32 %v5181_v43, %v5180_v57  ;;  %v1062_v43 = vadd.f32 %v6634_v32, %v6796_v62 }
 0x189   : > { %v6792_v20 = vpop.f32.mrf.mxu0  ;;  %v5183_v25 = vpop.f32.mrf.mxu1 }
 0x18a   : > { %8424 = vst [vmem:[#allocation46_spill] sm:$0xff] %v6790_v9  ;;  %8425 = vst [vmem:[#allocation47_spill] sm:$0xff] %v6792_v20 }
 0x18b   : > { %v6798_v54 = vpop.f32.mrf.mxu0  ;;  %v5184_v59 = vpop.f32.mrf.mxu1 }
 0x18c   : > { %8426 = vst [vmem:[#allocation48_spill] sm:$0xff] %v6798_v54  ;;  %v6802_v16 = vadd.f32 %v5184_v59, %v5183_v25  ;;  %v1066_v59 = vadd.f32 %v6642_v37, %v6796_v62 }
 0x18d   : > { %v6804_v47 = vpop.f32.mrf.mxu0  ;;  %v1691_v3 = vpop.f32.mrf.mxu1 }
 0x18e   : > { %8427 = vst [vmem:[#allocation49_spill] sm:$0xff] %v6802_v16  ;;  %8428 = vst [vmem:[#allocation50_spill] sm:$0xff] %v6804_v47  ;;  %v1867_v57 = vadd.f32 %v1691_v3, %v1060_v42  ;;  %v1070_v42 = vadd.f32 %v6646_v39, %v6788_v10 }
 0x18f   : > { %v6808_v9 = vpop.f32.mrf.mxu0  ;;  %v1693_v20 = vpop.f32.mrf.mxu1 }
 0x190   : > { %v4994_v54 = vmul.f32 -1.442695, %v1867_v57  ;;  %v1979_v45 = vadd.f32 %v1693_v20, %v1062_v43  ;;  %v1072_v43 = vadd.f32 %v6648_v41, %v6796_v62 }
 0x191   : > { %v6812_v0 = vpop.f32.mrf.mxu0  ;;  %v1695_v30 = vpop.f32.mrf.mxu1 }
 0x192   : > { %5550 = vpow2.f32 %v4994_v54  ;;  %v5010_v25 = vmul.f32 -1.442695, %v1979_v45  ;;  %v1868_v16 = vadd.f32 %v1695_v30, %v1064_v52  ;;  %v1074_v30 = vadd.f32 %v6652_v44, %v6788_v10 }
 0x193   : > { %v6816_v47 = vpop.f32.mrf.mxu0  ;;  %v1697_v32 = vpop.f32.mrf.mxu1 }
 0x194   : > { %5552 = vpow2.f32 %v5010_v25  ;;  %v4995_v3 = vmul.f32 -1.442695, %v1868_v16  ;;  %v1980_v35 = vadd.f32 %v1697_v32, %v1066_v59  ;;  %v1076_v32 = vadd.f32 %v6656_v46, %v6796_v62 }
 0x195   : > { %v6820_v57 = vpop.f32.mrf.mxu0  ;;  %v1701_v20 = vpop.f32.mrf.mxu1 }
 0x196   : > { %5554 = vpow2.f32 %v4995_v3  ;;  %v5011_v37 = vmul.f32 -1.442695, %v1980_v35  ;;  %v1869_v54 = vadd.f32 %v1701_v20, %v1070_v42  ;;  %v1080_v20 = vadd.f32 %v6660_v48, %v6788_v10 }
 0x197   : > { %v6824_v45 = vpop.f32.mrf.mxu0  ;;  %v1703_v52 = vpop.f32.mrf.mxu1 }
 0x198   : > { %8429 = vst [vmem:[#allocation51_spill] sm:$0xff] %v6824_v45  ;;  %5556 = vpow2.f32 %v5011_v37  ;;  %v4996_v39 = vmul.f32 -1.442695, %v1869_v54  ;;  %v1981_v25 = vadd.f32 %v1703_v52, %v1072_v43  ;;  %v1082_v54 = vadd.f32 %v6662_v50, %v6796_v62 }
 0x199   : > { %v6828_v16 = vpop.f32.mrf.mxu0  ;;  %v1705_v59 = vpop.f32.mrf.mxu1 }
 0x19a   : > { %5558 = vpow2.f32 %v4996_v39  ;;  %v1870_v41 = vadd.f32 %v1705_v59, %v1074_v30  ;;  %v5012_v42 = vmul.f32 -1.442695, %v1981_v25  ;;  %v1084_v39 = vadd.f32 %v6666_v53, %v6788_v10 }
 0x19b   : > { %v6832_v3 = vpop.f32.mrf.mxu0  ;;  %v1707_v35 = vpop.f32.mrf.mxu1  ;;  %v1086_v53 = vadd.f32 %v6668_v55, %v6796_v62 }
 0x19c   : > { %8430 = vst [vmem:[#allocation52_spill] sm:$0xff] %v6832_v3  ;;  %v4997_v45 = vmul.f32 -1.442695, %v1870_v41  ;;  %v1982_v44 = vadd.f32 %v1707_v35, %v1076_v32 }
 0x19d   : > { %v6836_v37 = vpop.f32.mrf.mxu0  ;;  %v1711_v43 = vpop.f32.mrf.mxu1 }
 0x19e   : > { %8431 = vst [vmem:[#allocation53_spill] sm:$0xff] %v6836_v37  ;;  %5560 = vpow2.f32 %v4997_v45  ;;  %v1871_v52 = vadd.f32 %v1711_v43, %v1080_v20  ;;  %v5013_v48 = vmul.f32 -1.442695, %v1982_v44 }
 0x19f   : > { %v6840_v46 = vpop.f32.mrf.mxu0  ;;  %v5551_v30 = vpop.eup %5550  ;;  %5562 = vpow2.f32 %v5012_v42  ;;  %v1090_v42 = vadd.f32 %v6672_v58, %v6788_v10 }
 0x1a0   : > { %8432 = vst [vmem:[#allocation54_spill] sm:$0xff] %v6840_v46  ;;  %v1713_v25 = vpop.f32.mrf.mxu1  ;;  %v1931_v59 = vadd.f32 1.0, %v5551_v30  ;;  %v4998_v41 = vmul.f32 -1.442695, %v1871_v52  ;;  %v6849_v46 = vsub.s32 2, %v6765_v2 }
 0x1a1   : > { %v1983_v32 = vadd.f32 %v1713_v25, %v1082_v54  ;;  %v6844_v35 = vpop.f32.mrf.mxu0  ;;  %v5553_v37 = vpop.eup %5552 }
 0x1a2   : > { %v1715_v3 = vpop.f32.mrf.mxu1  ;;  %5564 = vrcp.f32 %v1931_v59  ;;  %v2043_v50 = vadd.f32 1.0, %v5553_v37  ;;  %v1092_v59 = vadd.f32 %v6674_v60, %v6796_v62 }
 0x1a3   : > { %v1872_v45 = vadd.f32 %v1715_v3, %v1084_v39  ;;  %v6846_v20 = vpop.f32.mrf.mxu0  ;;  %v5555_v43 = vpop.eup %5554  ;;  %5566 = vpow2.f32 %v4998_v41  ;;  %v5014_v52 = vmul.f32 -1.442695, %v1983_v32  ;;  %v1094_v41 = vadd.f32 %v6678_v63, %v6788_v10 }
 0x1a4   : > { %8433 = vst [vmem:[#allocation55_spill] sm:$0xff] %v6846_v20  ;;  %v1717_v44 = vpop.f32.mrf.mxu1  ;;  %v1932_v54 = vadd.f32 1.0, %v5555_v43  ;;  %5568 = vpow2.f32 %v5013_v48  ;;  %v6863_v48 = vrot.slane %v6784_v5, %v6849_v46  ;;  %v1096_v63 = vadd.f32 %v6680_v1, %v6796_v62 }
 0x1a5   : > { %v4999_v30 = vmul.f32 -1.442695, %v1872_v45  ;;  %v6855_v37 = vpop.f32.mrf.mxu0  ;;  %v5557_v3 = vpop.eup %5556  ;;  %5570 = vrcp.f32 %v2043_v50  ;;  %v1984_v39 = vadd.f32 %v1717_v44, %v1086_v53  ;;  %v5095_v53 = vadd.f32 %v6612_v14, %v6610_v13 }
 0x1a6   : > { %v1721_v25 = vpop.f32.mrf.mxu1  ;;  %5572 = vrcp.f32 %v1932_v54  ;;  %v2044_v55 = vadd.f32 1.0, %v5557_v3  ;;  %v1100_v13 = vadd.f32 %v6684_v4, %v6788_v10  ;;  %v1102_v4 = vadd.f32 %v6686_v8, %v6796_v62 }
 0x1a7   : > { %v1873_v2 = vadd.f32 %v1721_v25, %v1090_v42  ;;  %v6859_v20 = vpop.f32.mrf.mxu0  ;;  %v5559_v58 = vpop.eup %5558  ;;  %5574 = vpow2.f32 %v4999_v30  ;;  %v5101_v42 = vadd.f32 %v6618_v19, %v6616_v18  ;;  %v5015_v5 = vmul.f32 -1.442695, %v1984_v39 }
 0x1a8   : > { %v1723_v32 = vpop.f32.mrf.mxu1  ;;  %v1933_v50 = vadd.f32 1.0, %v5559_v58  ;;  %5576 = vpow2.f32 %v5014_v52  ;;  %v1253_v52 = vadd.f32 %v6608_v12, %v6863_v48  ;;  %v1256_v1 = vadd.f32 %v5095_v53, %v6863_v48 }
 0x1a9   : > { %v5000_v45 = vmul.f32 -1.442695, %v1873_v2  ;;  %v1985_v43 = vadd.f32 %v1723_v32, %v1092_v59  ;;  %v6867_v60 = vpop.f32.mrf.mxu0  ;;  %5578 = vrcp.f32 %v2044_v55  ;;  %v6884_v55 = vadd.f32 %v6614_v17, %v6863_v48 }
 0x1aa   : > { %v1725_v44 = vpop.f32.mrf.mxu1  ;;  %5580 = vrcp.f32 %v1933_v50  ;;  %v6887_v58 = vadd.f32 %v5101_v42, %v6863_v48  ;;  %v6894_v50 = vld [vmem:[%s8333_s4] ss:$0 sm:$0xff]  ;;  %v5107_v17 = vadd.f32 %v6624_v24, %v6622_v23  ;;  %v1104_v53 = vadd.f32 %v6690_v6, %v6788_v10 }
 0x1ab   : > { %v1874_v54 = vadd.f32 %v1725_v44, %v1094_v41  ;;  %v6875_v30 = vpop.f32.mrf.mxu0  ;;  %v5561_v2 = vpop.eup %5560  ;;  %5582 = vpow2.f32 %v5000_v45  ;;  %v5016_v3 = vmul.f32 -1.442695, %v1985_v43 }
 0x1ac   : > { %v1727_v14 = vpop.f32.mrf.mxu1  ;;  %v5563_v18 = vpop.eup %5562  ;;  %v1934_v19 = vadd.f32 1.0, %v5561_v2  ;;  %5584 = vpow2.f32 %v5015_v5 }
 0x1ad   : > { %v5001_v39 = vmul.f32 -1.442695, %v1874_v54  ;;  %v1986_v25 = vadd.f32 %v1727_v14, %v1096_v63  ;;  %v5260_v59 = vpop.f32.mrf.mxu0  ;;  %v2045_v44 = vadd.f32 1.0, %v5563_v18  ;;  %v6903_v14 = vadd.f32 %v6620_v22, %v6863_v48 }
 0x1ae   : > { %v1731_v12 = vpop.f32.mrf.mxu1  ;;  %5586 = vrcp.f32 %v1934_v19 }
 0x1af   : > { %v5017_v41 = vmul.f32 -1.442695, %v1986_v25  ;;  %v1875_v32 = vadd.f32 %v1731_v12, %v1100_v13  ;;  %v1804_v45 = vpop.f32.mrf.mxu0  ;;  %v5565_v43 = vpop.eup %5564  ;;  %5588 = vpow2.f32 %v5001_v39  ;;  %v1106_v39 = vadd.f32 %v6692_v15, %v6796_v62 }
 0x1b0   : > { %v1733_v42 = vpop.f32.mrf.mxu1  ;;  %v2091_v8 = vadd.f32 %v6894_v50, %v1804_v45  ;;  %v5567_v5 = vpop.eup %5566  ;;  %5590 = vpow2.f32 %v5016_v3 }
 0x1b1   : > { %v5002_v63 = vmul.f32 -1.442695, %v1875_v32  ;;  %v1987_v54 = vadd.f32 %v1733_v42, %v1102_v4  ;;  %v5261_v2 = vpop.f32.mrf.mxu0  ;;  %v5569_v13 = vpop.eup %5568  ;;  %v1935_v19 = vadd.f32 1.0, %v5567_v5  ;;  %5592 = vpow2.f32 %v5017_v41 }
 0x1b2   : > { %v2107_v23 = vmul.f32 %v5565_v43, %v2091_v8  ;;  %v1735_v24 = vpop.f32.mrf.mxu1  ;;  %v6905_v6 = vpop.eup %5570  ;;  %v5113_v4 = vadd.f32 %v6630_v29, %v6628_v28  ;;  %v6913_v43 = vadd.f32 %v5107_v17, %v6863_v48  ;;  %v2046_v5 = vadd.f32 1.0, %v5569_v13 }
 0x1b3   : > { %5594 = vpow2.f32 %v5002_v63  ;;  %v5018_v18 = vmul.f32 -1.442695, %v1987_v54  ;;  %v1876_v3 = vadd.f32 %v1735_v24, %v1104_v53  ;;  %v1807_v25 = vpop.f32.mrf.mxu0  ;;  %v5573_v12 = vpop.eup %5572  ;;  %v2093_v17 = vadd.f32 %v5260_v59, %v6894_v50 }
 0x1b4   : > { %5596 = vrcp.f32 %v1935_v19  ;;  %v2123_v22 = vadd.f32 %v2107_v23, %v1253_v52  ;;  %v1737_v32 = vpop.f32.mrf.mxu1  ;;  %v2092_v41 = vadd.f32 %v6894_v50, %v1807_v25  ;;  %v5575_v45 = vpop.eup %5574  ;;  %v6921_v52 = vadd.f32 %v6626_v27, %v6863_v48 }
 0x1b5   : > { %5598 = vrcp.f32 %v2045_v44  ;;  %v5003_v42 = vmul.f32 -1.442695, %v1876_v3  ;;  %v1988_v15 = vadd.f32 %v1737_v32, %v1106_v39  ;;  %v6915_v8 = vpop.f32.mrf.mxu0  ;;  %v5577_v53 = vpop.eup %5576  ;;  %v1936_v63 = vadd.f32 1.0, %v5575_v45 }
 0x1b6   : > { %5600 = vpow2.f32 %v5018_v18  ;;  %v2108_v54 = vmul.f32 %v5573_v12, %v2092_v41  ;;  %v1741_v28 = vpop.f32.mrf.mxu1  ;;  %v6917_v29 = vpop.eup %5578  ;;  %v6925_v23 = vadd.f32 %v5113_v4, %v6863_v48  ;;  %v6929_v13 = vadd.f32 %v6636_v34, %v6863_v48 }
 0x1b7   : > { %5602 = vtanh.f32 %v2123_v22  ;;  %v5019_v44 = vmul.f32 -1.442695, %v1988_v15  ;;  %v5581_v19 = vpop.eup %5580  ;;  %v1110_v27 = vadd.f32 %v6696_v21, %v6788_v10  ;;  %v1112_v59 = vadd.f32 %v6698_v26, %v6796_v62  ;;  %v1820_v25 = vpop.f32.mrf.mxu0 }
 0x1b8   : > { %5604 = vrcp.f32 %v1936_v63  ;;  %v2124_v24 = vadd.f32 %v2108_v54, %v1256_v1  ;;  %v1743_v39 = vpop.f32.mrf.mxu1  ;;  %v5583_v18 = vpop.eup %5582  ;;  %v2109_v3 = vmul.f32 %v5581_v19, %v2093_v17  ;;  %v1114_v12 = vadd.f32 %v6702_v40, %v6788_v10 }
 0x1b9   : > { %5606 = vpow2.f32 %v5003_v42  ;;  %v2047_v4 = vadd.f32 1.0, %v5577_v53  ;;  %v1937_v34 = vadd.f32 1.0, %v5583_v18  ;;  %v5585_v32 = vpop.eup %5584  ;;  %v6939_v1 = vadd.f32 %v6704_v49, %v6796_v62 }
 0x1ba   : > { %5608 = vrcp.f32 %v2046_v5  ;;  %v1745_v22 = vpop.f32.mrf.mxu1  ;;  %v2125_v21 = vadd.f32 %v2109_v3, %v6884_v55  ;;  %v2094_v41 = vadd.f32 %v5261_v2, %v6894_v50  ;;  %v1120_v45 = vadd.f32 %v6708_v56, %v6788_v10  ;;  %v5265_v5 = vpop.f32.mrf.mxu0 }
 0x1bb   : > { %5610 = vpow2.f32 %v5019_v44  ;;  %v5587_v26 = vpop.eup %5586  ;;  %v6947_v40 = vadd.f32 %v6710_v61, %v6796_v62  ;;  %v1877_v42 = vadd.f32 %v1741_v28, %v1110_v27  ;;  %v6951_v49 = vadd.f32 %v6714_v7, %v6788_v10 }
 0x1bc   : > { %5612 = vrcp.f32 %v1937_v34  ;;  %v1747_v15 = vpop.f32.mrf.mxu1  ;;  %v5589_v53 = vpop.eup %5588  ;;  %v6955_v55 = vadd.f32 %v6716_v11, %v6796_v62  ;;  %v2110_v2 = vmul.f32 %v5587_v26, %v2094_v41  ;;  %v2048_v63 = vadd.f32 1.0, %v5585_v32 }
 0x1bd   : > { %5614 = vtanh.f32 %v2125_v21  ;;  %v5591_v56 = vpop.eup %5590  ;;  %v1938_v61 = vadd.f32 1.0, %v5589_v53  ;;  %v2095_v54 = vadd.f32 %v6894_v50, %v1820_v25  ;;  %v6960_v44 = vadd.f32 %v6720_v31, %v6788_v10 }
 0x1be   : > { %5616 = vrcp.f32 %v2047_v4  ;;  %v1751_v28 = vpop.f32.mrf.mxu1  ;;  %v5593_v17 = vpop.eup %5592  ;;  %v2126_v7 = vadd.f32 %v2110_v2, %v6887_v58  ;;  %v1878_v11 = vadd.f32 %v1745_v22, %v1114_v12  ;;  %v6965_v18 = vadd.f32 %v6722_v51, %v6796_v62 }
 0x1bf   : > { %5618 = vtanh.f32 %v2124_v24  ;;  %v6969_v27 = vadd.f32 %v6726_v33, %v6788_v10  ;;  %v5004_v3 = vmul.f32 -1.442695, %v1877_v42  ;;  %v2049_v4 = vadd.f32 1.0, %v5591_v56  ;;  %v1823_v58 = vpop.f32.mrf.mxu0 }
 0x1c0   : > { %v5595_v19 = vpop.eup %5594  ;;  %5620 = vrcp.f32 %v1938_v61  ;;  %v6971_v25 = vpop.f32.mrf.mxu1  ;;  %v2155_v24 = vsub.f32 1.0, %v6905_v6  ;;  %v2050_v22 = vadd.f32 1.0, %v5593_v17  ;;  %v2187_v21 = vmul.f32 0.0, %v6905_v6 }
 0x1c1   : > { %v5597_v31 = vpop.eup %5596  ;;  %v1939_v34 = vadd.f32 1.0, %v5595_v19  ;;  %5622 = vtanh.f32 %v2126_v7  ;;  %v1989_v41 = vadd.f32 %v1743_v39, %v1112_v59  ;;  %v5005_v26 = vmul.f32 -1.442695, %v1878_v11  ;;  %v6980_v6 = vpop.f32.mrf.mxu0 }
 0x1c2   : > { %v5599_v12 = vpop.eup %5598  ;;  %5624 = vrcp.f32 %v2048_v63  ;;  %v2111_v51 = vmul.f32 %v5597_v31, %v2095_v54  ;;  %v1755_v32 = vpop.f32.mrf.mxu1  ;;  %v1879_v42 = vadd.f32 %v1751_v28, %v1120_v45  ;;  %v2097_v2 = vadd.f32 %v6915_v8, %v6894_v50 }
 0x1c3   : > { %v5601_v33 = vpop.eup %5600  ;;  %5626 = vrcp.f32 %v1939_v34  ;;  %v2096_v61 = vadd.f32 %v6894_v50, %v1823_v58  ;;  %v2098_v54 = vadd.f32 %v5265_v5, %v6894_v50  ;;  %v2156_v39 = vsub.f32 1.0, %v6917_v29 }
 0x1c4   : > { %v5603_v53 = vpop.eup %5602  ;;  %5628 = vpow2.f32 %v5004_v3  ;;  %v2127_v56 = vadd.f32 %v2111_v51, %v6903_v14  ;;  %v1757_v63 = vpop.f32.mrf.mxu1  ;;  %v2051_v45 = vadd.f32 1.0, %v5601_v33  ;;  %v1990_v28 = vadd.f32 %v1747_v15, %v6939_v1 }
 0x1c5   : > { %v5605_v17 = vpop.eup %5604  ;;  %5630 = vrcp.f32 %v2049_v4  ;;  %v2171_v7 = vmul.f32 %v5603_v53, %v2155_v24  ;;  %v5020_v3 = vmul.f32 -1.442695, %v1989_v41  ;;  %v5006_v31 = vmul.f32 -1.442695, %v1879_v42  ;;  %v1836_v51 = vpop.f32.mrf.mxu0 }
 0x1c6   : > { %v5607_v59 = vpop.eup %5606  ;;  %5632 = vrcp.f32 %v2050_v22  ;;  %v2112_v8 = vmul.f32 %v5605_v17, %v2096_v61  ;;  %v1761_v11 = vpop.f32.mrf.mxu1  ;;  %v1880_v34 = vadd.f32 %v1755_v32, %v6951_v49  ;;  %v2188_v1 = vmul.f32 0.0, %v6917_v29 }
 0x1c7   : > { %v5609_v14 = vpop.eup %5608  ;;  %v1940_v19 = vadd.f32 1.0, %v5607_v59  ;;  %5634 = vpow2.f32 %v5005_v26  ;;  %v6986_v58 = vadd.f32 %v2187_v21, %v2171_v7  ;;  %v2157_v15 = vsub.f32 1.0, %v5599_v12 }
 0x1c8   : > { %v5611_v4 = vpop.eup %5610  ;;  %5636 = vtanh.f32 %v2127_v56  ;;  %v2128_v5 = vadd.f32 %v2112_v8, %v6913_v43  ;;  %v1763_v22 = vpop.f32.mrf.mxu1  ;;  %v2189_v33 = vmul.f32 0.0, %v5599_v12  ;;  %v5021_v26 = vmul.f32 -1.442695, %v1990_v28 }
 0x1c9   : > { %v5613_v24 = vpop.eup %5612  ;;  %5638 = vrcp.f32 %v1940_v19  ;;  %2252 = vrot.lane.b32.xlu0 %v6986_v58, %s6028_s20  ;;  %2220 = vst.msk [vmem:[#allocation3] sm:$0xff] %vm2219_vm0, %v6986_v58  ;;  %v2099_v43 = vadd.f32 %v6894_v50, %v1836_v51  ;;  %v1881_v29 = vadd.f32 %v1761_v11, %v6960_v44  ;;  %v2158_v12 = vsub.f32 1.0, %v5609_v14  ;;  %v7001_v11 = vpop.f32.mrf.mxu0 }
 0x1ca   : > { %v5615_v53 = vpop.eup %5614  ;;  %5640 = vrcp.f32 %v2051_v45  ;;  %v2113_v41 = vmul.f32 %v5613_v24, %v2097_v2  ;;  %v1991_v2 = vadd.f32 %v6971_v25, %v6947_v40  ;;  %v5007_v56 = vmul.f32 -1.442695, %v1880_v34  ;;  %v1765_v7 = vpop.f32.mrf.mxu1 }
 0x1cb   : > { %v6994_v49 = vpop.eup %5616  ;;  %5642 = vpow2.f32 %v5020_v3  ;;  %v2173_v32 = vmul.f32 %v5615_v53, %v2157_v15  ;;  %v2052_v17 = vadd.f32 1.0, %v5611_v4  ;;  %v2190_v45 = vmul.f32 0.0, %v5609_v14  ;;  %v1839_v51 = vpop.f32.mrf.mxu0 }
 0x1cc   : > { %v5619_v21 = vpop.eup %5618  ;;  %v2129_v42 = vadd.f32 %v2113_v41, %v6921_v52  ;;  %5644 = vpow2.f32 %v5006_v31  ;;  %v1992_v44 = vadd.f32 %v1757_v63, %v6955_v55  ;;  %v5008_v40 = vmul.f32 -1.442695, %v1881_v29 }
 0x1cd   : > { %v5621_v61 = vpop.eup %5620  ;;  %5646 = vtanh.f32 %v2128_v5  ;;  %v2172_v59 = vmul.f32 %v5619_v21, %v2156_v39  ;;  %v7003_v19 = vadd.f32 %v2189_v33, %v2173_v32  ;;  %v5022_v14 = vmul.f32 -1.442695, %v1991_v2  ;;  %v1767_v2 = vpop.f32.mrf.mxu1 }
 0x1ce   : > { %v5623_v28 = vpop.eup %5622  ;;  %5648 = vtanh.f32 %v2129_v42  ;;  %v2114_v8 = vmul.f32 %v5621_v61, %v2098_v54  ;;  %v1882_v54 = vadd.f32 %v1765_v7, %v6969_v27  ;;  %v5119_v5 = vadd.f32 %v6644_v38, %v6640_v36 }
 0x1cf   : > { %v7005_v52 = vpop.eup %5624  ;;  %5650 = vpow2.f32 %v5021_v26  ;;  %v7007_v25 = vadd.f32 %v2188_v1, %v2172_v59  ;;  %v2174_v3 = vmul.f32 %v5623_v28, %v2158_v12  ;;  %2222 = vst.msk [vmem:[#allocation3 + $0x10] sm:$0xff] %vm2219_vm0, %v7003_v19  ;;  %2256 = vrot.lane.b32.xlu0 %v7003_v19, %s6028_s20  ;;  %v5023_v24 = vmul.f32 -1.442695, %v1992_v44 }
 0x1d0   : > { %v5627_v31 = vpop.eup %5626  ;;  %v2130_v39 = vadd.f32 %v2114_v8, %v6925_v23  ;;  %5652 = vpow2.f32 %v5007_v56  ;;  %v1993_v15 = vadd.f32 %v1763_v22, %v6965_v18  ;;  %v5009_v38 = vmul.f32 -1.442695, %v1882_v54 }
 0x1d1   : > { %v5629_v55 = vpop.eup %5628  ;;  %5654 = vrcp.f32 %v2052_v17  ;;  %v2115_v63 = vmul.f32 %v5627_v31, %v2099_v43  ;;  %2254 = vrot.lane.b32.xlu1 %v7007_v25, %s6028_s20  ;;  %2221 = vst.msk [vmem:[#allocation3 + $0x8] sm:$0xff] %vm2219_vm0, %v7007_v25  ;;  %v2366_v23 = vpack.c.bf16 %v7007_v25, %v6986_v58  ;;  %v7021_v4 = vadd.f32 %v2190_v45, %v2174_v3  ;;  %v8435_v17 = vld [vmem:[#allocation21_spill] sm:$0xff] }
 0x1d2   : > { %v5631_v27 = vpop.eup %5630  ;;  %v1941_v34 = vadd.f32 1.0, %v5629_v55  ;;  %5656 = vtanh.f32 %v2130_v39  ;;  %v8434_v41 = vmov 0   ;;  %v2159_v26 = vsub.f32 1.0, %v6994_v49 }
 0x1d3   : > { %v7025_v1 = vpop.eup %5632  ;;  %5658 = vpow2.f32 %v5008_v40  ;;  %v2131_v33 = vadd.f32 %v2115_v63, %v6929_v13  ;;  %2407 = vmatmul.mubr.bf16.vlgmr.msra.gmra.mxu0 %v2366_v23  ;;  %5290 = vmatprep.mubr.bf16.mxu1 %v2366_v23  ;;  %2223 = vst.msk [vmem:[#allocation3 + $0x18] sm:$0xff] %vm2219_vm0, %v7021_v4  ;;  %v2367_v53 = vpack.c.bf16 %v7021_v4, %v7003_v19  ;;  %v2191_v32 = vmul.f32 0.0, %v6994_v49 }
 0x1d4   : > { %v5635_v36 = vpop.eup %5634  ;;  %5660 = vrcp.f32 %v1941_v34  ;;  %2416 = vmatprep.mubr.bf16.mxu0 %v8434_v41  ;;  %v2100_v13 = vadd.f32 %v6894_v50, %v1839_v51  ;;  %v1288_v21 = vadd.f32 %v5119_v5, %v6863_v48  ;;  %v5024_v42 = vmul.f32 -1.442695, %v1993_v15  ;;  %v7053_v34 = vpop.f32.mrf.mxu0 }
 0x1d5   : > { %v5637_v43 = vpop.eup %5636  ;;  %v1942_v29 = vadd.f32 1.0, %v5635_v36  ;;  %5662 = vpow2.f32 %v5022_v14  ;;  %2258 = vrot.lane.b32.xlu1 %v7021_v4, %s6028_s20  ;;  %5291 = vmatmul.mubr.bf16.vlgmr.msra.gmra.mxu1 %v2367_v53  ;;  %v1136_v7 = vadd.f32 %v8435_v17, %v6796_v62  ;;  %v2160_v49 = vsub.f32 1.0, %v7005_v52 }
 0x1d6   : > { %v5639_v18 = vpop.eup %5638  ;;  %5664 = vpow2.f32 %v5023_v24  ;;  %v2175_v22 = vmul.f32 %v5637_v43, %v2159_v26  ;;  %v2161_v3 = vsub.f32 1.0, %v5631_v27  ;;  %v2192_v14 = vmul.f32 0.0, %v7005_v52 }
 0x1d7   : > { %v7039_v12 = vpop.eup %5640  ;;  %5666 = vrcp.f32 %v1942_v29  ;;  %v2116_v56 = vmul.f32 %v5639_v18, %v2100_v13  ;;  %v1994_v40 = vadd.f32 %v1767_v2, %v1136_v7  ;;  %v2193_v63 = vmul.f32 0.0, %v5631_v27  ;;  %v8436_v18 = vld [vmem:[#allocation8_spill] sm:$0xff]  ;;  %v1852_v2 = vpop.f32.mrf.mxu0 }
 0x1d8   : > { %v5643_v61 = vpop.eup %5642  ;;  %5668 = vpow2.f32 %v5009_v38  ;;  %v7044_v59 = vadd.f32 %v2191_v32, %v2175_v22  ;;  %v2101_v26 = vadd.f32 %v6980_v6, %v6894_v50  ;;  %v2194_v29 = vmul.f32 0.0, %v7025_v1  ;;  %v8437_v22 = vld [vmem:[#allocation9_spill] sm:$0xff] }
 0x1d9   : > { %v5645_v45 = vpop.eup %5644  ;;  %5670 = vtanh.f32 %v2131_v33  ;;  %v2132_v28 = vadd.f32 %v2116_v56, %v1288_v21  ;;  %v2053_v5 = vadd.f32 1.0, %v5643_v61  ;;  %v5025_v33 = vmul.f32 -1.442695, %v1994_v40  ;;  %v8438_v61 = vld [vmem:[#allocation7_spill] sm:$0xff] }
 0x1da   : > { %v5647_v8 = vpop.eup %5646  ;;  %v1943_v44 = vadd.f32 1.0, %v5645_v45  ;;  %2224 = vst.msk [vmem:[#allocation3 + $0x20] sm:$0xff] %vm2219_vm0, %v7044_v59  ;;  %2260 = vrot.lane.b32.xlu0 %v7044_v59, %s6028_s20  ;;  %5672 = vpow2.f32 %v5024_v42  ;;  %v5125_v32 = vadd.f32 %v8437_v22, %v8436_v18  ;;  %v1293_v17 = vadd.f32 %v8438_v61, %v6863_v48  ;;  %v8440_v61 = vld [vmem:[#allocation11_spill] sm:$0xff] }
 0x1db   : > { %v5649_v31 = vpop.eup %5648  ;;  %2417 = vmatmul.mubr.bf16.gmra.mxu0 %v2367_v53  ;;  %v2176_v39 = vmul.f32 %v5647_v8, %v2160_v49  ;;  %v2162_v53 = vsub.f32 1.0, %v7025_v1  ;;  %v2102_v45 = vadd.f32 %v7001_v11, %v6894_v50  ;;  %v5273_v11 = vpop.f32.mrf.mxu0 }
 0x1dc   : > { %v5651_v54 = vpop.eup %5650  ;;  %5674 = vrcp.f32 %v1943_v44  ;;  %2426 = vmatprep.mubr.bf16.mxu0 %v8434_v41  ;;  %v2177_v55 = vmul.f32 %v5649_v31, %v2161_v3  ;;  %v1296_v40 = vadd.f32 %v5125_v32, %v6863_v48  ;;  %v2163_v31 = vsub.f32 1.0, %v7039_v12 }
 0x1dd   : > { %v5653_v23 = vpop.eup %5652  ;;  %5676 = vtanh.f32 %v2132_v28  ;;  %v7055_v24 = vadd.f32 %v2192_v14, %v2176_v39  ;;  %v2054_v21 = vadd.f32 1.0, %v5651_v54 }
 0x1de   : > { %v7057_v51 = vpop.eup %5654  ;;  %v1944_v15 = vadd.f32 1.0, %v5653_v23  ;;  %v7060_v52 = vadd.f32 %v2193_v63, %v2177_v55  ;;  %v2103_v55 = vadd.f32 %v6894_v50, %v1852_v2 }
 0x1df   : > { %v5657_v36 = vpop.eup %5656  ;;  %2225 = vst.msk [vmem:[#allocation3 + $0x28] sm:$0xff] %vm2219_vm0, %v7055_v24  ;;  %2262 = vrot.lane.b32.xlu1 %v7055_v24, %s6028_s20  ;;  %v2368_v27 = vpack.c.bf16 %v7055_v24, %v7044_v59 }
 0x1e0   : > { %v5659_v38 = vpop.eup %5658  ;;  %5678 = vrcp.f32 %v1944_v15  ;;  %v2178_v43 = vmul.f32 %v5657_v36, %v2162_v53  ;;  %2226 = vst.msk [vmem:[#allocation3 + $0x30] sm:$0xff] %vm2219_vm0, %v7060_v52  ;;  %v1855_v36 = vpop.f32.mrf.mxu0 }
 0x1e1   : > { %v5661_v13 = vpop.eup %5660  ;;  %5680 = vrcp.f32 %v2053_v5  ;;  %v1945_v42 = vadd.f32 1.0, %v5659_v38  ;;  %5294 = vmatprep.mubr.bf16.mxu1 %v2368_v27  ;;  %v2195_v5 = vmul.f32 0.0, %v7039_v12  ;;  %v2196_v12 = vmul.f32 0.0, %v7057_v51 }
 0x1e2   : > { %v5663_v56 = vpop.eup %5662  ;;  %v2117_v6 = vmul.f32 %v5661_v13, %v2101_v26  ;;  %5682 = vpow2.f32 %v5025_v33  ;;  %v7077_v7 = vadd.f32 %v2194_v29, %v2178_v43  ;;  %v8439_v43 = vld [vmem:[#allocation10_spill] sm:$0xff]  ;;  %v2104_v32 = vadd.f32 %v6894_v50, %v1855_v36 }
 0x1e3   : > { %v5665_v1 = vpop.eup %5664  ;;  %5684 = vrcp.f32 %v1945_v42  ;;  %2427 = vmatmul.mubr.bf16.gmra.mxu0 %v2368_v27  ;;  %v2055_v14 = vadd.f32 1.0, %v5663_v56  ;;  %v2164_v27 = vsub.f32 1.0, %v7057_v51  ;;  %v1301_v29 = vadd.f32 %v8439_v43, %v6863_v48 }
 0x1e4   : > { %v5667_v28 = vpop.eup %5666  ;;  %v2133_v49 = vadd.f32 %v2117_v6, %v1293_v17  ;;  %2227 = vst.msk [vmem:[#allocation3 + $0x38] sm:$0xff] %vm2219_vm0, %v7077_v7  ;;  %2266 = vrot.lane.b32.xlu1 %v7077_v7, %s6028_s20  ;;  %v2369_v8 = vpack.c.bf16 %v7077_v7, %v7060_v52  ;;  %2436 = vmatprep.mubr.bf16.mxu0 %v8434_v41  ;;  %5686 = vrcp.f32 %v2054_v21  ;;  %v2056_v53 = vadd.f32 1.0, %v5665_v1 }
 0x1e5   : > { %v5669_v44 = vpop.eup %5668  ;;  %v2118_v3 = vmul.f32 %v5667_v28, %v2102_v45  ;;  %v1304_v17 = vadd.f32 %v8440_v61, %v6863_v48  ;;  %v2105_v1 = vadd.f32 %v7053_v34, %v6894_v50 }
 0x1e6   : > { %v5671_v39 = vpop.eup %5670  ;;  %5688 = vtanh.f32 %v2133_v49  ;;  %v1946_v54 = vadd.f32 1.0, %v5669_v44  ;;  %5295 = vmatmul.mubr.bf16.gmra.mxu1 %v2369_v8 }
 0x1e7   : > { %v2134_v63 = vadd.f32 %v2118_v3, %v1296_v40  ;;  %v2179_v23 = vmul.f32 %v5671_v39, %v2163_v31  ;;  %v5673_v15 = vpop.eup %5672 }
 0x1e8   : > { %5690 = vrcp.f32 %v1946_v54  ;;  %v2057_v42 = vadd.f32 1.0, %v5673_v15  ;;  %v2106_v54 = vadd.f32 %v5273_v11, %v6894_v50 }
 0x1e9   : > { %v5675_v33 = vpop.eup %5674  ;;  %5692 = vtanh.f32 %v2134_v63  ;;  %v7093_v38 = vadd.f32 %v2195_v5, %v2179_v23 }
 0x1ea   : > { %v5677_v26 = vpop.eup %5676  ;;  %5694 = vrcp.f32 %v2055_v14  ;;  %v2119_v13 = vmul.f32 %v5675_v33, %v2103_v55  ;;  %v8442_v33 = vld [vmem:[#allocation13_spill] sm:$0xff] }
 0x1eb   : > { %2437 = vmatmul.mubr.bf16.gmra.mxu0 %v2369_v8  ;;  %v2180_v18 = vmul.f32 %v5677_v26, %v2164_v27  ;;  %2228 = vst.msk [vmem:[#allocation3 + $0x40] sm:$0xff] %vm2219_vm0, %v7093_v38  ;;  %5696 = vrcp.f32 %v2056_v53  ;;  %v8441_v8 = vld [vmem:[#allocation12_spill] sm:$0xff]  ;;  %v1312_v53 = vadd.f32 %v8442_v33, %v6863_v48 }
 0x1ec   : > { %v2135_v22 = vadd.f32 %v2119_v13, %v1301_v29  ;;  %2446 = vmatprep.mubr.bf16.mxu0 %v8434_v41  ;;  %v1309_v44 = vadd.f32 %v8441_v8, %v6863_v48 }
 0x1ed   : > { %v5679_v21 = vpop.eup %5678  ;;  %v7102_v2 = vadd.f32 %v2196_v12, %v2180_v18 }
 0x1ee   : > { %v5681_v56 = vpop.eup %5680  ;;  %5698 = vtanh.f32 %v2135_v22  ;;  %v2120_v6 = vmul.f32 %v5679_v21, %v2104_v32 }
 0x1ef   : > { %v5683_v51 = vpop.eup %5682  ;;  %2229 = vst.msk [vmem:[#allocation3 + $0x48] sm:$0xff] %vm2219_vm0, %v7102_v2  ;;  %v2370_v45 = vpack.c.bf16 %v7102_v2, %v7093_v38  ;;  %5700 = vrcp.f32 %v2057_v42  ;;  %v2165_v39 = vsub.f32 1.0, %v5681_v56  ;;  %v2197_v63 = vmul.f32 0.0, %v5681_v56 }
 0x1f0   : > { %v5685_v28 = vpop.eup %5684  ;;  %v2136_v49 = vadd.f32 %v2120_v6, %v1304_v17  ;;  %v2058_v31 = vadd.f32 1.0, %v5683_v51 }
 0x1f1   : > { %v2121_v40 = vmul.f32 %v5685_v28, %v2105_v1  ;;  %5298 = vmatprep.mubr.bf16.mxu1 %v2370_v45  ;;  %v5687_v3 = vpop.eup %5686 }
 0x1f2   : > { %5702 = vtanh.f32 %v2136_v49  ;;  %v2166_v5 = vsub.f32 1.0, %v5687_v3  ;;  %v2198_v29 = vmul.f32 0.0, %v5687_v3 }
 0x1f3   : > { %v5689_v14 = vpop.eup %5688  ;;  %v2137_v34 = vadd.f32 %v2121_v40, %v1309_v44  ;;  %2447 = vmatmul.mubr.bf16.gmra.mxu0 %v2370_v45 }
 0x1f4   : > { %v2181_v55 = vmul.f32 %v5689_v14, %v2165_v39  ;;  %2456 = vmatprep.mubr.bf16.mxu0 %v8434_v41 }
 0x1f5   : > { %v5691_v23 = vpop.eup %5690  ;;  %5704 = vtanh.f32 %v2137_v34 }
 0x1f6   : > { %v5693_v15 = vpop.eup %5692  ;;  %5706 = vrcp.f32 %v2058_v31  ;;  %v2122_v36 = vmul.f32 %v5691_v23, %v2106_v54  ;;  %v7118_v27 = vadd.f32 %v2197_v63, %v2181_v55 }
 0x1f7   : > { %v5695_v26 = vpop.eup %5694  ;;  %v2182_v43 = vmul.f32 %v5693_v15, %v2166_v5 }
 0x1f8   : > { %v2138_v13 = vadd.f32 %v2122_v36, %v1312_v53  ;;  %2230 = vst.msk [vmem:[#allocation3 + $0x50] sm:$0xff] %vm2219_vm0, %v7118_v27  ;;  %v5697_v11 = vpop.eup %5696  ;;  %v2167_v18 = vsub.f32 1.0, %v5695_v26  ;;  %v2199_v21 = vmul.f32 0.0, %v5695_v26  ;;  %v8443_v36 = vld [vmem:[#allocation23_spill] sm:$0xff] }
 0x1f9   : > { %v7122_v50 = vadd.f32 %v2198_v29, %v2182_v43  ;;  %v2168_v56 = vsub.f32 1.0, %v5697_v11  ;;  %v2200_v51 = vmul.f32 0.0, %v5697_v11  ;;  %v1140_v26 = vadd.f32 %v8443_v36, %v6788_v10  ;;  %v8444_v29 = vld [vmem:[#allocation24_spill] sm:$0xff] }
 0x1fa   : > { %5708 = vtanh.f32 %v2138_v13  ;;  %v1142_v13 = vadd.f32 %v8444_v29, %v6796_v62 }
 0x1fb   : > { %v5699_v12 = vpop.eup %5698  ;;  %2231 = vst.msk [vmem:[#allocation3 + $0x58] sm:$0xff] %vm2219_vm0, %v7122_v50  ;;  %v2371_v22 = vpack.c.bf16 %v7122_v50, %v7118_v27 }
 0x1fc   : > { %v2183_v32 = vmul.f32 %v5699_v12, %v2167_v18  ;;  %v5701_v42 = vpop.eup %5700  ;;  %v8445_v12 = vld [vmem:[#allocation26_spill] sm:$0xff] }
 0x1fd   : > { %5299 = vmatmul.mubr.bf16.gmra.mxu1 %v2371_v22  ;;  %2457 = vmatmul.mubr.bf16.gmra.mxu0 %v2371_v22  ;;  %v2169_v1 = vsub.f32 1.0, %v5701_v42  ;;  %v2201_v44 = vmul.f32 0.0, %v5701_v42  ;;  %v1144_v22 = vadd.f32 %v8445_v12, %v6788_v10 }
 0x1fe   : > { %v7128_v61 = vadd.f32 %v2199_v21, %v2183_v32  ;;  %2466 = vmatprep.mubr.bf16.mxu0 %v8434_v41 }
 0x1ff   : > { %v5703_v17 = vpop.eup %5702 }
 0x200   : > { %v2184_v6 = vmul.f32 %v5703_v17, %v2168_v56  ;;  %2232 = vst.msk [vmem:[#allocation3 + $0x60] sm:$0xff] %vm2219_vm0, %v7128_v61  ;;  %v8446_v56 = vld [vmem:[#allocation27_spill] sm:$0xff] }
 0x201   : > { %v1146_v17 = vadd.f32 %v8446_v56, %v6796_v62 }
 0x202   : > { %v5705_v45 = vpop.eup %5704  ;;  %v7133_v28 = vadd.f32 %v2200_v51, %v2184_v6 }
 0x203   : > { %v5707_v49 = vpop.eup %5706  ;;  %v2185_v8 = vmul.f32 %v5705_v45, %v2169_v1  ;;  %v8447_v45 = vld [vmem:[#allocation29_spill] sm:$0xff] }
 0x204   : > { %2233 = vst.msk [vmem:[#allocation3 + $0x68] sm:$0xff] %vm2219_vm0, %v7133_v28  ;;  %v2372_v40 = vpack.c.bf16 %v7133_v28, %v7128_v61  ;;  %v2170_v31 = vsub.f32 1.0, %v5707_v49  ;;  %v2202_v34 = vmul.f32 0.0, %v5707_v49  ;;  %v1150_v49 = vadd.f32 %v8447_v45, %v6788_v10 }
 0x205   : > { %v7139_v3 = vadd.f32 %v2201_v44, %v2185_v8 }
 0x206   : > { %5302 = vmatprep.mubr.bf16.mxu1 %v2372_v40  ;;  %2467 = vmatmul.mubr.bf16.gmra.mxu0 %v2372_v40 }
 0x207   : > { %v5709_v39 = vpop.eup %5708  ;;  %2234 = vst.msk [vmem:[#allocation3 + $0x70] sm:$0xff] %vm2219_vm0, %v7139_v3  ;;  %2476 = vmatprep.mubr.bf16.mxu0 %v8434_v41 }
 0x208   : > { %v2186_v14 = vmul.f32 %v5709_v39, %v2170_v31 }
 0x20a   : > { %v7144_v54 = vadd.f32 %v2202_v34, %v2186_v14  ;;  %v8448_v14 = vld [vmem:[#allocation30_spill] sm:$0xff] }
 0x20b   : > { %v1152_v34 = vadd.f32 %v8448_v14, %v6796_v62  ;;  %v8454_v14 = vld [vmem:[#allocation43_spill] sm:$0xff] }
 0x20c   : > { %2235 = vst.msk [vmem:[#allocation3 + $0x78] sm:$0xff] %vm2219_vm0, %v7144_v54  ;;  %v2373_v55 = vpack.c.bf16 %v7144_v54, %v7139_v3 }
 0x20e   : > { %5303 = vmatmul.mubr.bf16.gmra.mxu1 %v2373_v55  ;;  %2477 = vmatmul.mubr.bf16.gmra.mxu0 %v2373_v55 }
 0x23b   : > { %v2253_v63 = vpop.permute.xlu0 %2252 }
 0x23c   : > { %2301 = vst.msk [vmem:[#allocation4 + $0x80] sm:$0xff] %vm2219_vm0, %v2253_v63  ;;  %v8449_v63 = vld [vmem:[#allocation32_spill] sm:$0xff] }
 0x241   : > { %v2257_v23 = vpop.permute.xlu0 %2256 }
 0x242   : > { %2303 = vst.msk [vmem:[#allocation4 + $0x90] sm:$0xff] %vm2219_vm0, %v2257_v23  ;;  %v1154_v23 = vadd.f32 %v8449_v63, %v6788_v10 }
 0x243   : > { %v2255_v5 = vpop.permute.xlu1 %2254 }
 0x244   : > { %2302 = vst.msk [vmem:[#allocation4 + $0x88] sm:$0xff] %vm2219_vm0, %v2255_v5 }
 0x247   : > { %v2259_v41 = vpop.permute.xlu1 %2258 }
 0x248   : > { %2304 = vst.msk [vmem:[#allocation4 + $0x98] sm:$0xff] %vm2219_vm0, %v2259_v41 }
 0x24c   : > { %v2261_v15 = vpop.permute.xlu0 %2260 }
 0x24d   : > { %2305 = vst.msk [vmem:[#allocation4 + $0xa0] sm:$0xff] %vm2219_vm0, %v2261_v15 }
 0x251   : > { %v2263_v33 = vpop.permute.xlu1 %2262 }
 0x252   : > { %2306 = vst.msk [vmem:[#allocation4 + $0xa8] sm:$0xff] %vm2219_vm0, %v2263_v33 }
 0x256   : > { %v2267_v53 = vpop.permute.xlu1 %2266 }
 0x257   : > { %2308 = vst.msk [vmem:[#allocation4 + $0xb8] sm:$0xff] %vm2219_vm0, %v2267_v53  ;;  %v8450_v53 = vld [vmem:[#allocation33_spill] sm:$0xff] }
 0x258   : > { %v1156_v36 = vadd.f32 %v8450_v53, %v6796_v62 }
 0x293   : > { %v2408_v43 = vpop.f32.mrf.mxu0 }
 0x294   : > { %v2584_v11 = vadd.f32 %v2408_v43, %v1140_v26  ;;  %v8451_v43 = vld [vmem:[#allocation35_spill] sm:$0xff] }
 0x295   : > { %v2410_v18 = vpop.f32.mrf.mxu0  ;;  %v1160_v29 = vadd.f32 %v8451_v43, %v6788_v10 }
 0x296   : > { %v5026_v32 = vmul.f32 -1.442695, %v2584_v11  ;;  %v2696_v21 = vadd.f32 %v2410_v18, %v1142_v13 }
 0x297   : > { %v2412_v42 = vpop.f32.mrf.mxu0 }
 0x298   : > { %5710 = vpow2.f32 %v5026_v32  ;;  %v5042_v6 = vmul.f32 -1.442695, %v2696_v21  ;;  %v2585_v51 = vadd.f32 %v2412_v42, %v1144_v22  ;;  %v8452_v42 = vld [vmem:[#allocation38_spill] sm:$0xff] }
 0x299   : > { %v2414_v1 = vpop.f32.mrf.mxu0  ;;  %v1164_v56 = vadd.f32 %v8452_v42, %v6788_v10 }
 0x29a   : > { %v5027_v8 = vmul.f32 -1.442695, %v2585_v51  ;;  %v2697_v44 = vadd.f32 %v2414_v1, %v1146_v17  ;;  %5712 = vpow2.f32 %v5042_v6 }
 0x29b   : > { %v2418_v40 = vpop.f32.mrf.mxu0 }
 0x29c   : > { %5714 = vpow2.f32 %v5027_v8  ;;  %v5043_v31 = vmul.f32 -1.442695, %v2697_v44  ;;  %v2586_v39 = vadd.f32 %v2418_v40, %v1150_v49  ;;  %v8453_v49 = vld [vmem:[#allocation36_spill] sm:$0xff]  ;;  %v7179_v44 = vpop.f32.mrf.mxu1 }
 0x29d   : > { %v2420_v55 = vpop.f32.mrf.mxu0  ;;  %v1162_v8 = vadd.f32 %v8453_v49, %v6796_v62  ;;  %v8458_v49 = vld [vmem:[#allocation50_spill] sm:$0xff] }
 0x29e   : > { %v5028_v5 = vmul.f32 -1.442695, %v2586_v39  ;;  %5716 = vpow2.f32 %v5043_v31  ;;  %v2698_v41 = vadd.f32 %v2420_v55, %v1152_v34  ;;  %v1170_v34 = vadd.f32 %v8454_v14, %v6788_v10 }
 0x29f   : > { %v2422_v15 = vpop.f32.mrf.mxu0 }
 0x2a0   : > { %5718 = vpow2.f32 %v5028_v5  ;;  %v2587_v33 = vadd.f32 %v2422_v15, %v1154_v23  ;;  %v5044_v11 = vmul.f32 -1.442695, %v2698_v41 }
 0x2a1   : > { %v2424_v26 = vpop.f32.mrf.mxu0 }
 0x2a2   : > { %v5029_v13 = vmul.f32 -1.442695, %v2587_v33  ;;  %v2699_v18 = vadd.f32 %v2424_v26, %v1156_v36  ;;  %v8455_v33 = vld [vmem:[#allocation40_spill] sm:$0xff]  ;;  %v2521_v36 = vpop.f32.mrf.mxu1 }
 0x2a3   : > { %v2428_v12 = vpop.f32.mrf.mxu0  ;;  %v1166_v53 = vadd.f32 %v8455_v33, %v6796_v62 }
 0x2a4   : > { %5720 = vpow2.f32 %v5029_v13  ;;  %v2588_v22 = vadd.f32 %v2428_v12, %v1160_v29  ;;  %v5045_v51 = vmul.f32 -1.442695, %v2699_v18  ;;  %v8456_v29 = vld [vmem:[#allocation45_spill] sm:$0xff] }
 0x2a5   : > { %v5711_v32 = vpop.eup %5710  ;;  %v2430_v21 = vpop.f32.mrf.mxu0  ;;  %5722 = vpow2.f32 %v5044_v11  ;;  %v1172_v13 = vadd.f32 %v8456_v29, %v6796_v62  ;;  %v8457_v11 = vld [vmem:[#allocation47_spill] sm:$0xff] }
 0x2a6   : > { %v2648_v17 = vadd.f32 1.0, %v5711_v32  ;;  %v5030_v6 = vmul.f32 -1.442695, %v2588_v22  ;;  %v2700_v63 = vadd.f32 %v2430_v21, %v1162_v8  ;;  %v1174_v18 = vadd.f32 %v8457_v11, %v6788_v10  ;;  %v8460_v29 = vld [vmem:[#allocation15_spill] sm:$0xff] }
 0x2a7   : > { %v2432_v1 = vpop.f32.mrf.mxu0  ;;  %v5713_v45 = vpop.eup %5712  ;;  %v1180_v8 = vadd.f32 %v8458_v49, %v6788_v10  ;;  %v1184_v11 = vadd.f32 %v6812_v0, %v6788_v10 }
 0x2a8   : > { %5724 = vrcp.f32 %v2648_v17  ;;  %v2589_v40 = vadd.f32 %v2432_v1, %v1164_v56  ;;  %v2760_v5 = vadd.f32 1.0, %v5713_v45  ;;  %v5046_v32 = vmul.f32 -1.442695, %v2700_v63 }
 0x2a9   : > { %v5715_v31 = vpop.eup %5714  ;;  %5726 = vpow2.f32 %v5030_v6  ;;  %v2434_v39 = vpop.f32.mrf.mxu0 }
 0x2aa   : > { %v2649_v55 = vadd.f32 1.0, %v5715_v31  ;;  %v5031_v23 = vmul.f32 -1.442695, %v2589_v40  ;;  %5728 = vpow2.f32 %v5045_v51  ;;  %v2701_v21 = vadd.f32 %v2434_v39, %v1166_v53  ;;  %v7189_v51 = vpop.f32.mrf.mxu1  ;;  %v8459_v39 = vld [vmem:[#allocation14_spill] sm:$0xff] }
 0x2ab   : > { %v2438_v41 = vpop.f32.mrf.mxu0  ;;  %v5717_v15 = vpop.eup %5716 }
 0x2ac   : > { %5730 = vrcp.f32 %v2649_v55  ;;  %v2590_v26 = vadd.f32 %v2438_v41, %v1170_v34  ;;  %v2761_v56 = vadd.f32 1.0, %v5717_v15  ;;  %v5047_v14 = vmul.f32 -1.442695, %v2701_v21  ;;  %v7200_v15 = vld [vmem:[%s8333_s4] ss:$0 sm:$0xff]  ;;  %v2524_v53 = vpop.f32.mrf.mxu1 }
 0x2ad   : > { %v5719_v43 = vpop.eup %5718  ;;  %5732 = vpow2.f32 %v5031_v23  ;;  %v2440_v12 = vpop.f32.mrf.mxu0  ;;  %v1317_v55 = vadd.f32 %v8459_v39, %v6863_v48  ;;  %v1182_v41 = vadd.f32 %v6808_v9, %v6796_v62  ;;  %v2808_v33 = vadd.f32 %v7200_v15, %v2521_v36 }
 0x2ae   : > { %v2650_v22 = vadd.f32 1.0, %v5719_v43  ;;  %v5032_v42 = vmul.f32 -1.442695, %v2590_v26  ;;  %5734 = vrcp.f32 %v2760_v5  ;;  %v2702_v17 = vadd.f32 %v2440_v12, %v1172_v13 }
 0x2af   : > { %v2442_v6 = vpop.f32.mrf.mxu0  ;;  %v1320_v13 = vadd.f32 %v8460_v29, %v6863_v48  ;;  %v1186_v9 = vadd.f32 %v6816_v47, %v6796_v62  ;;  %v8461_v47 = vld [vmem:[#allocation16_spill] sm:$0xff] }
 0x2b0   : > { %5736 = vrcp.f32 %v2650_v22  ;;  %v2591_v1 = vadd.f32 %v2442_v6, %v1174_v18  ;;  %v5048_v63 = vmul.f32 -1.442695, %v2702_v17 }
 0x2b1   : > { %v5721_v45 = vpop.eup %5720  ;;  %5738 = vpow2.f32 %v5032_v42  ;;  %v2444_v40 = vpop.f32.mrf.mxu0  ;;  %v2809_v42 = vadd.f32 %v7200_v15, %v2524_v53 }
 0x2b2   : > { %v2651_v31 = vadd.f32 1.0, %v5721_v45  ;;  %5740 = vpow2.f32 %v5046_v32  ;;  %v5033_v34 = vmul.f32 -1.442695, %v2591_v1  ;;  %v5723_v5 = vpop.eup %5722 }
 0x2b3   : > { %5742 = vrcp.f32 %v2761_v56  ;;  %v2448_v23 = vpop.f32.mrf.mxu0  ;;  %v2762_v21 = vadd.f32 1.0, %v5723_v5 }
 0x2b4   : > { %5744 = vrcp.f32 %v2651_v31  ;;  %v2592_v26 = vadd.f32 %v2448_v23, %v1180_v8  ;;  %v1325_v8 = vadd.f32 %v8461_v47, %v6863_v48  ;;  %v8462_v31 = vld [vmem:[#allocation17_spill] sm:$0xff] }
 0x2b5   : > { %v5725_v43 = vpop.eup %5724  ;;  %5746 = vpow2.f32 %v5033_v34  ;;  %v2450_v18 = vpop.f32.mrf.mxu0  ;;  %v8463_v34 = vld [vmem:[#allocation48_spill] sm:$0xff] }
 0x2b6   : > { %v5727_v12 = vpop.eup %5726  ;;  %v2824_v22 = vmul.f32 %v5725_v43, %v2808_v33  ;;  %5748 = vpow2.f32 %v5047_v14  ;;  %v5034_v32 = vmul.f32 -1.442695, %v2592_v26  ;;  %v2704_v36 = vadd.f32 %v2450_v18, %v1182_v41  ;;  %v7220_v41 = vpop.f32.mrf.mxu1 }
 0x2b7   : > { %v2652_v56 = vadd.f32 1.0, %v5727_v12  ;;  %5750 = vpow2.f32 %v5048_v63  ;;  %v2452_v17 = vpop.f32.mrf.mxu0  ;;  %v5729_v6 = vpop.eup %5728  ;;  %v7214_v14 = vadd.f32 %v8462_v31, %v6863_v48  ;;  %v1176_v39 = vadd.f32 %v8463_v34, %v6796_v62 }
 0x2b8   : > { %v2840_v1 = vadd.f32 %v2824_v22, %v1317_v55  ;;  %5752 = vpow2.f32 %v5034_v32  ;;  %v5050_v0 = vmul.f32 -1.442695, %v2704_v36  ;;  %v2593_v45 = vadd.f32 %v2452_v17, %v1184_v11  ;;  %v8465_v36 = vld [vmem:[#allocation19_spill] sm:$0xff] }
 0x2b9   : > { %v5731_v49 = vpop.eup %5730  ;;  %5754 = vrcp.f32 %v2652_v56  ;;  %v2454_v23 = vpop.f32.mrf.mxu0  ;;  %v1190_v55 = vadd.f32 %v6820_v57, %v6788_v10  ;;  %v2763_v53 = vadd.f32 1.0, %v5729_v6  ;;  %v2703_v43 = vadd.f32 %v2444_v40, %v1176_v39  ;;  %v8464_v57 = vld [vmem:[#allocation18_spill] sm:$0xff] }
 0x2ba   : > { %v5733_v63 = vpop.eup %5732  ;;  %5756 = vtanh.f32 %v2840_v1  ;;  %v2825_v5 = vmul.f32 %v5731_v49, %v2809_v42  ;;  %v2705_v33 = vadd.f32 %v2454_v23, %v1186_v9  ;;  %v2810_v11 = vadd.f32 %v7200_v15, %v7179_v44  ;;  %v2537_v44 = vpop.f32.mrf.mxu1 }
 0x2bb   : > { %5758 = vrcp.f32 %v2762_v21  ;;  %v2653_v26 = vadd.f32 1.0, %v5733_v63  ;;  %v7222_v29 = vpop.eup %5734  ;;  %v5035_v12 = vmul.f32 -1.442695, %v2593_v45  ;;  %v7228_v32 = vadd.f32 %v8464_v57, %v6863_v48  ;;  %v8466_v21 = vld [vmem:[#allocation51_spill] sm:$0xff] }
 0x2bc   : > { %v2841_v18 = vadd.f32 %v2825_v5, %v1320_v13  ;;  %5760 = vpow2.f32 %v5050_v0  ;;  %v7232_v9 = vadd.f32 %v8465_v36, %v6863_v48  ;;  %v1192_v40 = vadd.f32 %v8466_v21, %v6796_v62  ;;  %v8467_v0 = vld [vmem:[#allocation20_spill] sm:$0xff] }
 0x2bd   : > { %v5737_v22 = vpop.eup %5736  ;;  %5762 = vrcp.f32 %v2653_v26  ;;  %v2458_v42 = vpop.f32.mrf.mxu0  ;;  %v5051_v13 = vmul.f32 -1.442695, %v2705_v33  ;;  %v7238_v45 = vadd.f32 %v8467_v0, %v6863_v48  ;;  %v5049_v47 = vmul.f32 -1.442695, %v2703_v43  ;;  %v8468_v33 = vld [vmem:[#allocation52_spill] sm:$0xff] }
 0x2be   : > { %v5739_v56 = vpop.eup %5738  ;;  %v2826_v17 = vmul.f32 %v5737_v22, %v2810_v11  ;;  %5764 = vtanh.f32 %v2841_v18  ;;  %v2594_v6 = vadd.f32 %v2458_v42, %v1190_v55  ;;  %v2811_v39 = vadd.f32 %v7200_v15, %v7189_v51  ;;  %v8469_v18 = vld [vmem:[#allocation53_spill] sm:$0xff] }
 0x2bf   : > { %v5741_v1 = vpop.eup %5740  ;;  %5766 = vrcp.f32 %v2763_v53  ;;  %v2654_v49 = vadd.f32 1.0, %v5739_v56  ;;  %v2460_v31 = vpop.f32.mrf.mxu0  ;;  %v1194_v55 = vadd.f32 %v6828_v16, %v6788_v10  ;;  %v1196_v26 = vadd.f32 %v8468_v33, %v6796_v62 }
 0x2c0   : > { %v7240_v34 = vpop.eup %5742  ;;  %5768 = vpow2.f32 %v5035_v12  ;;  %v5036_v23 = vmul.f32 -1.442695, %v2594_v6  ;;  %v2706_v63 = vadd.f32 %v2460_v31, %v1192_v40  ;;  %v7248_v11 = vadd.f32 %v2826_v17, %v1325_v8  ;;  %v7252_v12 = vpop.f32.mrf.mxu1  ;;  %v8470_v6 = vld [vmem:[#allocation54_spill] sm:$0xff] }
 0x2c1   : > { %v5745_v5 = vpop.eup %5744  ;;  %5770 = vrcp.f32 %v2654_v49  ;;  %v2462_v53 = vpop.f32.mrf.mxu0  ;;  %v1200_v22 = vadd.f32 %v8469_v18, %v6788_v10  ;;  %v2764_v51 = vadd.f32 1.0, %v5741_v1  ;;  %v1202_v8 = vadd.f32 %v8470_v6, %v6796_v62 }
 0x2c2   : > { %v5747_v43 = vpop.eup %5746  ;;  %v2827_v57 = vmul.f32 %v5745_v5, %v2811_v39  ;;  %5772 = vpow2.f32 %v5051_v13  ;;  %v5052_v16 = vmul.f32 -1.442695, %v2706_v63  ;;  %v2595_v40 = vadd.f32 %v2462_v53, %v1194_v55  ;;  %v2540_v63 = vpop.f32.mrf.mxu1 }
 0x2c3   : > { %v5749_v36 = vpop.eup %5748  ;;  %v2655_v21 = vadd.f32 1.0, %v5747_v43  ;;  %5774 = vpow2.f32 %v5049_v47  ;;  %v2464_v42 = vpop.f32.mrf.mxu0  ;;  %v1204_v17 = vadd.f32 %v6844_v35, %v6788_v10  ;;  %v2812_v13 = vadd.f32 %v7200_v15, %v2537_v44  ;;  %v8471_v35 = vld [vmem:[#allocation55_spill] sm:$0xff] }
 0x2c4   : > { %v5751_v56 = vpop.eup %5750  ;;  %5776 = vpow2.f32 %v5036_v23  ;;  %v7259_v0 = vadd.f32 %v2827_v57, %v7214_v14  ;;  %v5037_v49 = vmul.f32 -1.442695, %v2595_v40  ;;  %v2872_v47 = vsub.f32 1.0, %v7222_v29 }
 0x2c5   : > { %v5753_v1 = vpop.eup %5752  ;;  %5778 = vrcp.f32 %v2655_v21  ;;  %v2765_v39 = vadd.f32 1.0, %v5749_v36  ;;  %v2707_v55 = vadd.f32 %v2464_v42, %v1196_v26  ;;  %v1206_v23 = vadd.f32 %v8471_v35, %v6796_v62 }
 0x2c6   : > { %v5755_v31 = vpop.eup %5754  ;;  %5780 = vrcp.f32 %v2764_v51  ;;  %v2656_v5 = vadd.f32 1.0, %v5753_v1  ;;  %v2468_v33 = vpop.f32.mrf.mxu0  ;;  %v2766_v44 = vadd.f32 1.0, %v5751_v56  ;;  %v2904_v51 = vmul.f32 %v7222_v29, %v6986_v58 }
 0x2c7   : > { %v5757_v53 = vpop.eup %5756  ;;  %v2828_v14 = vmul.f32 %v5755_v31, %v2812_v13  ;;  %5782 = vpow2.f32 %v5052_v16  ;;  %v2596_v43 = vadd.f32 %v2468_v33, %v1200_v22  ;;  %v2813_v40 = vadd.f32 %v7200_v15, %v2540_v63 }
 0x2c8   : > { %v7265_v18 = vpop.eup %5758  ;;  %5784 = vrcp.f32 %v2656_v5  ;;  %v2470_v57 = vpop.f32.mrf.mxu0  ;;  %v2888_v21 = vmul.f32 %v5757_v53, %v2872_v47  ;;  %v5053_v16 = vmul.f32 -1.442695, %v2707_v55  ;;  %v2873_v56 = vsub.f32 1.0, %v7240_v34 }
 0x2c9   : > { %v5761_v36 = vpop.eup %5760  ;;  %v2844_v26 = vadd.f32 %v2828_v14, %v7228_v32  ;;  %5786 = vpow2.f32 %v5037_v49  ;;  %v5038_v42 = vmul.f32 -1.442695, %v2596_v43  ;;  %v2708_v31 = vadd.f32 %v2470_v57, %v1202_v8 }
 0x2ca   : > { %v5763_v6 = vpop.eup %5762  ;;  %5788 = vrcp.f32 %v2765_v39  ;;  %v2472_v22 = vpop.f32.mrf.mxu0  ;;  %v7271_v1 = vadd.f32 %v2904_v51, %v2888_v21  ;;  %v1210_v32 = vadd.f32 %v6855_v37, %v6788_v10  ;;  %v2905_v63 = vmul.f32 %v7240_v34, %v7007_v25 }
 0x2cb   : > { %v5765_v13 = vpop.eup %5764  ;;  %5790 = vtanh.f32 %v2844_v26  ;;  %v2829_v47 = vmul.f32 %v5763_v6, %v2813_v40  ;;  %v2597_v58 = vadd.f32 %v2472_v22, %v1204_v17  ;;  %v2814_v55 = vadd.f32 %v7200_v15, %v7220_v41  ;;  %v7285_v17 = vpop.f32.mrf.mxu1  ;;  %v8472_v41 = vld [vmem:[#allocation22_spill] sm:$0xff] }
 0x2cc   : > { %v7274_v29 = vpop.eup %5766  ;;  %5792 = vrcp.f32 %v2766_v44  ;;  %v2474_v49 = vpop.f32.mrf.mxu0  ;;  %2937 = vst.msk [vmem:[#allocation3 + $0x80] sm:$0xff] %vm2219_vm0, %v7271_v1  ;;  %v2889_v39 = vmul.f32 %v5765_v13, %v2873_v56  ;;  %v2768_v53 = vadd.f32 1.0, %v5761_v36  ;;  %v5054_v25 = vmul.f32 -1.442695, %v2708_v31 }
 0x2cd   : > { %v5769_v5 = vpop.eup %5768  ;;  %v2845_v8 = vadd.f32 %v2829_v47, %v7232_v9  ;;  %5794 = vpow2.f32 %v5038_v42  ;;  %v5039_v33 = vmul.f32 -1.442695, %v2597_v58  ;;  %v2709_v34 = vadd.f32 %v2474_v49, %v1206_v23  ;;  %v2553_v6 = vpop.f32.mrf.mxu1 }
 0x2ce   : > { %v5771_v37 = vpop.eup %5770  ;;  %v2657_v35 = vadd.f32 1.0, %v5769_v5  ;;  %5796 = vpow2.f32 %v5053_v16  ;;  %v2478_v14 = vpop.f32.mrf.mxu0  ;;  %v7287_v43 = vadd.f32 %v2905_v63, %v2889_v39  ;;  %v1344_v9 = vadd.f32 %v8472_v41, %v6863_v48  ;;  %v8473_v5 = vld [vmem:[#allocation25_spill] sm:$0xff] }
 0x2cf   : > { %v5773_v44 = vpop.eup %5772  ;;  %v2830_v57 = vmul.f32 %v5771_v37, %v2814_v55  ;;  %5798 = vtanh.f32 %v2845_v8  ;;  %v1212_v51 = vadd.f32 %v6859_v20, %v6796_v62  ;;  %v2598_v36 = vadd.f32 %v2478_v14, %v1210_v32  ;;  %v7309_v8 = vpop.f32.mrf.mxu1 }
 0x2d0   : > { %v7289_v21 = vpop.eup %5774  ;;  %5800 = vrcp.f32 %v2657_v35  ;;  %v2480_v26 = vpop.f32.mrf.mxu0  ;;  %2938 = vst.msk [vmem:[#allocation3 + $0x88] sm:$0xff] %vm2219_vm0, %v7287_v43  ;;  %v1214_v42 = vadd.f32 %v6867_v60, %v6788_v10  ;;  %v2815_v23 = vadd.f32 %v7200_v15, %v7252_v12  ;;  %v2769_v20 = vadd.f32 1.0, %v5773_v44 }
 0x2d1   : > { %v5777_v40 = vpop.eup %5776  ;;  %5802 = vpow2.f32 %v5039_v33  ;;  %v7302_v16 = vadd.f32 %v2830_v57, %v7238_v45  ;;  %v5040_v13 = vmul.f32 -1.442695, %v2598_v36  ;;  %v1216_v58 = vadd.f32 %v6875_v30, %v6796_v62  ;;  %v2556_v36 = vpop.f32.mrf.mxu1 }
 0x2d2   : > { %v5779_v22 = vpop.eup %5778  ;;  %5804 = vrcp.f32 %v2768_v53  ;;  %v2658_v56 = vadd.f32 1.0, %v5777_v40  ;;  %v2482_v47 = vpop.f32.mrf.mxu0  ;;  %v5055_v10 = vmul.f32 -1.442695, %v2709_v34  ;;  %v2816_v12 = vadd.f32 %v7200_v15, %v2553_v6 }
 0x2d3   : > { %v5781_v31 = vpop.eup %5780  ;;  %v2831_v32 = vmul.f32 %v5779_v22, %v2815_v23  ;;  %5806 = vpow2.f32 %v5054_v25  ;;  %v2710_v49 = vadd.f32 %v2480_v26, %v1212_v51  ;;  %v2599_v45 = vadd.f32 %v2482_v47, %v1214_v42 }
 0x2d4   : > { %v5783_v60 = vpop.eup %5782  ;;  %5808 = vrcp.f32 %v2658_v56  ;;  %v2484_v39 = vpop.f32.mrf.mxu0  ;;  %v1349_v55 = vadd.f32 %v8473_v5, %v6863_v48  ;;  %v2876_v57 = vsub.f32 1.0, %v5781_v31  ;;  %v2908_v26 = vmul.f32 %v5781_v31, %v7044_v59 }
 0x2d5   : > { %v5785_v63 = vpop.eup %5784  ;;  %5810 = vpow2.f32 %v5040_v13  ;;  %v7311_v33 = vadd.f32 %v2831_v32, %v1344_v9  ;;  %v5041_v37 = vmul.f32 -1.442695, %v2599_v45  ;;  %v2711_v53 = vadd.f32 %v2484_v39, %v1216_v58  ;;  %v8474_v32 = vld [vmem:[#allocation28_spill] sm:$0xff] }
 0x2d6   : > { %v5787_v62 = vpop.eup %5786  ;;  %5812 = vrcp.f32 %v2769_v20  ;;  %v2832_v30 = vmul.f32 %v5785_v63, %v2816_v12  ;;  %v2770_v14 = vadd.f32 1.0, %v5783_v60  ;;  %v5056_v41 = vmul.f32 -1.442695, %v2710_v49  ;;  %v7324_v12 = vpop.f32.mrf.mxu1 }
 0x2d7   : > { %v5789_v35 = vpop.eup %5788  ;;  %v2659_v44 = vadd.f32 1.0, %v5787_v62  ;;  %5814 = vpow2.f32 %v5055_v10  ;;  %v5057_v42 = vmul.f32 -1.442695, %v2711_v53  ;;  %v2817_v13 = vadd.f32 %v7200_v15, %v2556_v36 }
 0x2d8   : > { %v5791_v25 = vpop.eup %5790  ;;  %v2848_v34 = vadd.f32 %v2832_v30, %v1349_v55  ;;  %5816 = vpow2.f32 %v5041_v37  ;;  %v2877_v20 = vsub.f32 1.0, %v5789_v35  ;;  %v2909_v59 = vmul.f32 %v5789_v35, %v7055_v24 }
 0x2d9   : > { %v7313_v51 = vpop.eup %5792  ;;  %5818 = vrcp.f32 %v2659_v44  ;;  %v2892_v9 = vmul.f32 %v5791_v25, %v2876_v57  ;;  %v1352_v10 = vadd.f32 %v8474_v32, %v6863_v48  ;;  %v2767_v45 = vadd.f32 1.0, %v7289_v21  ;;  %v8475_v21 = vld [vmem:[#allocation31_spill] sm:$0xff] }
 0x2da   : > { %v5795_v40 = vpop.eup %5794  ;;  %5820 = vtanh.f32 %v2848_v34  ;;  %v2818_v24 = vadd.f32 %v7200_v15, %v7285_v17  ;;  %v1357_v37 = vadd.f32 %v8475_v21, %v6863_v48  ;;  %v2819_v25 = vadd.f32 %v7200_v15, %v7309_v8 }
 0x2db   : > { %v5797_v23 = vpop.eup %5796  ;;  %5822 = vrcp.f32 %v2770_v14  ;;  %v2660_v6 = vadd.f32 1.0, %v5795_v40  ;;  %v7316_v22 = vadd.f32 %v2908_v26, %v2892_v9 }
 0x2dc   : > { %v5799_v56 = vpop.eup %5798  ;;  %5824 = vpow2.f32 %v5056_v41  ;;  %v2771_v14 = vadd.f32 1.0, %v5797_v23 }
 0x2dd   : > { %v5801_v47 = vpop.eup %5800  ;;  %5826 = vrcp.f32 %v2660_v6  ;;  %2941 = vst.msk [vmem:[#allocation3 + $0xa0] sm:$0xff] %vm2219_vm0, %v7316_v22  ;;  %v2893_v58 = vmul.f32 %v5799_v56, %v2877_v20 }
 0x2de   : > { %v5803_v31 = vpop.eup %5802  ;;  %v2833_v60 = vmul.f32 %v5801_v47, %v2817_v13  ;;  %5828 = vpow2.f32 %v5057_v42  ;;  %v8476_v42 = vld [vmem:[#allocation34_spill] sm:$0xff] }
 0x2df   : > { %v5805_v49 = vpop.eup %5804  ;;  %v2661_v39 = vadd.f32 1.0, %v5803_v31  ;;  %5830 = vtanh.f32 %v7248_v11  ;;  %v7328_v63 = vadd.f32 %v2909_v59, %v2893_v58  ;;  %v2569_v11 = vpop.f32.mrf.mxu1  ;;  %v1360_v23 = vadd.f32 %v8476_v42, %v6863_v48 }
 0x2e0   : > { %v5807_v5 = vpop.eup %5806  ;;  %v2849_v55 = vadd.f32 %v2833_v60, %v1352_v10  ;;  %5832 = vtanh.f32 %v7259_v0  ;;  %v2880_v26 = vsub.f32 1.0, %v5805_v49  ;;  %v2912_v8 = vmul.f32 %v5805_v49, %v7093_v38  ;;  %v8477_v60 = vld [vmem:[#allocation37_spill] sm:$0xff] }
 0x2e1   : > { %v5809_v62 = vpop.eup %5808  ;;  %5834 = vrcp.f32 %v2661_v39  ;;  %2942 = vst.msk [vmem:[#allocation3 + $0xa8] sm:$0xff] %vm2219_vm0, %v7328_v63  ;;  %v2772_v41 = vadd.f32 1.0, %v5807_v5  ;;  %v7340_v36 = vpop.f32.mrf.mxu1  ;;  %v2820_v13 = vadd.f32 %v7200_v15, %v2569_v11  ;;  %v2874_v5 = vsub.f32 1.0, %v7265_v18 }
 0x2e2   : > { %v5811_v30 = vpop.eup %5810  ;;  %v2834_v53 = vmul.f32 %v5809_v62, %v2818_v24  ;;  %5836 = vtanh.f32 %v2849_v55  ;;  %v2875_v24 = vsub.f32 1.0, %v7274_v29 }
 0x2e3   : > { %v5813_v35 = vpop.eup %5812  ;;  %5838 = vrcp.f32 %v2767_v45  ;;  %v2662_v44 = vadd.f32 1.0, %v5811_v30  ;;  %v2572_v31 = vpop.f32.mrf.mxu1  ;;  %v1365_v45 = vadd.f32 %v8477_v60, %v6863_v48 }
 0x2e4   : > { %v5815_v17 = vpop.eup %5814  ;;  %v2850_v57 = vadd.f32 %v2834_v53, %v1357_v37  ;;  %5840 = vtanh.f32 %v7302_v16  ;;  %v2821_v30 = vadd.f32 %v7200_v15, %v2572_v31  ;;  %v2907_v37 = vmul.f32 %v7274_v29, %v7021_v4 }
 0x2e5   : > { %v5817_v0 = vpop.eup %5816  ;;  %5842 = vrcp.f32 %v2662_v44  ;;  %v2773_v59 = vadd.f32 1.0, %v5815_v17  ;;  %v2878_v4 = vsub.f32 1.0, %v7313_v51 }
 0x2e6   : > { %v5819_v34 = vpop.eup %5818  ;;  %v2663_v9 = vadd.f32 1.0, %v5817_v0  ;;  %5844 = vtanh.f32 %v2850_v57  ;;  %v8478_v57 = vld [vmem:[#allocation42_spill] sm:$0xff] }
 0x2e7   : > { %v5821_v40 = vpop.eup %5820  ;;  %v2835_v6 = vmul.f32 %v5819_v34, %v2819_v25  ;;  %5846 = vrcp.f32 %v2771_v14  ;;  %v2881_v14 = vsub.f32 1.0, %v5813_v35  ;;  %v1368_v0 = vadd.f32 %v8478_v57, %v6863_v48 }
 0x2e8   : > { %v7344_v20 = vpop.eup %5822  ;;  %5848 = vrcp.f32 %v2663_v9  ;;  %v2896_v16 = vmul.f32 %v5821_v40, %v2880_v26  ;;  %v2822_v26 = vadd.f32 %v7200_v15, %v7324_v12  ;;  %v8479_v12 = vld [vmem:[#allocation46_spill] sm:$0xff] }
 0x2e9   : > { %v5825_v56 = vpop.eup %5824  ;;  %v2851_v47 = vadd.f32 %v2835_v6, %v1360_v23  ;;  %5850 = vtanh.f32 %v7311_v33  ;;  %v2906_v33 = vmul.f32 %v7265_v18, %v7003_v19  ;;  %v2882_v42 = vsub.f32 1.0, %v7344_v20 }
 0x2ea   : > { %v5827_v58 = vpop.eup %5826  ;;  %5852 = vrcp.f32 %v2772_v41  ;;  %v2928_v32 = vadd.f32 %v2912_v8, %v2896_v16  ;;  %v2774_v11 = vadd.f32 1.0, %v5825_v56  ;;  %v2913_v41 = vmul.f32 %v5813_v35, %v7102_v2 }
 0x2eb   : > { %v5829_v10 = vpop.eup %5828  ;;  %v2836_v39 = vmul.f32 %v5827_v58, %v2820_v13  ;;  %5854 = vtanh.f32 %v2851_v47  ;;  %v2910_v23 = vmul.f32 %v7313_v51, %v7060_v52  ;;  %v1373_v13 = vadd.f32 %v8479_v12, %v6863_v48 }
 0x2ec   : > { %v5831_v49 = vpop.eup %5830  ;;  %2985 = vrot.lane.b32.xlu0 %v2928_v32, %s6028_s20  ;;  %2945 = vst.msk [vmem:[#allocation3 + $0xc0] sm:$0xff] %vm2219_vm0, %v2928_v32  ;;  %5856 = vrcp.f32 %v2773_v59  ;;  %v2775_v35 = vadd.f32 1.0, %v5829_v10  ;;  %v2823_v59 = vadd.f32 %v7200_v15, %v7340_v36  ;;  %v2914_v31 = vmul.f32 %v7344_v20, %v7118_v27 }
 0x2ed   : > { %v5833_v55 = vpop.eup %5832  ;;  %v2852_v62 = vadd.f32 %v2836_v39, %v1365_v45  ;;  %v2890_v21 = vmul.f32 %v5831_v49, %v2874_v5  ;;  %v8480_v5 = vld [vmem:[#allocation49_spill] sm:$0xff] }
 0x2ee   : > { %v5835_v53 = vpop.eup %5834  ;;  %v2891_v44 = vmul.f32 %v5833_v55, %v2875_v24  ;;  %v1376_v49 = vadd.f32 %v8480_v5, %v6863_v48 }
 0x2ef   : > { %v5837_v17 = vpop.eup %5836  ;;  %5858 = vtanh.f32 %v2852_v62  ;;  %v2837_v19 = vmul.f32 %v5835_v53, %v2821_v30  ;;  %v7362_v18 = vadd.f32 %v2906_v33, %v2890_v21 }
 0x2f0   : > { %v5839_v25 = vpop.eup %5838  ;;  %v2897_v34 = vmul.f32 %v5837_v17, %v2881_v14  ;;  %v7365_v9 = vadd.f32 %v2907_v37, %v2891_v44  ;;  %5860 = vrcp.f32 %v2774_v11 }
 0x2f1   : > { %v5841_v29 = vpop.eup %5840  ;;  %v2853_v40 = vadd.f32 %v2837_v19, %v1368_v0  ;;  %2939 = vst.msk [vmem:[#allocation3 + $0x90] sm:$0xff] %vm2219_vm0, %v7362_v18  ;;  %v2879_v45 = vsub.f32 1.0, %v5839_v25  ;;  %v2911_v20 = vmul.f32 %v5839_v25, %v7077_v7 }
 0x2f2   : > { %v5843_v6 = vpop.eup %5842  ;;  %v2929_v16 = vadd.f32 %v2913_v41, %v2897_v34  ;;  %2940 = vst.msk [vmem:[#allocation3 + $0x98] sm:$0xff] %vm2219_vm0, %v7365_v9  ;;  %v2894_v8 = vmul.f32 %v5841_v29, %v2878_v4 }
 0x2f3   : > { %v5845_v56 = vpop.eup %5844  ;;  %v2838_v47 = vmul.f32 %v5843_v6, %v2822_v26  ;;  %5862 = vtanh.f32 %v2853_v40 }
 0x2f4   : > { %v5847_v58 = vpop.eup %5846  ;;  %2987 = vrot.lane.b32.xlu0 %v2929_v16, %s6028_s20  ;;  %2946 = vst.msk [vmem:[#allocation3 + $0xc8] sm:$0xff] %vm2219_vm0, %v2929_v16  ;;  %v2898_v51 = vmul.f32 %v5845_v56, %v2882_v42  ;;  %v7385_v32 = vadd.f32 %v2910_v23, %v2894_v8  ;;  %5864 = vrcp.f32 %v2775_v35 }
 0x2f5   : > { %v5849_v10 = vpop.eup %5848  ;;  %v2854_v60 = vadd.f32 %v2838_v47, %v1373_v13  ;;  %v2883_v24 = vsub.f32 1.0, %v5847_v58  ;;  %v2915_v21 = vmul.f32 %v5847_v58, %v7122_v50  ;;  %v5548_v13 = vld [vmem:[%s8334_s5 + $0x8] sm:$0xff]  }
 0x2f6   : > { %v5851_v39 = vpop.eup %5850  ;;  %v2839_v33 = vmul.f32 %v5849_v10, %v2823_v59  ;;  %v2930_v15 = vadd.f32 %v2914_v31, %v2898_v51  ;;  %2943 = vst.msk [vmem:[#allocation3 + $0xb0] sm:$0xff] %vm2219_vm0, %v7385_v32  ;;  %v5549_v59 = vld [vmem:[%s8334_s5] sm:$0xff]  }
 0x2f7   : > { %v5853_v36 = vpop.eup %5852  ;;  %5866 = vtanh.f32 %v2854_v60  ;;  %v2895_v55 = vmul.f32 %v5851_v39, %v2879_v45 }
 0x2f8   : > { %v5855_v62 = vpop.eup %5854  ;;  %2264 = vrot.lane.b32.xlu0 %v7060_v52, %s6028_s20  ;;  %2989 = vrot.lane.b32.xlu1 %v2930_v15, %s6028_s20  ;;  %2947 = vst.msk [vmem:[#allocation3 + $0xd0] sm:$0xff] %vm2219_vm0, %v2930_v15  ;;  %v2855_v48 = vadd.f32 %v2839_v33, %v1376_v49  ;;  %v2884_v14 = vsub.f32 1.0, %v5853_v36  ;;  %v2916_v44 = vmul.f32 %v5853_v36, %v7128_v61 }
 0x2f9   : > { %v2899_v30 = vmul.f32 %v5855_v62, %v2883_v24  ;;  %v2927_v37 = vadd.f32 %v2911_v20, %v2895_v55  ;;  %v5857_v53 = vpop.eup %5856 }
 0x2fa   : > { %5868 = vtanh.f32 %v2855_v48  ;;  %v2885_v0 = vsub.f32 1.0, %v5857_v53  ;;  %v2917_v34 = vmul.f32 %v5857_v53, %v7133_v28 }
 0x2fb   : > { %v2931_v11 = vadd.f32 %v2915_v21, %v2899_v30  ;;  %2944 = vst.msk [vmem:[#allocation3 + $0xb8] sm:$0xff] %vm2219_vm0, %v2927_v37 }
 0x2fc   : > { %v5859_v7 = vpop.eup %5858 }
 0x2fd   : > { %2991 = vrot.lane.b32.xlu1 %v2931_v11, %s6028_s20  ;;  %2948 = vst.msk [vmem:[#allocation3 + $0xd8] sm:$0xff] %vm2219_vm0, %v2931_v11  ;;  %v2900_v52 = vmul.f32 %v5859_v7, %v2884_v14  ;;  %v5861_v17 = vpop.eup %5860 }
 0x2fe   : > { %v2886_v29 = vsub.f32 1.0, %v5861_v17  ;;  %v2918_v42 = vmul.f32 %v5861_v17, %v7139_v3 }
 0x2ff   : > { %v2932_v57 = vadd.f32 %v2916_v44, %v2900_v52 }
 0x300   : > { %v5863_v19 = vpop.eup %5862 }
 0x301   : > { %2993 = vrot.lane.b32.xlu0 %v2932_v57, %s6028_s20  ;;  %2949 = vst.msk [vmem:[#allocation3 + $0xe0] sm:$0xff] %vm2219_vm0, %v2932_v57  ;;  %v2901_v25 = vmul.f32 %v5863_v19, %v2885_v0  ;;  %v5865_v41 = vpop.eup %5864 }
 0x302   : > { %v2887_v23 = vsub.f32 1.0, %v5865_v41  ;;  %v2919_v8 = vmul.f32 %v5865_v41, %v7144_v54 }
 0x303   : > { %v2933_v4 = vadd.f32 %v2917_v34, %v2901_v25 }
 0x304   : > { %v5867_v26 = vpop.eup %5866 }
 0x305   : > { %2995 = vrot.lane.b32.xlu1 %v2933_v4, %s6028_s20  ;;  %2950 = vst.msk [vmem:[#allocation3 + $0xe8] sm:$0xff] %vm2219_vm0, %v2933_v4  ;;  %v2902_v40 = vmul.f32 %v5867_v26, %v2886_v29 }
 0x307   : > { %v5869_v6 = vpop.eup %5868  ;;  %v2934_v35 = vadd.f32 %v2918_v42, %v2902_v40 }
 0x308   : > { %v2903_v16 = vmul.f32 %v5869_v6, %v2887_v23 }
 0x309   : > { %2997 = vrot.lane.b32.xlu0 %v2934_v35, %s6028_s20  ;;  %2951 = vst.msk [vmem:[#allocation3 + $0xf0] sm:$0xff] %vm2219_vm0, %v2934_v35 }
 0x30a   : > { %v2935_v56 = vadd.f32 %v2919_v8, %v2903_v16 }
 0x30c   : > { %2999 = vrot.lane.b32.xlu1 %v2935_v56, %s6028_s20  ;;  %2952 = vst.msk [vmem:[#allocation3 + $0xf8] sm:$0xff] %vm2219_vm0, %v2935_v56 }
 0x30d   : > { %2969 = vrot.lane.b32.xlu0 %v7271_v1, %s6028_s20  ;;  %v3086_v1 = vld [vmem:[#allocation4 + $0xa8] sm:$0xff] }
 0x310   : > { %2971 = vrot.lane.b32.xlu1 %v7287_v43, %s6028_s20  ;;  %v5545_v43 = vld [vmem:[%s8334_s5 + $0x20] sm:$0xff]  }
 0x311   : > { %2973 = vrot.lane.b32.xlu0 %v7362_v18, %s6028_s20 }
 0x314   : > { %2975 = vrot.lane.b32.xlu1 %v7365_v9, %s6028_s20  ;;  %v5547_v9 = vld [vmem:[%s8334_s5 + $0x10] sm:$0xff]  }
 0x315   : > { %2268 = vrot.lane.b32.xlu0 %v7093_v38, %s6028_s20  ;;  %v3081_v38 = vld [vmem:[#allocation4 + $0x80] sm:$0xff] }
 0x318   : > { %2270 = vrot.lane.b32.xlu1 %v7102_v2, %s6028_s20  ;;  %v3082_v2 = vld [vmem:[#allocation4 + $0x88] sm:$0xff] }
 0x319   : > { %2272 = vrot.lane.b32.xlu0 %v7118_v27, %s6028_s20  ;;  %v5542_v27 = vld [vmem:[%s8334_s5 + $0x38] sm:$0xff]  }
 0x31a   : > { %5306 = vmatprep.subr.bf16.mxu0 %v5542_v27  ;;  %5354 = vmatprep.subr.bf16.mxu1 %v5542_v27 }
 0x31b   : > { %5307 = vmatpush3.bf16.msra.mxu0 %v5542_v27  ;;  %5362 = vmatpush3.bf16.msra.mxu1 %v5542_v27 }
 0x31c   : > { %2274 = vrot.lane.b32.xlu1 %v7122_v50, %s6028_s20  ;;  %v3083_v50 = vld [vmem:[#allocation4 + $0x90] sm:$0xff] }
 0x31d   : > { %2977 = vrot.lane.b32.xlu0 %v7316_v22, %s6028_s20  ;;  %v3088_v22 = vld [vmem:[#allocation4 + $0xb8] sm:$0xff] }
 0x320   : > { %2979 = vrot.lane.b32.xlu1 %v7328_v63, %s6028_s20  ;;  %v5546_v63 = vld [vmem:[%s8334_s5 + $0x18] sm:$0xff]  }
 0x321   : > { %2981 = vrot.lane.b32.xlu0 %v7385_v32, %s6028_s20 }
 0x324   : > { %2983 = vrot.lane.b32.xlu1 %v2927_v37, %s6028_s20 }
 0x325   : > { %2276 = vrot.lane.b32.xlu0 %v7128_v61, %s6028_s20  ;;  %v5543_v61 = vld [vmem:[%s8334_s5 + $0x30] sm:$0xff]  }
 0x326   : > { %5308 = vmatprep.subr.bf16.mxu0 %v5543_v61  ;;  %5355 = vmatprep.subr.bf16.mxu1 %v5543_v61 }
 0x327   : > { %5309 = vmatpush3.bf16.msra.mxu0 %v5543_v61  ;;  %5363 = vmatpush3.bf16.msra.mxu1 %v5543_v61 }
 0x328   : > { %2278 = vrot.lane.b32.xlu1 %v7133_v28, %s6028_s20  ;;  %v3084_v28 = vld [vmem:[#allocation4 + $0x98] sm:$0xff] }
 0x329   : > { %2280 = vrot.lane.b32.xlu0 %v7139_v3, %s6028_s20  ;;  %v3085_v3 = vld [vmem:[#allocation4 + $0xa0] sm:$0xff] }
 0x32c   : > { %2282 = vrot.lane.b32.xlu1 %v7144_v54, %s6028_s20  ;;  %v5544_v54 = vld [vmem:[%s8334_s5 + $0x28] sm:$0xff]  }
 0x32d   : > { %3161 = vrot.lane.b32.xlu0 %v3081_v38, %s6028_s20  ;;  %5310 = vmatprep.subr.bf16.mxu0 %v5544_v54 }
 0x32e   : > { %5356 = vmatprep.subr.bf16.mxu1 %v5544_v54  ;;  %5311 = vmatpush3.bf16.msra.mxu0 %v5544_v54 }
 0x32f   : > { %5364 = vmatpush3.bf16.msra.mxu1 %v5544_v54  ;;  %5312 = vmatprep.subr.bf16.mxu0 %v5545_v43 }
 0x330   : > { %3163 = vrot.lane.b32.xlu1 %v3082_v2, %s6028_s20  ;;  %5357 = vmatprep.subr.bf16.mxu1 %v5545_v43 }
 0x331   : > { %3165 = vrot.lane.b32.xlu0 %v3083_v50, %s6028_s20 }
 0x332   : > { %5313 = vmatpush3.bf16.msra.mxu0 %v5545_v43 }
 0x333   : > { %5365 = vmatpush3.bf16.msra.mxu1 %v5545_v43  ;;  %5314 = vmatprep.subr.bf16.mxu0 %v5546_v63 }
 0x334   : > { %3167 = vrot.lane.b32.xlu1 %v3084_v28, %s6028_s20  ;;  %5358 = vmatprep.subr.bf16.mxu1 %v5546_v63 }
 0x335   : > { %3169 = vrot.lane.b32.xlu0 %v3085_v3, %s6028_s20 }
 0x336   : > { %5315 = vmatpush3.bf16.msra.mxu0 %v5546_v63 }
 0x337   : > { %5366 = vmatpush3.bf16.msra.mxu1 %v5546_v63  ;;  %5316 = vmatprep.subr.bf16.mxu0 %v5547_v9  ;;  %v3042_v63 = vld [vmem:[#allocation3 + $0x48] sm:$0xff] }
 0x338   : > { %3171 = vrot.lane.b32.xlu1 %v3086_v1, %s6028_s20  ;;  %5359 = vmatprep.subr.bf16.mxu1 %v5547_v9 }
 0x33a   : > { %5317 = vmatpush3.bf16.msra.mxu0 %v5547_v9 }
 0x33b   : > { %5367 = vmatpush3.bf16.msra.mxu1 %v5547_v9  ;;  %5318 = vmatprep.subr.bf16.mxu0 %v5548_v13 }
 0x33c   : > { %3175 = vrot.lane.b32.xlu1 %v3088_v22, %s6028_s20  ;;  %5360 = vmatprep.subr.bf16.mxu1 %v5548_v13 }
 0x33e   : > { %5319 = vmatpush3.bf16.msra.mxu0 %v5548_v13 }
 0x33f   : > { %5368 = vmatpush3.bf16.msra.mxu1 %v5548_v13  ;;  %5320 = vmatprep.subr.bf16.mxu0 %v5549_v59 }
 0x340   : > { %5361 = vmatprep.subr.bf16.mxu1 %v5549_v59 }
 0x342   : > { %5321 = vmatpush3.bf16.msra.mxu0 %v5549_v59 }
 0x343   : > { %5369 = vmatpush3.bf16.msra.mxu1 %v5549_v59  ;;  %v3044_v59 = vld [vmem:[#allocation3 + $0x58] sm:$0xff] }
 0x35e   : > { %v2986_v18 = vpop.permute.xlu0 %2985 }
 0x35f   : > { %3025 = vst.msk [vmem:[#allocation4 + $0x40] sm:$0xff] %vm2219_vm0, %v2986_v18  ;;  %v3041_v18 = vld [vmem:[#allocation3 + $0x40] sm:$0xff] }
 0x366   : > { %v2988_v12 = vpop.permute.xlu0 %2987  ;;  %v3073_v60 = vld [vmem:[#allocation4 + $0x40] sm:$0xff] }
 0x367   : > { %3026 = vst.msk [vmem:[#allocation4 + $0x48] sm:$0xff] %vm2219_vm0, %v2988_v12 }
 0x36a   : > { %v2265_v47 = vpop.permute.xlu0 %2264  ;;  %v2990_v58 = vpop.permute.xlu1 %2989 }
 0x36b   : > { %2307 = vst.msk [vmem:[#allocation4 + $0xb0] sm:$0xff] %vm2219_vm0, %v2265_v47  ;;  %3027 = vst.msk [vmem:[#allocation4 + $0x50] sm:$0xff] %vm2219_vm0, %v2990_v58 }
 0x36e   : > { %v3074_v51 = vld [vmem:[#allocation4 + $0x48] sm:$0xff] }
 0x36f   : > { %v2992_v31 = vpop.permute.xlu1 %2991  ;;  %3147 = vrot.lane.b32.xlu1 %v3074_v51, %s6028_s20  ;;  %v3043_v51 = vld [vmem:[#allocation3 + $0x50] sm:$0xff] }
 0x370   : > { %3028 = vst.msk [vmem:[#allocation4 + $0x58] sm:$0xff] %vm2219_vm0, %v2992_v31 }
 0x372   : > { %v3087_v32 = vld [vmem:[#allocation4 + $0xb0] sm:$0xff] }
 0x373   : > { %v2994_v10 = vpop.permute.xlu0 %2993  ;;  %3173 = vrot.lane.b32.xlu0 %v3087_v32, %s6028_s20  ;;  %v3075_v5 = vld [vmem:[#allocation4 + $0x50] sm:$0xff] }
 0x374   : > { %3029 = vst.msk [vmem:[#allocation4 + $0x60] sm:$0xff] %vm2219_vm0, %v2994_v10 }
 0x377   : > { %v2996_v45 = vpop.permute.xlu1 %2995  ;;  %3145 = vrot.lane.b32.xlu0 %v3073_v60, %s6028_s20  ;;  %v3076_v39 = vld [vmem:[#allocation4 + $0x58] sm:$0xff] }
 0x378   : > { %3030 = vst.msk [vmem:[#allocation4 + $0x68] sm:$0xff] %vm2219_vm0, %v2996_v45  ;;  %3151 = vrot.lane.b32.xlu1 %v3076_v39, %s6028_s20  ;;  %v3045_v45 = vld [vmem:[#allocation3 + $0x60] sm:$0xff] }
 0x37b   : > { %v2998_v49 = vpop.permute.xlu0 %2997  ;;  %3149 = vrot.lane.b32.xlu0 %v3075_v5, %s6028_s20  ;;  %v3077_v15 = vld [vmem:[#allocation4 + $0x60] sm:$0xff] }
 0x37c   : > { %3031 = vst.msk [vmem:[#allocation4 + $0x70] sm:$0xff] %vm2219_vm0, %v2998_v49  ;;  %v3046_v49 = vld [vmem:[#allocation3 + $0x68] sm:$0xff] }
 0x37e   : > { %v3000_v33 = vpop.permute.xlu1 %2999 }
 0x37f   : > { %v2970_v36 = vpop.permute.xlu0 %2969  ;;  %3032 = vst.msk [vmem:[#allocation4 + $0x78] sm:$0xff] %vm2219_vm0, %v3000_v33  ;;  %3153 = vrot.lane.b32.xlu0 %v3077_v15, %s6028_s20  ;;  %v3078_v24 = vld [vmem:[#allocation4 + $0x68] sm:$0xff] }
 0x380   : > { %3017 = vst.msk [vmem:[#allocation4] sm:$0xff] %vm2219_vm0, %v2970_v36  ;;  %3155 = vrot.lane.b32.xlu1 %v3078_v24, %s6028_s20 }
 0x382   : > { %v2972_v55 = vpop.permute.xlu1 %2971 }
 0x383   : > { %v2974_v20 = vpop.permute.xlu0 %2973  ;;  %3018 = vst.msk [vmem:[#allocation4 + $0x8] sm:$0xff] %vm2219_vm0, %v2972_v55  ;;  %v3079_v62 = vld [vmem:[#allocation4 + $0x70] sm:$0xff]  ;;  %v3050_v55 = vld [vmem:[#allocation3 + $0x88] sm:$0xff] }
 0x384   : > { %3019 = vst.msk [vmem:[#allocation4 + $0x10] sm:$0xff] %vm2219_vm0, %v2974_v20  ;;  %3157 = vrot.lane.b32.xlu0 %v3079_v62, %s6028_s20  ;;  %v3047_v62 = vld [vmem:[#allocation3 + $0x70] sm:$0xff] }
 0x386   : > { %v2976_v48 = vpop.permute.xlu1 %2975  ;;  %v3080_v30 = vld [vmem:[#allocation4 + $0x78] sm:$0xff] }
 0x387   : > { %v2269_v21 = vpop.permute.xlu0 %2268  ;;  %3020 = vst.msk [vmem:[#allocation4 + $0x18] sm:$0xff] %vm2219_vm0, %v2976_v48  ;;  %v3065_v37 = vld [vmem:[#allocation4] sm:$0xff]  ;;  %3159 = vrot.lane.b32.xlu1 %v3080_v30, %s6028_s20  ;;  %v3048_v48 = vld [vmem:[#allocation3 + $0x78] sm:$0xff] }
 0x388   : > { %2309 = vst.msk [vmem:[#allocation4 + $0xc0] sm:$0xff] %vm2219_vm0, %v2269_v21  ;;  %3129 = vrot.lane.b32.xlu0 %v3065_v37, %s6028_s20  ;;  %v3049_v21 = vld [vmem:[#allocation3 + $0x80] sm:$0xff] }
 0x38a   : > { %v2271_v53 = vpop.permute.xlu1 %2270  ;;  %v3066_v11 = vld [vmem:[#allocation4 + $0x8] sm:$0xff] }
 0x38b   : > { %v2273_v14 = vpop.permute.xlu0 %2272  ;;  %2310 = vst.msk [vmem:[#allocation4 + $0xc8] sm:$0xff] %vm2219_vm0, %v2271_v53  ;;  %v3067_v7 = vld [vmem:[#allocation4 + $0x10] sm:$0xff]  ;;  %3131 = vrot.lane.b32.xlu1 %v3066_v11, %s6028_s20 }
 0x38c   : > { %2311 = vst.msk [vmem:[#allocation4 + $0xd0] sm:$0xff] %vm2219_vm0, %v2273_v14  ;;  %3133 = vrot.lane.b32.xlu0 %v3067_v7, %s6028_s20 }
 0x38e   : > { %v2275_v52 = vpop.permute.xlu1 %2274  ;;  %v3068_v44 = vld [vmem:[#allocation4 + $0x18] sm:$0xff] }
 0x38f   : > { %v2978_v17 = vpop.permute.xlu0 %2977  ;;  %2312 = vst.msk [vmem:[#allocation4 + $0xd8] sm:$0xff] %vm2219_vm0, %v2275_v52  ;;  %v3089_v57 = vld [vmem:[#allocation4 + $0xc0] sm:$0xff]  ;;  %3135 = vrot.lane.b32.xlu1 %v3068_v44, %s6028_s20 }
 0x390   : > { %3021 = vst.msk [vmem:[#allocation4 + $0x20] sm:$0xff] %vm2219_vm0, %v2978_v17  ;;  %3177 = vrot.lane.b32.xlu0 %v3089_v57, %s6028_s20  ;;  %v3033_v44 = vld [vmem:[#allocation3] sm:$0xff]  ;;  %v3034_v17 = vld [vmem:[#allocation3 + $0x8] sm:$0xff] }
 0x392   : > { %v2980_v0 = vpop.permute.xlu1 %2979  ;;  %v3090_v19 = vld [vmem:[#allocation4 + $0xc8] sm:$0xff] }
 0x393   : > { %v2982_v25 = vpop.permute.xlu0 %2981  ;;  %3022 = vst.msk [vmem:[#allocation4 + $0x28] sm:$0xff] %vm2219_vm0, %v2980_v0  ;;  %v3091_v34 = vld [vmem:[#allocation4 + $0xd0] sm:$0xff]  ;;  %3179 = vrot.lane.b32.xlu1 %v3090_v19, %s6028_s20 }
 0x394   : > { %3023 = vst.msk [vmem:[#allocation4 + $0x30] sm:$0xff] %vm2219_vm0, %v2982_v25  ;;  %3181 = vrot.lane.b32.xlu0 %v3091_v34, %s6028_s20  ;;  %v3052_v34 = vld [vmem:[#allocation3 + $0x98] sm:$0xff] }
 0x396   : > { %v2984_v41 = vpop.permute.xlu1 %2983  ;;  %v3092_v4 = vld [vmem:[#allocation4 + $0xd8] sm:$0xff] }
 0x397   : > { %v2277_v29 = vpop.permute.xlu0 %2276  ;;  %3024 = vst.msk [vmem:[#allocation4 + $0x38] sm:$0xff] %vm2219_vm0, %v2984_v41  ;;  %v3069_v26 = vld [vmem:[#allocation4 + $0x20] sm:$0xff]  ;;  %3183 = vrot.lane.b32.xlu1 %v3092_v4, %s6028_s20 }
 0x398   : > { %2313 = vst.msk [vmem:[#allocation4 + $0xe0] sm:$0xff] %vm2219_vm0, %v2277_v29  ;;  %3137 = vrot.lane.b32.xlu0 %v3069_v26, %s6028_s20  ;;  %v3054_v29 = vld [vmem:[#allocation3 + $0xa8] sm:$0xff]  ;;  %v3051_v26 = vld [vmem:[#allocation3 + $0x90] sm:$0xff] }
 0x39a   : > { %v2279_v40 = vpop.permute.xlu1 %2278  ;;  %v3070_v42 = vld [vmem:[#allocation4 + $0x28] sm:$0xff] }
 0x39b   : > { %v2281_v23 = vpop.permute.xlu0 %2280  ;;  %2314 = vst.msk [vmem:[#allocation4 + $0xe8] sm:$0xff] %vm2219_vm0, %v2279_v40  ;;  %v3071_v6 = vld [vmem:[#allocation4 + $0x30] sm:$0xff]  ;;  %3139 = vrot.lane.b32.xlu1 %v3070_v42, %s6028_s20 }
 0x39c   : > { %2315 = vst.msk [vmem:[#allocation4 + $0xf0] sm:$0xff] %vm2219_vm0, %v2281_v23  ;;  %3141 = vrot.lane.b32.xlu0 %v3071_v6, %s6028_s20  ;;  %v3035_v42 = vld [vmem:[#allocation3 + $0x10] sm:$0xff]  ;;  %v3036_v23 = vld [vmem:[#allocation3 + $0x18] sm:$0xff] }
 0x39e   : > { %v2283_v35 = vpop.permute.xlu1 %2282  ;;  %v3072_v16 = vld [vmem:[#allocation4 + $0x38] sm:$0xff] }
 0x39f   : > { %2316 = vst.msk [vmem:[#allocation4 + $0xf8] sm:$0xff] %vm2219_vm0, %v2283_v35  ;;  %v3093_v8 = vld [vmem:[#allocation4 + $0xe0] sm:$0xff]  ;;  %3143 = vrot.lane.b32.xlu1 %v3072_v16, %s6028_s20  ;;  %v3162_v50 = vpop.permute.xlu0 %3161 }
 0x3a0   : > { %3185 = vrot.lane.b32.xlu0 %v3093_v8, %s6028_s20  ;;  %v7564_v14 = vsel %vm2219_vm0, %v3049_v21, %v3162_v50  ;;  %v3053_v16 = vld [vmem:[#allocation3 + $0xa0] sm:$0xff]  ;;  %v3040_v21 = vld [vmem:[#allocation3 + $0x38] sm:$0xff] }
 0x3a1   : > { %8490 = vst [vmem:[#allocation24_spill] sm:$0xff] %v7564_v14 }
 0x3a2   : > { %v3094_v56 = vld [vmem:[#allocation4 + $0xe8] sm:$0xff]  ;;  %v3164_v27 = vpop.permute.xlu1 %3163 }
 0x3a3   : > { %v3095_v38 = vld [vmem:[#allocation4 + $0xf0] sm:$0xff]  ;;  %3187 = vrot.lane.b32.xlu1 %v3094_v56, %s6028_s20  ;;  %v3166_v28 = vpop.permute.xlu0 %3165  ;;  %v7555_v20 = vsel %vm2219_vm0, %v3050_v55, %v3164_v27 }
 0x3a4   : > { %3189 = vrot.lane.b32.xlu0 %v3095_v38, %s6028_s20  ;;  %8487 = vst [vmem:[#allocation12_spill] sm:$0xff] %v7555_v20  ;;  %v3283_v52 = vpack.c.bf16 %v7555_v20, %v7564_v14  ;;  %v7585_v35 = vsel %vm2219_vm0, %v3051_v26, %v3166_v28 }
 0x3a5   : > { %8495 = vst [vmem:[#allocation32_spill] sm:$0xff] %v7585_v35 }
 0x3a6   : > { %v3096_v2 = vld [vmem:[#allocation4 + $0xf8] sm:$0xff]  ;;  %v3168_v61 = vpop.permute.xlu1 %3167 }
 0x3a7   : > { %3191 = vrot.lane.b32.xlu1 %v3096_v2, %s6028_s20  ;;  %v7524_v54 = vpop.permute.xlu0 %3169  ;;  %v7579_v4 = vsel %vm2219_vm0, %v3052_v34, %v3168_v61  ;;  %v3061_v34 = vld [vmem:[#allocation3 + $0xe0] sm:$0xff] }
 0x3a8   : > { %8493 = vst [vmem:[#allocation29_spill] sm:$0xff] %v7579_v4  ;;  %v7595_v2 = vsel %vm2219_vm0, %v3053_v16, %v7524_v54  ;;  %v3284_v27 = vpack.c.bf16 %v7579_v4, %v7585_v35  ;;  %v3058_v54 = vld [vmem:[#allocation3 + $0xc8] sm:$0xff]  ;;  %v3063_v16 = vld [vmem:[#allocation3 + $0xf0] sm:$0xff] }
 0x3a9   : > { %8498 = vst [vmem:[#allocation38_spill] sm:$0xff] %v7595_v2 }
 0x3aa   : > { %v3172_v3 = vpop.permute.xlu1 %3171 }
 0x3ab   : > { %v7582_v40 = vsel %vm2219_vm0, %v3054_v29, %v3172_v3 }
 0x3ac   : > { %8494 = vst [vmem:[#allocation30_spill] sm:$0xff] %v7582_v40  ;;  %v3285_v61 = vpack.c.bf16 %v7582_v40, %v7595_v2 }
 0x3ae   : > { %v7526_v1 = vpop.permute.xlu1 %3175 }
 0x3e1   : > { %v3148_v22 = vpop.permute.xlu1 %3147 }
 0x3e2   : > { %v7531_v12 = vsel %vm2219_vm0, %v3042_v63, %v3148_v22  ;;  %v3055_v22 = vld [vmem:[#allocation3 + $0xb0] sm:$0xff] }
 0x3e3   : > { %8481 = vst [vmem:[#allocation21_spill] sm:$0xff] %v7531_v12 }
 0x3e5   : > { %v7528_v43 = vpop.permute.xlu0 %3173 }
 0x3e6   : > { %v7605_v63 = vsel %vm2219_vm0, %v3055_v22, %v7528_v43 }
 0x3e7   : > { %8499 = vst [vmem:[#allocation36_spill] sm:$0xff] %v7605_v63 }
 0x3e9   : > { %v3146_v9 = vpop.permute.xlu0 %3145 }
 0x3ea   : > { %v7534_v13 = vsel %vm2219_vm0, %v3041_v18, %v3146_v9  ;;  %v3152_v58 = vpop.permute.xlu1 %3151  ;;  %v3056_v18 = vld [vmem:[#allocation3 + $0xb8] sm:$0xff] }
 0x3eb   : > { %8482 = vst [vmem:[#allocation8_spill] sm:$0xff] %v7534_v13  ;;  %v3279_v47 = vpack.c.bf16 %v7531_v12, %v7534_v13  ;;  %v7539_v32 = vsel %vm2219_vm0, %v3044_v59, %v3152_v58  ;;  %v7612_v58 = vsel %vm2219_vm0, %v3056_v18, %v7526_v1  ;;  %v3057_v59 = vld [vmem:[#allocation3 + $0xc0] sm:$0xff] }
 0x3ec   : > { %8483 = vst [vmem:[#allocation9_spill] sm:$0xff] %v7539_v32  ;;  %8501 = vst [vmem:[#allocation40_spill] sm:$0xff] %v7612_v58 }
 0x3ed   : > { %v3150_v31 = vpop.permute.xlu0 %3149  ;;  %5330 = vmatprep.mubr.bf16.mxu1 %v3279_v47 }
 0x3ee   : > { %v7542_v10 = vsel %vm2219_vm0, %v3043_v51, %v3150_v31  ;;  %v3286_v31 = vpack.c.bf16 %v7612_v58, %v7605_v63 }
 0x3ef   : > { %8484 = vst [vmem:[#allocation7_spill] sm:$0xff] %v7542_v10  ;;  %v3280_v60 = vpack.c.bf16 %v7539_v32, %v7542_v10 }
 0x3f1   : > { %v3154_v39 = vpop.permute.xlu0 %3153  ;;  %5331 = vmatmul.mubr.bf16.vlgmr.msra.gmra.mxu1 %v3280_v60 }
 0x3f2   : > { %v7547_v5 = vsel %vm2219_vm0, %v3045_v45, %v3154_v39  ;;  %v3156_v33 = vpop.permute.xlu1 %3155  ;;  %v3037_v45 = vld [vmem:[#allocation3 + $0x20] sm:$0xff]  ;;  %v3038_v39 = vld [vmem:[#allocation3 + $0x28] sm:$0xff] }
 0x3f3   : > { %8485 = vst [vmem:[#allocation10_spill] sm:$0xff] %v7547_v5  ;;  %v7550_v15 = vsel %vm2219_vm0, %v3046_v49, %v3156_v33 }
 0x3f4   : > { %8486 = vst [vmem:[#allocation11_spill] sm:$0xff] %v7550_v15  ;;  %v3281_v36 = vpack.c.bf16 %v7550_v15, %v7547_v5 }
 0x3f6   : > { %v3158_v24 = vpop.permute.xlu0 %3157  ;;  %5334 = vmatprep.mubr.bf16.mxu1 %v3281_v36 }
 0x3f7   : > { %v7558_v37 = vsel %vm2219_vm0, %v3047_v62, %v3158_v24  ;;  %v3060_v24 = vld [vmem:[#allocation3 + $0xd8] sm:$0xff] }
 0x3f8   : > { %8488 = vst [vmem:[#allocation13_spill] sm:$0xff] %v7558_v37 }
 0x3f9   : > { %v3160_v30 = vpop.permute.xlu1 %3159 }
 0x3fa   : > { %v3130_v53 = vpop.permute.xlu0 %3129  ;;  %v7561_v11 = vsel %vm2219_vm0, %v3048_v48, %v3160_v30  ;;  %v3059_v48 = vld [vmem:[#allocation3 + $0xd0] sm:$0xff] }
 0x3fb   : > { %8489 = vst [vmem:[#allocation23_spill] sm:$0xff] %v7561_v11  ;;  %v3282_v7 = vpack.c.bf16 %v7561_v11, %v7558_v37  ;;  %v7571_v0 = vsel %vm2219_vm0, %v3033_v44, %v3130_v53  ;;  %v3039_v30 = vld [vmem:[#allocation3 + $0x30] sm:$0xff] }
 0x3fc   : > { %8491 = vst [vmem:[#allocation26_spill] sm:$0xff] %v7571_v0 }
 0x3fd   : > { %5335 = vmatmul.mubr.bf16.gmra.mxu1 %v3282_v7  ;;  %v3132_v57 = vpop.permute.xlu1 %3131 }
 0x3fe   : > { %v3134_v19 = vpop.permute.xlu0 %3133  ;;  %v7574_v25 = vsel %vm2219_vm0, %v3034_v17, %v3132_v57  ;;  %5338 = vmatprep.mubr.bf16.mxu1 %v3283_v52 }
 0x3ff   : > { %8492 = vst [vmem:[#allocation27_spill] sm:$0xff] %v7574_v25  ;;  %v3275_v41 = vpack.c.bf16 %v7574_v25, %v7571_v0  ;;  %v7588_v8 = vsel %vm2219_vm0, %v3035_v42, %v3134_v19 }
 0x400   : > { %8496 = vst [vmem:[#allocation33_spill] sm:$0xff] %v7588_v8 }
 0x401   : > { %v3136_v6 = vpop.permute.xlu1 %3135  ;;  %5322 = vmatprep.mubr.bf16.mxu0 %v3275_v41  ;;  %v3062_v41 = vld [vmem:[#allocation3 + $0xe8] sm:$0xff] }
 0x402   : > { %v3178_v56 = vpop.permute.xlu0 %3177  ;;  %v7591_v38 = vsel %vm2219_vm0, %v3036_v23, %v3136_v6 }
 0x403   : > { %8497 = vst [vmem:[#allocation35_spill] sm:$0xff] %v7591_v38  ;;  %v3276_v50 = vpack.c.bf16 %v7591_v38, %v7588_v8  ;;  %v7617_v60 = vsel %vm2219_vm0, %v3057_v59, %v3178_v56 }
 0x404   : > { %8502 = vst [vmem:[#allocation45_spill] sm:$0xff] %v7617_v60 }
 0x405   : > { %5339 = vmatmul.mubr.bf16.gmra.mxu1 %v3284_v27  ;;  %v3180_v28 = vpop.permute.xlu1 %3179  ;;  %5323 = vmatmul.mubr.bf16.vlgmr.msra.gmra.mxu0 %v3276_v50  ;;  %v3064_v27 = vld [vmem:[#allocation3 + $0xf8] sm:$0xff] }
 0x406   : > { %v3182_v3 = vpop.permute.xlu0 %3181  ;;  %5342 = vmatprep.mubr.bf16.mxu1 %v3285_v61  ;;  %v7608_v9 = vsel %vm2219_vm0, %v3058_v54, %v3180_v28 }
 0x407   : > { %8500 = vst [vmem:[#allocation43_spill] sm:$0xff] %v7608_v9  ;;  %v3287_v43 = vpack.c.bf16 %v7608_v9, %v7617_v60  ;;  %v7633_v7 = vsel %vm2219_vm0, %v3059_v48, %v3182_v3 }
 0x408   : > { %8506 = vst [vmem:[#allocation15_spill] sm:$0xff] %v7633_v7 }
 0x409   : > { %v3184_v47 = vpop.permute.xlu1 %3183 }
 0x40a   : > { %v3138_v51 = vpop.permute.xlu0 %3137  ;;  %v7630_v62 = vsel %vm2219_vm0, %v3060_v24, %v3184_v47 }
 0x40b   : > { %v7622_v33 = vsel %vm2219_vm0, %v3037_v45, %v3138_v51  ;;  %8505 = vst [vmem:[#allocation14_spill] sm:$0xff] %v7630_v62  ;;  %v3288_v57 = vpack.c.bf16 %v7630_v62, %v7633_v7 }
 0x40c   : > { %8503 = vst [vmem:[#allocation47_spill] sm:$0xff] %v7622_v33 }
 0x40d   : > { %5343 = vmatmul.mubr.bf16.gmra.mxu1 %v3286_v31  ;;  %v3140_v49 = vpop.permute.xlu1 %3139 }
 0x40e   : > { %v3142_v1 = vpop.permute.xlu0 %3141  ;;  %v7625_v36 = vsel %vm2219_vm0, %v3038_v39, %v3140_v49  ;;  %5346 = vmatprep.mubr.bf16.mxu1 %v3287_v43  ;;  %v7672_v43 = vld [vmem:[%s8335_s6] ss:$0 sm:$0xff] }
 0x40f   : > { %8504 = vst [vmem:[#allocation50_spill] sm:$0xff] %v7625_v36  ;;  %v3277_v55 = vpack.c.bf16 %v7625_v36, %v7622_v33  ;;  %v7636_v52 = vsel %vm2219_vm0, %v3039_v30, %v3142_v1 }
 0x410   : > { %8507 = vst [vmem:[#allocation16_spill] sm:$0xff] %v7636_v52 }
 0x411   : > { %v3144_v53 = vpop.permute.xlu1 %3143  ;;  %5326 = vmatprep.mubr.bf16.mxu0 %v3277_v55 }
 0x412   : > { %v3186_v44 = vpop.permute.xlu0 %3185  ;;  %v7639_v17 = vsel %vm2219_vm0, %v3040_v21, %v3144_v53 }
 0x413   : > { %8508 = vst [vmem:[#allocation17_spill] sm:$0xff] %v7639_v17  ;;  %v3278_v19 = vpack.c.bf16 %v7639_v17, %v7636_v52  ;;  %v7646_v26 = vsel %vm2219_vm0, %v3061_v34, %v3186_v44 }
 0x414   : > { %8509 = vst [vmem:[#allocation48_spill] sm:$0xff] %v7646_v26 }
 0x415   : > { %5347 = vmatmul.mubr.bf16.gmra.mxu1 %v3288_v57  ;;  %v3188_v29 = vpop.permute.xlu1 %3187  ;;  %5327 = vmatmul.mubr.bf16.gmra.mxu0 %v3278_v19 }
 0x416   : > { %v7649_v42 = vsel %vm2219_vm0, %v3062_v41, %v3188_v29  ;;  %v3190_v23 = vpop.permute.xlu0 %3189 }
 0x417   : > { %8510 = vst [vmem:[#allocation18_spill] sm:$0xff] %v7649_v42  ;;  %v3289_v6 = vpack.c.bf16 %v7649_v42, %v7646_v26  ;;  %v7654_v50 = vsel %vm2219_vm0, %v3063_v16, %v3190_v23 }
 0x418   : > { %8511 = vst [vmem:[#allocation19_spill] sm:$0xff] %v7654_v50 }
 0x419   : > { %5350 = vmatprep.mubr.bf16.mxu1 %v3289_v6  ;;  %v3192_v56 = vpop.permute.xlu1 %3191 }
 0x41a   : > { %v7657_v61 = vsel %vm2219_vm0, %v3064_v27, %v3192_v56  ;;  %v7699_v56 = vld [vmem:[%s8336_s7] ss:$0 sm:$0xff] }
 0x41b   : > { %8512 = vst [vmem:[#allocation51_spill] sm:$0xff] %v7657_v61  ;;  %v3290_v28 = vpack.c.bf16 %v7657_v61, %v7654_v50 }
 0x41d   : > { %5351 = vmatmul.mubr.bf16.gmra.mxu1 %v3290_v28 }
 0x4b1   : > { %v5332_v3 = vpop.f32.mrf.mxu1 }
 0x4b3   : > { %v3411_v22 = vpop.f32.mrf.mxu1 }
 0x4b5   : > { %v5333_v54 = vpop.f32.mrf.mxu1 }
 0x4b7   : > { %v3414_v18 = vpop.f32.mrf.mxu1 }
 0x4bd   : > { %v7661_v47 = vpop.f32.mrf.mxu1 }
 0x4bf   : > { %v7663_v59 = vpop.f32.mrf.mxu1 }
 0x4c1   : > { %v7665_v51 = vpop.f32.mrf.mxu1 }
 0x4c3   : > { %v7667_v31 = vpop.f32.mrf.mxu1 }
 0x4c5   : > { %v5324_v45 = vpop.f32.mrf.mxu0  ;;  %v7674_v39 = vpop.f32.mrf.mxu1 }
 0x4c6   : > { %v3388_v49 = vadd.f32 %v5324_v45, %v7672_v43 }
 0x4c7   : > { %v3379_v1 = vpop.f32.mrf.mxu0  ;;  %v7677_v24 = vpop.f32.mrf.mxu1 }
 0x4c8   : > { %5870 = vtanh.f32 %v3388_v49  ;;  %v3380_v55 = vadd.f32 %v7672_v43, %v3379_v1  ;;  %v3420_v49 = vadd.f32 %v5332_v3, %v7672_v43 }
 0x4c9   : > { %v5325_v48 = vpop.f32.mrf.mxu0  ;;  %v7680_v30 = vpop.f32.mrf.mxu1 }
 0x4ca   : > { %5872 = vtanh.f32 %v3380_v55  ;;  %v3391_v21 = vadd.f32 %v5325_v48, %v7672_v43 }
 0x4cb   : > { %v3382_v53 = vpop.f32.mrf.mxu0  ;;  %v7683_v44 = vpop.f32.mrf.mxu1 }
 0x4cc   : > { %v3383_v57 = vadd.f32 %v7672_v43, %v3382_v53  ;;  %5874 = vtanh.f32 %v3391_v21  ;;  %v3412_v21 = vadd.f32 %v7672_v43, %v3411_v22 }
 0x4cd   : > { %v7686_v19 = vpop.f32.mrf.mxu1 }
 0x4ce   : > { %5876 = vtanh.f32 %v3383_v57 }
 0x4cf   : > { %v7688_v34 = vpop.f32.mrf.mxu1 }
 0x4d1   : > { %v7690_v41 = vpop.f32.mrf.mxu1 }
 0x4d3   : > { %v7692_v29 = vpop.f32.mrf.mxu1 }
 0x4d5   : > { %v5871_v23 = vpop.eup %5870  ;;  %v5328_v6 = vpop.f32.mrf.mxu0 }
 0x4d6   : > { %v7694_v16 = vpop.f32.mrf.mxu1  ;;  %v3404_v27 = vadd.f32 %v5328_v6, %v7672_v43  ;;  %v3546_v28 = vmul.f32 %v5871_v23, %v7699_v56 }
 0x4d7   : > { %v5873_v45 = vpop.eup %5872  ;;  %v3395_v1 = vpop.f32.mrf.mxu0 }
 0x4d8   : > { %v7704_v55 = vpop.f32.mrf.mxu1  ;;  %5878 = vtanh.f32 %v3404_v27  ;;  %v3396_v48 = vadd.f32 %v7672_v43, %v3395_v1  ;;  %3580 = vadd.xlane.f32.xlu0 %v3546_v28  ;;  %v3544_v23 = vmul.f32 %v5873_v45, %v7699_v56  ;;  %v3423_v1 = vadd.f32 %v5333_v54, %v7672_v43 }
 0x4d9   : > { %v5329_v53 = vpop.f32.mrf.mxu0  ;;  %v5875_v50 = vpop.eup %5874 }
 0x4da   : > { %v7708_v57 = vpop.f32.mrf.mxu1  ;;  %5880 = vtanh.f32 %v3396_v48  ;;  %v3407_v6 = vadd.f32 %v5329_v53, %v7672_v43  ;;  %v3547_v45 = vmul.f32 %v5875_v50, %v7699_v56 }
 0x4db   : > { %v5877_v61 = vpop.eup %5876  ;;  %5882 = vtanh.f32 %v3420_v49  ;;  %v3398_v3 = vpop.f32.mrf.mxu0  ;;  %v3415_v49 = vadd.f32 %v7672_v43, %v3414_v18 }
 0x4dc   : > { %v3478_v26 = vpop.f32.mrf.mxu1  ;;  %5884 = vtanh.f32 %v3407_v6  ;;  %v3399_v27 = vadd.f32 %v7672_v43, %v3398_v3  ;;  %3576 = vadd.xlane.f32.xlu0 %v3544_v23  ;;  %v3545_v22 = vmul.f32 %v5877_v61, %v7699_v56  ;;  %v3436_v61 = vadd.f32 %v7661_v47, %v7672_v43 }
 0x4dd   : > { %v3479_v28 = vadd.f32 %v7672_v43, %v3478_v26  ;;  %5886 = vtanh.f32 %v3412_v21  ;;  %v3428_v3 = vadd.f32 %v7672_v43, %v7663_v59 }
 0x4de   : > { %v5352_v48 = vpop.f32.mrf.mxu1  ;;  %5888 = vtanh.f32 %v3399_v27  ;;  %3578 = vadd.xlane.f32.xlu1 %v3545_v22  ;;  %v3439_v27 = vadd.f32 %v7665_v51, %v7672_v43 }
 0x4df   : > { %v3500_v53 = vadd.f32 %v5352_v48, %v7672_v43  ;;  %5890 = vtanh.f32 %v3479_v28  ;;  %v3431_v48 = vadd.f32 %v7672_v43, %v7667_v31 }
 0x4e0   : > { %v3491_v6 = vpop.f32.mrf.mxu1  ;;  %3582 = vadd.xlane.f32.xlu0 %v3547_v45  ;;  %v3452_v45 = vadd.f32 %v7674_v39, %v7672_v43  ;;  %v3455_v39 = vadd.f32 %v7680_v30, %v7672_v43 }
 0x4e1   : > { %5892 = vtanh.f32 %v3500_v53  ;;  %v3492_v26 = vadd.f32 %v7672_v43, %v3491_v6 }
 0x4e2   : > { %5894 = vtanh.f32 %v3423_v1  ;;  %v5353_v54 = vpop.f32.mrf.mxu1 }
 0x4e3   : > { %5896 = vtanh.f32 %v3492_v26  ;;  %v3503_v21 = vadd.f32 %v5353_v54, %v7672_v43 }
 0x4e4   : > { %5898 = vtanh.f32 %v3415_v49  ;;  %v3494_v23 = vpop.f32.mrf.mxu1 }
 0x4e5   : > { %5900 = vtanh.f32 %v3503_v21  ;;  %v3495_v50 = vadd.f32 %v7672_v43, %v3494_v23  ;;  %v5879_v18 = vpop.eup %5878 }
 0x4e6   : > { %5902 = vtanh.f32 %v3436_v61  ;;  %v3550_v47 = vmul.f32 %v5879_v18, %v7699_v56  ;;  %v3444_v61 = vadd.f32 %v7672_v43, %v7677_v24 }
 0x4e7   : > { %5904 = vtanh.f32 %v3495_v50  ;;  %v5881_v28 = vpop.eup %5880 }
 0x4e8   : > { %v5883_v22 = vpop.eup %5882  ;;  %3588 = vadd.xlane.f32.xlu1 %v3550_v47  ;;  %5906 = vtanh.f32 %v3428_v3  ;;  %v3548_v59 = vmul.f32 %v5881_v28, %v7699_v56  ;;  %v3447_v47 = vadd.f32 %v7672_v43, %v7683_v44  ;;  %v3460_v44 = vadd.f32 %v7672_v43, %v7688_v34 }
 0x4e9   : > { %v5885_v1 = vpop.eup %5884  ;;  %5908 = vtanh.f32 %v3439_v27  ;;  %v3554_v31 = vmul.f32 %v5883_v22, %v7699_v56  ;;  %v3468_v22 = vadd.f32 %v7686_v19, %v7672_v43  ;;  %v3471_v19 = vadd.f32 %v7690_v41, %v7672_v43 }
 0x4ea   : > { %v5887_v53 = vpop.eup %5886  ;;  %v3551_v51 = vmul.f32 %v5885_v1, %v7699_v56  ;;  %5910 = vtanh.f32 %v3431_v48  ;;  %v3484_v34 = vadd.f32 %v7694_v16, %v7672_v43 }
 0x4eb   : > { %v5889_v49 = vpop.eup %5888  ;;  %5912 = vtanh.f32 %v3452_v45  ;;  %v3552_v28 = vmul.f32 %v5887_v53, %v7699_v56 }
 0x4ec   : > { %v5891_v6 = vpop.eup %5890  ;;  %3584 = vadd.xlane.f32.xlu1 %v3548_v59  ;;  %3590 = vadd.xlane.f32.xlu0 %v3551_v51  ;;  %v3549_v23 = vmul.f32 %v5889_v49, %v7699_v56  ;;  %5914 = vtanh.f32 %v3444_v61 }
 0x4ed   : > { %v7739_v54 = vmul.f32 %v5891_v6, %v7699_v56  ;;  %5916 = vtanh.f32 %v3455_v39  ;;  %v3476_v39 = vadd.f32 %v7672_v43, %v7704_v55 }
 0x4ee   : > { %v5893_v26 = vpop.eup %5892  ;;  %5918 = vtanh.f32 %v3447_v47 }
 0x4ef   : > { %v5895_v21 = vpop.eup %5894  ;;  %v7745_v50 = vmul.f32 %v5893_v26, %v7699_v56  ;;  %5920 = vtanh.f32 %v3468_v22  ;;  %v3463_v26 = vadd.f32 %v7672_v43, %v7692_v29  ;;  %v3487_v29 = vadd.f32 %v7708_v57, %v7672_v43 }
 0x4f0   : > { %v5897_v18 = vpop.eup %5896  ;;  %3596 = vadd.xlane.f32.xlu1 %v3554_v31  ;;  %3586 = vadd.xlane.f32.xlu0 %v3549_v23  ;;  %v3555_v1 = vmul.f32 %v5895_v21, %v7699_v56  ;;  %5922 = vtanh.f32 %v3460_v44 }
 0x4f1   : > { %v5899_v3 = vpop.eup %5898  ;;  %v7748_v24 = vmul.f32 %v5897_v18, %v7699_v56  ;;  %5924 = vtanh.f32 %v3471_v19 }
 0x4f2   : > { %v5901_v27 = vpop.eup %5900  ;;  %v3553_v49 = vmul.f32 %v5899_v3, %v7699_v56  ;;  %5926 = vtanh.f32 %v3463_v26 }
 0x4f3   : > { %v5903_v30 = vpop.eup %5902  ;;  %v7757_v48 = vmul.f32 %v5901_v27, %v7699_v56  ;;  %5928 = vtanh.f32 %v3484_v34 }
 0x4f4   : > { %v5905_v45 = vpop.eup %5904  ;;  %3592 = vadd.xlane.f32.xlu1 %v3552_v28  ;;  %3598 = vadd.xlane.f32.xlu0 %v3555_v1  ;;  %v3558_v51 = vmul.f32 %v5903_v30, %v7699_v56  ;;  %5930 = vtanh.f32 %v3476_v39  ;;  %v8513_v39 = vlaneseq }
 0x4f5   : > { %v7760_v59 = vmul.f32 %v5905_v45, %v7699_v56  ;;  %v5907_v53 = vpop.eup %5906  ;;  %5932 = vtanh.f32 %v3487_v29  ;;  %v8514_v29 = vld [vmem:[#allocation39_spill] sm:$0xff] }
 0x4f6   : > { %v5909_v6 = vpop.eup %5908  ;;  %v3556_v31 = vmul.f32 %v5907_v53, %v7699_v56  ;;  %v7965_v15 = vsub.s32 5, %v8514_v29 }
 0x4f7   : > { %v5911_v61 = vpop.eup %5910  ;;  %v3559_v41 = vmul.f32 %v5909_v6, %v7699_v56 }
 0x4f8   : > { %3604 = vadd.xlane.f32.xlu1 %v3558_v51  ;;  %3594 = vadd.xlane.f32.xlu0 %v3553_v49  ;;  %v5913_v21 = vpop.eup %5912  ;;  %v3557_v16 = vmul.f32 %v5911_v61, %v7699_v56 }
 0x4f9   : > { %v5915_v23 = vpop.eup %5914  ;;  %v3562_v18 = vmul.f32 %v5913_v21, %v7699_v56 }
 0x4fa   : > { %v5917_v3 = vpop.eup %5916  ;;  %v3560_v47 = vmul.f32 %v5915_v23, %v7699_v56 }
 0x4fb   : > { %v5919_v27 = vpop.eup %5918  ;;  %v3563_v28 = vmul.f32 %v5917_v3, %v7699_v56 }
 0x4fc   : > { %3600 = vadd.xlane.f32.xlu1 %v3556_v31  ;;  %3606 = vadd.xlane.f32.xlu0 %v3559_v41  ;;  %v5921_v55 = vpop.eup %5920  ;;  %v3561_v57 = vmul.f32 %v5919_v27, %v7699_v56 }
 0x4fd   : > { %v5923_v30 = vpop.eup %5922  ;;  %v3566_v43 = vmul.f32 %v5921_v55, %v7699_v56 }
 0x4fe   : > { %v5925_v22 = vpop.eup %5924  ;;  %v3564_v45 = vmul.f32 %v5923_v30, %v7699_v56 }
 0x4ff   : > { %v5927_v1 = vpop.eup %5926  ;;  %v3567_v44 = vmul.f32 %v5925_v22, %v7699_v56 }
 0x500   : > { %3612 = vadd.xlane.f32.xlu1 %v3562_v18  ;;  %3602 = vadd.xlane.f32.xlu0 %v3557_v16  ;;  %v5929_v53 = vpop.eup %5928  ;;  %v3565_v49 = vmul.f32 %v5927_v1, %v7699_v56 }
 0x501   : > { %v5931_v19 = vpop.eup %5930  ;;  %v3570_v51 = vmul.f32 %v5929_v53, %v7699_v56 }
 0x502   : > { %v5933_v6 = vpop.eup %5932  ;;  %v3568_v26 = vmul.f32 %v5931_v19, %v7699_v56 }
 0x503   : > { %v3571_v61 = vmul.f32 %v5933_v6, %v7699_v56 }
 0x504   : > { %3608 = vadd.xlane.f32.xlu1 %v3560_v47  ;;  %3614 = vadd.xlane.f32.xlu0 %v3563_v28 }
 0x508   : > { %3620 = vadd.xlane.f32.xlu1 %v3566_v43  ;;  %3610 = vadd.xlane.f32.xlu0 %v3561_v57 }
 0x50c   : > { %3616 = vadd.xlane.f32.xlu1 %v3564_v45  ;;  %3622 = vadd.xlane.f32.xlu0 %v3567_v44 }
 0x510   : > { %3628 = vadd.xlane.f32.xlu1 %v3570_v51  ;;  %3618 = vadd.xlane.f32.xlu0 %v3565_v49 }
 0x514   : > { %3624 = vadd.xlane.f32.xlu1 %v3568_v26  ;;  %3630 = vadd.xlane.f32.xlu0 %v3571_v61 }
 0x518   : > { %3632 = vadd.xlane.f32.xlu1 %v7748_v24  ;;  %3626 = vadd.xlane.f32.xlu0 %v7739_v54  ;;  %v3673_v24 = vand.u32 127, %v8513_v39 }
 0x51a   : > { %v7815_v18 = vsub.s32 %v3673_v24, %v8514_v29 }
 0x51c   : > { %3636 = vadd.xlane.f32.xlu1 %v7745_v50  ;;  %3634 = vadd.xlane.f32.xlu0 %v7760_v59  ;;  %v3678_v50 = vadd.s32 4294967288, %v3673_v24 }
 0x51e   : > { %v7818_v16 = vsub.s32 %v3678_v50, %v8514_v29 }
 0x520   : > { %3638 = vadd.xlane.f32.xlu0 %v7757_v48 }
 0x561   : > { %v7795_v34 = vpop.xlane.xlu0 %3580 }
 0x562   : > { %v3688_v55 = vrot.slane %v7795_v34, %v7815_v18 }
 0x565   : > { %v7797_v31 = vpop.xlane.xlu0 %3576 }
 0x566   : > { %v3677_v57 = vrot.slane %v7797_v31, %v7815_v18 }
 0x567   : > { %v7799_v41 = vpop.xlane.xlu1 %3578 }
 0x568   : > { %v3682_v30 = vrot.slane %v7799_v41, %v7818_v16 }
 0x569   : > { %v7801_v21 = vpop.xlane.xlu0 %3582 }
 0x56a   : > { %v3692_v3 = vrot.slane %v7801_v21, %v7818_v16  ;;  %v3684_v19 = vsel %vm3683_vm1, %v3682_v30, %v3677_v57 }
 0x56c   : > { %v3693_v22 = vsel %vm3683_vm1, %v3692_v3, %v3688_v55 }
 0x56d   : > { %v3821_v49 = vsel %vm3820_vm2, %v3693_v22, %v3684_v19 }
 0x571   : > { %v7803_v56 = vpop.xlane.xlu1 %3588 }
 0x572   : > { %v3706_v26 = vrot.slane %v7803_v56, %v7815_v18 }
 0x575   : > { %v7806_v23 = vpop.xlane.xlu1 %3584  ;;  %v7808_v54 = vpop.xlane.xlu0 %3590 }
 0x576   : > { %v3697_v43 = vrot.slane %v7806_v23, %v7815_v18  ;;  %v3710_v51 = vrot.slane %v7808_v54, %v7818_v16 }
 0x578   : > { %v3711_v3 = vsel %vm3683_vm1, %v3710_v51, %v3706_v26 }
 0x579   : > { %v7810_v59 = vpop.xlane.xlu1 %3596  ;;  %v7812_v48 = vpop.xlane.xlu0 %3586 }
 0x57a   : > { %v3701_v28 = vrot.slane %v7812_v48, %v7818_v16  ;;  %v3724_v30 = vrot.slane %v7810_v59, %v7815_v18 }
 0x57c   : > { %v3702_v44 = vsel %vm3683_vm1, %v3701_v28, %v3697_v43 }
 0x57d   : > { %v7822_v27 = vpop.xlane.xlu1 %3592  ;;  %v7824_v47 = vpop.xlane.xlu0 %3598  ;;  %v3823_v61 = vsel %vm3822_vm3, %v3702_v44, %v3821_v49 }
 0x57e   : > { %v3715_v6 = vrot.slane %v7822_v27, %v7815_v18  ;;  %v3728_v28 = vrot.slane %v7824_v47, %v7818_v16  ;;  %v3825_v55 = vsel %vm3824_vm4, %v3711_v3, %v3823_v61 }
 0x580   : > { %v3729_v51 = vsel %vm3683_vm1, %v3728_v28, %v3724_v30 }
 0x581   : > { %v7837_v1 = vpop.xlane.xlu1 %3604  ;;  %v7839_v45 = vpop.xlane.xlu0 %3594 }
 0x582   : > { %v3719_v53 = vrot.slane %v7839_v45, %v7818_v16  ;;  %v3742_v49 = vrot.slane %v7837_v1, %v7815_v18 }
 0x584   : > { %v3720_v50 = vsel %vm3683_vm1, %v3719_v53, %v3715_v6 }
 0x585   : > { %v7853_v39 = vpop.xlane.xlu1 %3600  ;;  %v7855_v24 = vpop.xlane.xlu0 %3606  ;;  %v3827_v44 = vsel %vm3826_vm5, %v3720_v50, %v3825_v55 }
 0x586   : > { %v3746_v43 = vrot.slane %v7855_v24, %v7818_v16  ;;  %v3733_v53 = vrot.slane %v7853_v39, %v7815_v18  ;;  %v3829_v26 = vsel %vm3828_vm6, %v3729_v51, %v3827_v44 }
 0x588   : > { %v3747_v3 = vsel %vm3683_vm1, %v3746_v43, %v3742_v49 }
 0x589   : > { %v7866_v57 = vpop.xlane.xlu1 %3612  ;;  %v7868_v22 = vpop.xlane.xlu0 %3602 }
 0x58a   : > { %v3737_v19 = vrot.slane %v7868_v22, %v7818_v16 }
 0x58c   : > { %v3738_v6 = vsel %vm3683_vm1, %v3737_v19, %v3733_v53 }
 0x58d   : > { %v7880_v61 = vpop.xlane.xlu1 %3608  ;;  %v7882_v50 = vpop.xlane.xlu0 %3614  ;;  %v3831_v55 = vsel %vm3830_vm7, %v3738_v6, %v3829_v26 }
 0x58e   : > { %v3833_v42 = vsel %vm3832_vm8, %v3747_v3, %v3831_v55  ;;  %v3751_v26 = vrot.slane %v7880_v61, %v7815_v18  ;;  %v3764_v3 = vrot.slane %v7882_v50, %v7818_v16 }
 0x58f   : > { %v3844_v28 = vsel %vm3843_vm9, %v3833_v42, -inf }
 0x590   : > { %3845 = vmax.xlane.f32.xlu1 %v3844_v28  ;;  %v3760_v28 = vrot.slane %v7866_v57, %v7815_v18 }
 0x591   : > { %v7888_v30 = vpop.xlane.xlu1 %3620  ;;  %v7890_v7 = vpop.xlane.xlu0 %3610 }
 0x592   : > { %v3755_v43 = vrot.slane %v7890_v7, %v7818_v16  ;;  %v3765_v63 = vsel %vm3683_vm1, %v3764_v3, %v3760_v28 }
 0x594   : > { %v3756_v62 = vsel %vm3683_vm1, %v3755_v43, %v3751_v26  ;;  %v3778_v43 = vrot.slane %v7888_v30, %v7815_v18 }
 0x595   : > { %v7892_v53 = vpop.xlane.xlu1 %3616  ;;  %v7894_v44 = vpop.xlane.xlu0 %3622  ;;  %v3834_v14 = vsel %vm3820_vm2, %v3765_v63, %v3756_v62 }
 0x596   : > { %v3769_v55 = vrot.slane %v7892_v53, %v7815_v18  ;;  %v3782_v40 = vrot.slane %v7894_v44, %v7818_v16 }
 0x598   : > { %v3783_v3 = vsel %vm3683_vm1, %v3782_v40, %v3778_v43 }
 0x599   : > { %v7896_v19 = vpop.xlane.xlu1 %3628  ;;  %v7898_v51 = vpop.xlane.xlu0 %3618 }
 0x59a   : > { %v3773_v49 = vrot.slane %v7898_v51, %v7818_v16 }
 0x59c   : > { %v3774_v9 = vsel %vm3683_vm1, %v3773_v49, %v3769_v55 }
 0x59d   : > { %v7904_v42 = vpop.xlane.xlu1 %3624  ;;  %v7906_v6 = vpop.xlane.xlu0 %3630  ;;  %v3835_v49 = vsel %vm3822_vm3, %v3774_v9, %v3834_v14 }
 0x59e   : > { %v3787_v2 = vrot.slane %v7904_v42, %v7815_v18  ;;  %v3800_v28 = vrot.slane %v7906_v6, %v7818_v16  ;;  %v3836_v4 = vsel %vm3824_vm4, %v3783_v3, %v3835_v49 }
 0x5a1   : > { %v7918_v60 = vpop.xlane.xlu1 %3632  ;;  %v7920_v58 = vpop.xlane.xlu0 %3626 }
 0x5a2   : > { %v3791_v20 = vrot.slane %v7920_v58, %v7818_v16  ;;  %v3805_v62 = vrot.slane %v7918_v60, %v7815_v18 }
 0x5a4   : > { %v3792_v26 = vsel %vm3683_vm1, %v3791_v20, %v3787_v2  ;;  %v3796_v20 = vrot.slane %v7896_v19, %v7815_v18 }
 0x5a5   : > { %v7934_v55 = vpop.xlane.xlu0 %3634  ;;  %v7944_v35 = vpop.xlane.xlu1 %3636  ;;  %v3837_v14 = vsel %vm3826_vm5, %v3792_v26, %v3836_v4 }
 0x5a6   : > { %v3809_v63 = vrot.slane %v7934_v55, %v7818_v16  ;;  %v3801_v9 = vsel %vm3683_vm1, %v3800_v28, %v3796_v20  ;;  %v3814_v43 = vrot.slane %v7944_v35, %v7815_v18  ;;  %v8516_v20 = vld [vmem:[#allocation44_spill] sm:$0xff] }
 0x5a7   : > { %v3838_v49 = vsel %vm3828_vm6, %v3801_v9, %v3837_v14 }
 0x5a8   : > { %v3810_v40 = vsel %vm3683_vm1, %v3809_v63, %v3805_v62  ;;  %v8515_v62 = vld [vmem:[#allocation41_spill] sm:$0xff] }
 0x5a9   : > { %v7950_v2 = vpop.xlane.xlu0 %3638  ;;  %v3839_v11 = vsel %vm3830_vm7, %v3810_v40, %v3838_v49  ;;  %v7971_v40 = vsub.s32 6, %v8514_v29 }
 0x5aa   : > { %v3818_v37 = vrot.slane %v7950_v2, %v7818_v16 }
 0x5ac   : > { %v3819_v3 = vsel %vm3683_vm1, %v3818_v37, %v3814_v43 }
 0x5ad   : > { %v3840_v4 = vsel %vm3832_vm8, %v3819_v3, %v3839_v11 }
 0x5ae   : > { %v3847_v26 = vsel %vm3843_vm9, %v3840_v4, -inf }
 0x5af   : > { %3848 = vmax.xlane.f32.xlu0 %v3847_v26  ;;  %v7987_v26 = vsub.s32 3, %v8514_v29 }
 0x619   : > { %v3846_v63 = vpop.xlane.xlu1 %3845 }
 0x61a   : > { %v3855_v28 = vrot.slane %v3846_v63, %v8515_v62  ;;  %v3859_v5 = vrot.slane %v3846_v63, %v8516_v20  ;;  %v7974_v11 = vrot.slane %v3846_v63, %v7965_v15  ;;  %v3863_v49 = vrot.slane %v3846_v63, %v6849_v46 }
 0x61c   : > { %v3932_v10 = vsub.f32 %v7797_v31, %v3855_v28  ;;  %v3933_v14 = vsub.f32 %v7799_v41, %v3855_v28  ;;  %v3934_v37 = vsub.f32 %v7795_v34, %v3859_v5  ;;  %v3935_v3 = vsub.f32 %v7801_v21, %v3859_v5 }
 0x61d   : > { %v7979_v31 = vsub.s32 7, %v8514_v29  ;;  %v7982_v34 = vrot.slane %v3846_v63, %v7971_v40  ;;  %v3942_v41 = vsub.f32 %v7810_v59, %v7974_v11 }
 0x61e   : > { %v3964_v9 = vmul.f32 1.442695, %v3932_v10  ;;  %v3966_v43 = vmul.f32 1.442695, %v3933_v14  ;;  %v3968_v4 = vmul.f32 1.442695, %v3934_v37  ;;  %v3936_v10 = vsub.f32 %v7806_v23, %v3863_v49 }
 0x61f   : > { %v3970_v28 = vmul.f32 1.442695, %v3935_v3  ;;  %v7991_v5 = vrot.slane %v3846_v63, %v7979_v31  ;;  %v3944_v21 = vsub.f32 %v7853_v39, %v7982_v34  ;;  %v3984_v14 = vmul.f32 1.442695, %v3942_v41 }
 0x620   : > { %5934 = vpow2.f32 %v3964_v9  ;;  %v3867_v37 = vrot.slane %v3846_v63, %v7987_v26  ;;  %v3937_v9 = vsub.f32 %v7812_v48, %v3863_v49  ;;  %v3972_v59 = vmul.f32 1.442695, %v3936_v10 }
 0x621   : > { %5936 = vpow2.f32 %v3966_v43  ;;  %v3946_v43 = vsub.f32 %v7837_v1, %v7991_v5  ;;  %v3988_v23 = vmul.f32 1.442695, %v3944_v21  ;;  %v8000_v3 = vsub.s32 4, %v8514_v29 }
 0x622   : > { %5938 = vpow2.f32 %v3968_v4  ;;  %v3938_v4 = vsub.f32 %v7803_v56, %v3867_v37  ;;  %v3974_v32 = vmul.f32 1.442695, %v3937_v9  ;;  %v3939_v49 = vsub.f32 %v7808_v54, %v3867_v37 }
 0x623   : > { %5940 = vpow2.f32 %v3970_v28  ;;  %v3992_v48 = vmul.f32 1.442695, %v3946_v43  ;;  %v3871_v1 = vrot.slane %v3846_v63, %v8000_v3 }
 0x624   : > { %5942 = vpow2.f32 %v3984_v14  ;;  %v3976_v29 = vmul.f32 1.442695, %v3938_v4  ;;  %v3978_v28 = vmul.f32 1.442695, %v3939_v49 }
 0x625   : > { %5944 = vpow2.f32 %v3972_v59  ;;  %v3940_v56 = vsub.f32 %v7822_v27, %v3871_v1 }
 0x626   : > { %5946 = vpow2.f32 %v3988_v23 }
 0x627   : > { %5948 = vpow2.f32 %v3974_v32  ;;  %v3941_v32 = vsub.f32 %v7839_v45, %v3871_v1  ;;  %v3980_v37 = vmul.f32 1.442695, %v3940_v56  ;;  %v3943_v45 = vsub.f32 %v7824_v47, %v7974_v11 }
 0x628   : > { %5950 = vpow2.f32 %v3992_v48 }
 0x629   : > { %5952 = vpow2.f32 %v3976_v29  ;;  %v3982_v23 = vmul.f32 1.442695, %v3941_v32  ;;  %v3945_v29 = vsub.f32 %v7868_v22, %v7982_v34  ;;  %v3986_v47 = vmul.f32 1.442695, %v3943_v45 }
 0x62a   : > { %5954 = vpow2.f32 %v3978_v28  ;;  %v3947_v32 = vsub.f32 %v7855_v24, %v7991_v5 }
 0x62b   : > { %5956 = vpow2.f32 %v3980_v37  ;;  %v3990_v22 = vmul.f32 1.442695, %v3945_v29 }
 0x62c   : > { %5958 = vpow2.f32 %v3982_v23  ;;  %v3994_v45 = vmul.f32 1.442695, %v3947_v32 }
 0x62d   : > { %v8003_v39 = vpop.eup %5934 }
 0x62e   : > { %v8005_v41 = vpop.eup %5936  ;;  %4061 = vperm.xlu1 %5396, %v8003_v39  }
 0x62f   : > { %4064 = vperm.xlu0 %5397, %v8005_v41   ;;  %v8011_v10 = vpop.eup %5938 }
 0x630   : > { %v8015_v21 = vpop.eup %5940 }
 0x631   : > { %v8020_v63 = vpop.eup %5942 }
 0x632   : > { %4067 = vperm.xlu1 %5396, %v8011_v10   ;;  %v8028_v9 = vpop.eup %5944 }
 0x633   : > { %4091 = vperm.xlu0 %5397, %v8020_v63   ;;  %v8032_v43 = vpop.eup %5946 }
 0x634   : > { %v8040_v1 = vpop.eup %5948 }
 0x636   : > { %4070 = vperm.xlu1 %5396, %v8015_v21  }
 0x637   : > { %4097 = vperm.xlu0 %5397, %v8032_v43  }
 0x638   : > { %v8018_v14 = vpop.xlane.xlu0 %3848 }
 0x639   : > { %v3887_v54 = vrot.slane %v8018_v14, %v8515_v62  ;;  %v3891_v27 = vrot.slane %v8018_v14, %v8516_v20  ;;  %v3895_v4 = vrot.slane %v8018_v14, %v6849_v46  ;;  %v3899_v11 = vrot.slane %v8018_v14, %v7987_v26 }
 0x63a   : > { %4073 = vperm.xlu1 %5396, %v8028_v9   ;;  %v3903_v34 = vrot.slane %v8018_v14, %v8000_v3  ;;  %v3907_v24 = vrot.slane %v8018_v14, %v7965_v15  ;;  %v3915_v32 = vrot.slane %v8018_v14, %v7979_v31 }
 0x63b   : > { %v3949_v59 = vsub.f32 %v7890_v7, %v3887_v54  ;;  %v3951_v48 = vsub.f32 %v7882_v50, %v3891_v27  ;;  %v8043_v7 = vpop.eup %5950  ;;  %v3953_v56 = vsub.f32 %v7898_v51, %v3895_v4  ;;  %v3955_v37 = vsub.f32 %v7894_v44, %v3899_v11 }
 0x63c   : > { %4103 = vperm.xlu0 %5397, %v8043_v7   ;;  %v8051_v50 = vpop.eup %5952  ;;  %v3948_v23 = vsub.f32 %v7880_v61, %v3887_v54  ;;  %v3957_v5 = vsub.f32 %v7920_v58, %v3903_v34  ;;  %v3950_v44 = vsub.f32 %v7866_v57, %v3891_v27  ;;  %v3911_v61 = vrot.slane %v8018_v14, %v7971_v40 }
 0x63d   : > { %v3998_v49 = vmul.f32 1.442695, %v3949_v59  ;;  %v4002_v28 = vmul.f32 1.442695, %v3951_v48  ;;  %v4006_v51 = vmul.f32 1.442695, %v3953_v56  ;;  %v8059_v59 = vpop.eup %5954  ;;  %v3958_v54 = vsub.f32 %v7896_v19, %v3907_v24 }
 0x63e   : > { %4076 = vperm.xlu1 %5396, %v8040_v1   ;;  %v4010_v48 = vmul.f32 1.442695, %v3955_v37  ;;  %v3996_v29 = vmul.f32 1.442695, %v3948_v23  ;;  %v4014_v56 = vmul.f32 1.442695, %v3957_v5 }
 0x63f   : > { %5960 = vpow2.f32 %v3998_v49  ;;  %v8066_v49 = vpop.eup %5956  ;;  %v4000_v57 = vmul.f32 1.442695, %v3950_v44  ;;  %v4016_v19 = vmul.f32 1.442695, %v3958_v54  ;;  %v3959_v44 = vsub.f32 %v7906_v6, %v3907_v24 }
 0x640   : > { %5962 = vpow2.f32 %v3986_v47  ;;  %v8070_v47 = vpop.eup %5958  ;;  %v3963_v24 = vsub.f32 %v7950_v2, %v3915_v32 }
 0x641   : > { %5964 = vpow2.f32 %v4002_v28  ;;  %v3952_v28 = vsub.f32 %v7892_v53, %v3895_v4 }
 0x642   : > { %4079 = vperm.xlu1 %5396, %v8051_v50   ;;  %5966 = vpow2.f32 %v3990_v22  ;;  %v3960_v22 = vsub.f32 %v7918_v60, %v3911_v61 }
 0x643   : > { %5968 = vpow2.f32 %v4006_v51  ;;  %v3954_v51 = vsub.f32 %v7888_v30, %v3899_v11  ;;  %v4004_v53 = vmul.f32 1.442695, %v3952_v28  ;;  %v3956_v30 = vsub.f32 %v7904_v42, %v3903_v34 }
 0x644   : > { %5970 = vpow2.f32 %v3994_v45  ;;  %v3962_v45 = vsub.f32 %v7944_v35, %v3915_v32  ;;  %v4020_v14 = vmul.f32 1.442695, %v3960_v22  ;;  %v3961_v34 = vsub.f32 %v7934_v55, %v3911_v61 }
 0x645   : > { %5972 = vpow2.f32 %v4010_v48  ;;  %v4008_v60 = vmul.f32 1.442695, %v3954_v51  ;;  %v4026_v61 = vmul.f32 1.442695, %v3963_v24 }
 0x646   : > { %4082 = vperm.xlu1 %5396, %v8059_v59   ;;  %5974 = vpow2.f32 %v3996_v29  ;;  %v4024_v11 = vmul.f32 1.442695, %v3962_v45  ;;  %v4012_v29 = vmul.f32 1.442695, %v3956_v30 }
 0x647   : > { %5976 = vpow2.f32 %v4014_v56  ;;  %v4018_v56 = vmul.f32 1.442695, %v3959_v44 }
 0x648   : > { %5978 = vpow2.f32 %v4000_v57  ;;  %v4022_v57 = vmul.f32 1.442695, %v3961_v34 }
 0x649   : > { %5980 = vpow2.f32 %v4016_v19 }
 0x64a   : > { %4085 = vperm.xlu1 %5396, %v8066_v49   ;;  %5982 = vpow2.f32 %v4004_v53 }
 0x64b   : > { %5984 = vpow2.f32 %v4020_v14 }
 0x64c   : > { %v8075_v58 = vpop.eup %5960  ;;  %5986 = vpow2.f32 %v4008_v60 }
 0x64d   : > { %4112 = vperm.xlu0 %5397, %v8075_v58   ;;  %v8080_v27 = vpop.eup %5962  ;;  %5988 = vpow2.f32 %v4024_v11 }
 0x64e   : > { %4088 = vperm.xlu1 %5396, %v8070_v47   ;;  %v8085_v37 = vpop.eup %5964  ;;  %5990 = vpow2.f32 %v4012_v29 }
 0x64f   : > { %v8090_v4 = vpop.eup %5966  ;;  %5992 = vpow2.f32 %v4018_v56 }
 0x650   : > { %v8093_v23 = vpop.eup %5968  ;;  %5994 = vpow2.f32 %v4022_v57 }
 0x651   : > { %4118 = vperm.xlu0 %5397, %v8085_v37   ;;  %v8097_v5 = vpop.eup %5970  ;;  %5996 = vpow2.f32 %v4026_v61 }
 0x652   : > { %4094 = vperm.xlu1 %5396, %v8080_v27   ;;  %v8100_v48 = vpop.eup %5972 }
 0x653   : > { %v8104_v35 = vpop.eup %5974 }
 0x654   : > { %v8107_v54 = vpop.eup %5976 }
 0x655   : > { %4124 = vperm.xlu0 %5397, %v8093_v23   ;;  %v8111_v42 = vpop.eup %5978 }
 0x656   : > { %4100 = vperm.xlu1 %5396, %v8090_v4   ;;  %v8114_v28 = vpop.eup %5980 }
 0x657   : > { %8517 = vst [vmem:[#allocation20_spill] sm:$0xff] %v8114_v28  ;;  %v8118_v6 = vpop.eup %5982 }
 0x658   : > { %v8121_v22 = vpop.eup %5984 }
 0x659   : > { %4130 = vperm.xlu0 %5397, %v8100_v48   ;;  %8518 = vst [vmem:[#allocation52_spill] sm:$0xff] %v8121_v22  ;;  %v8125_v55 = vpop.eup %5986 }
 0x65a   : > { %4106 = vperm.xlu1 %5396, %v8097_v5   ;;  %v8127_v19 = vpop.eup %5988 }
 0x65b   : > { %8519 = vst [vmem:[#allocation53_spill] sm:$0xff] %v8127_v19  ;;  %v8131_v2 = vpop.eup %5990 }
 0x65c   : > { %v8134_v32 = vpop.eup %5992 }
 0x65d   : > { %4136 = vperm.xlu0 %5397, %v8107_v54   ;;  %v8137_v51 = vpop.eup %5994 }
 0x65e   : > { %4109 = vperm.xlu1 %5396, %v8104_v35   ;;  %8520 = vst [vmem:[#allocation54_spill] sm:$0xff] %v8137_v51  ;;  %v8140_v53 = vpop.eup %5996 }
 0x65f   : > { %8521 = vst [vmem:[#allocation55_spill] sm:$0xff] %v8140_v53 }
 0x661   : > { %4139 = vperm.xlu0 %5397, %v8114_v28  }
 0x662   : > { %4115 = vperm.xlu1 %5396, %v8111_v42  }
 0x665   : > { %4145 = vperm.xlu0 %5397, %v8121_v22  }
 0x666   : > { %4121 = vperm.xlu1 %5396, %v8118_v6  }
 0x669   : > { %4151 = vperm.xlu0 %5397, %v8127_v19  }
 0x66a   : > { %4127 = vperm.xlu1 %5396, %v8125_v55  }
 0x66e   : > { %4133 = vperm.xlu1 %5396, %v8131_v2  }
 0x672   : > { %4142 = vperm.xlu1 %5396, %v8134_v32  }
 0x676   : > { %4148 = vperm.xlu1 %5396, %v8137_v51  }
 0x67a   : > { %4154 = vperm.xlu1 %5396, %v8140_v53  }
 0x6a9   : > { %v4062_v45 = vpop.permute.xlu1 %4061 }
 0x6aa   : > { %v4065_v30 = vpop.permute.xlu0 %4064  ;;  %v4159_v36 = vrot.slane %v4062_v45, %v7815_v18 }
 0x6ab   : > { %v4163_v0 = vrot.slane %v4065_v30, %v7818_v16 }
 0x6ad   : > { %v4068_v14 = vpop.permute.xlu1 %4067 }
 0x6ae   : > { %v4092_v44 = vpop.permute.xlu0 %4091  ;;  %v4168_v25 = vrot.slane %v4068_v14, %v7815_v18  ;;  %v4164_v14 = vsel %vm3683_vm1, %v4163_v0, %v4159_v36 }
 0x6b1   : > { %v4071_v60 = vpop.permute.xlu1 %4070 }
 0x6b2   : > { %v4098_v56 = vpop.permute.xlu0 %4097  ;;  %v4172_v52 = vrot.slane %v4071_v60, %v7818_v16 }
 0x6b4   : > { %v4173_v22 = vsel %vm3683_vm1, %v4172_v52, %v4168_v25  ;;  %v4213_v25 = vrot.slane %v4098_v56, %v7815_v18 }
 0x6b5   : > { %v4074_v11 = vpop.permute.xlu1 %4073  ;;  %v4300_v28 = vsel %vm3820_vm2, %v4173_v22, %v4164_v14 }
 0x6b6   : > { %v4177_v38 = vrot.slane %v4074_v11, %v7815_v18 }
 0x6b7   : > { %v4104_v57 = vpop.permute.xlu0 %4103 }
 0x6b9   : > { %v4077_v29 = vpop.permute.xlu1 %4076 }
 0x6ba   : > { %v4181_v17 = vrot.slane %v4077_v29, %v7818_v16 }
 0x6bc   : > { %v4182_v51 = vsel %vm3683_vm1, %v4181_v17, %v4177_v38 }
 0x6bd   : > { %v4080_v34 = vpop.permute.xlu1 %4079 }
 0x6be   : > { %v4186_v60 = vrot.slane %v4080_v34, %v7815_v18 }
 0x6c1   : > { %v4083_v24 = vpop.permute.xlu1 %4082 }
 0x6c2   : > { %v4190_v8 = vrot.slane %v4083_v24, %v7818_v16  ;;  %v4204_v24 = vrot.slane %v4092_v44, %v7815_v18 }
 0x6c4   : > { %v4191_v11 = vsel %vm3683_vm1, %v4190_v8, %v4186_v60  ;;  %v4222_v8 = vrot.slane %v4104_v57, %v7815_v18 }
 0x6c5   : > { %v4086_v61 = vpop.permute.xlu1 %4085 }
 0x6c6   : > { %v4195_v45 = vrot.slane %v4086_v61, %v7815_v18 }
 0x6c8   : > { %v8143_v13 = vpop.permute.xlu0 %4112 }
 0x6c9   : > { %v4089_v12 = vpop.permute.xlu1 %4088 }
 0x6ca   : > { %v4199_v19 = vrot.slane %v4089_v12, %v7818_v16 }
 0x6cc   : > { %v4119_v53 = vpop.permute.xlu0 %4118  ;;  %v4200_v52 = vsel %vm3683_vm1, %v4199_v19, %v4195_v45 }
 0x6cd   : > { %v4095_v33 = vpop.permute.xlu1 %4094 }
 0x6ce   : > { %v4208_v29 = vrot.slane %v4095_v33, %v7818_v16  ;;  %v4301_v33 = vsel %vm3822_vm3, %v4182_v51, %v4300_v28 }
 0x6cf   : > { %v4302_v17 = vsel %vm3824_vm4, %v4191_v11, %v4301_v33 }
 0x6d0   : > { %v4209_v38 = vsel %vm3683_vm1, %v4208_v29, %v4204_v24  ;;  %v4125_v34 = vpop.permute.xlu0 %4124  ;;  %v4303_v44 = vsel %vm3826_vm5, %v4200_v52, %v4302_v17 }
 0x6d1   : > { %v4101_v30 = vpop.permute.xlu1 %4100  ;;  %v4304_v56 = vsel %vm3828_vm6, %v4209_v38, %v4303_v44  ;;  %v4244_v38 = vrot.slane %v4119_v53, %v7818_v16  ;;  %v4235_v44 = vrot.slane %v8143_v13, %v7818_v16 }
 0x6d2   : > { %v4217_v12 = vrot.slane %v4101_v30, %v7818_v16 }
 0x6d4   : > { %v4218_v0 = vsel %vm3683_vm1, %v4217_v12, %v4213_v25  ;;  %v4131_v29 = vpop.permute.xlu0 %4130 }
 0x6d5   : > { %v4107_v36 = vpop.permute.xlu1 %4106  ;;  %v4305_v28 = vsel %vm3830_vm7, %v4218_v0, %v4304_v56 }
 0x6d6   : > { %v4226_v22 = vrot.slane %v4107_v36, %v7818_v16  ;;  %v4253_v36 = vrot.slane %v4125_v34, %v7818_v16 }
 0x6d8   : > { %v4227_v19 = vsel %vm3683_vm1, %v4226_v22, %v4222_v8  ;;  %v4137_v30 = vpop.permute.xlu0 %4136  ;;  %v4262_v22 = vrot.slane %v4131_v29, %v7818_v16 }
 0x6d9   : > { %v4110_v51 = vpop.permute.xlu1 %4109  ;;  %v4306_v61 = vsel %vm3832_vm8, %v4227_v19, %v4305_v28  ;;  %v4271_v28 = vrot.slane %v4137_v30, %v7818_v16 }
 0x6da   : > { %v4316_v60 = vsel %vm3843_vm9, %v4306_v61, 0.0  ;;  %v4231_v17 = vrot.slane %v4110_v51, %v7815_v18 }
 0x6db   : > { %4317 = vadd.xlane.f32.xlu0 %v4316_v60 }
 0x6dc   : > { %v4140_v24 = vpop.permute.xlu0 %4139  ;;  %v4236_v61 = vsel %vm3683_vm1, %v4235_v44, %v4231_v17 }
 0x6dd   : > { %v4116_v45 = vpop.permute.xlu1 %4115  ;;  %v4276_v34 = vrot.slane %v4140_v24, %v7815_v18 }
 0x6de   : > { %v4240_v12 = vrot.slane %v4116_v45, %v7815_v18 }
 0x6e0   : > { %v4146_v25 = vpop.permute.xlu0 %4145  ;;  %v4245_v56 = vsel %vm3683_vm1, %v4244_v38, %v4240_v12 }
 0x6e1   : > { %v4122_v57 = vpop.permute.xlu1 %4121  ;;  %v4307_v13 = vsel %vm3820_vm2, %v4245_v56, %v4236_v61  ;;  %v4285_v29 = vrot.slane %v4146_v25, %v7815_v18 }
 0x6e2   : > { %v4249_v52 = vrot.slane %v4122_v57, %v7815_v18 }
 0x6e4   : > { %v4254_v53 = vsel %vm3683_vm1, %v4253_v36, %v4249_v52  ;;  %v4152_v57 = vpop.permute.xlu0 %4151 }
 0x6e5   : > { %v4128_v14 = vpop.permute.xlu1 %4127  ;;  %v4308_v30 = vsel %vm3822_vm3, %v4254_v53, %v4307_v13 }
 0x6e6   : > { %v4258_v0 = vrot.slane %v4128_v14, %v7815_v18 }
 0x6e8   : > { %v4263_v60 = vsel %vm3683_vm1, %v4262_v22, %v4258_v0 }
 0x6e9   : > { %v4134_v11 = vpop.permute.xlu1 %4133  ;;  %v4309_v12 = vsel %vm3824_vm4, %v4263_v60, %v4308_v30 }
 0x6ea   : > { %v4267_v8 = vrot.slane %v4134_v11, %v7815_v18 }
 0x6ec   : > { %v4272_v14 = vsel %vm3683_vm1, %v4271_v28, %v4267_v8 }
 0x6ed   : > { %v4143_v33 = vpop.permute.xlu1 %4142  ;;  %v4310_v38 = vsel %vm3826_vm5, %v4272_v14, %v4309_v12 }
 0x6ee   : > { %v4280_v19 = vrot.slane %v4143_v33, %v7818_v16  ;;  %v4294_v33 = vrot.slane %v4152_v57, %v7815_v18 }
 0x6f0   : > { %v4281_v11 = vsel %vm3683_vm1, %v4280_v19, %v4276_v34 }
 0x6f1   : > { %v4149_v51 = vpop.permute.xlu1 %4148  ;;  %v4311_v25 = vsel %vm3828_vm6, %v4281_v11, %v4310_v38 }
 0x6f2   : > { %v4289_v45 = vrot.slane %v4149_v51, %v7818_v16 }
 0x6f4   : > { %v4290_v52 = vsel %vm3683_vm1, %v4289_v45, %v4285_v29 }
 0x6f5   : > { %v4155_v24 = vpop.permute.xlu1 %4154  ;;  %v4312_v36 = vsel %vm3830_vm7, %v4290_v52, %v4311_v25 }
 0x6f6   : > { %v4298_v17 = vrot.slane %v4155_v24, %v7818_v16 }
 0x6f8   : > { %v4299_v0 = vsel %vm3683_vm1, %v4298_v17, %v4294_v33  ;;  %v8524_v33 = vld [vmem:[#allocation52_spill] sm:$0xff]  ;;  %v8526_v17 = vld [vmem:[#allocation53_spill] sm:$0xff] }
 0x6f9   : > { %v4313_v8 = vsel %vm3832_vm8, %v4299_v0, %v4312_v36 }
 0x6fa   : > { %v4319_v44 = vsel %vm3843_vm9, %v4313_v8, 0.0  ;;  %v8527_v8 = vld [vmem:[#allocation35_spill] sm:$0xff] }
 0x6fb   : > { %4320 = vadd.xlane.f32.xlu1 %v4319_v44 }
 0x764   : > { %v4318_v22 = vpop.xlane.xlu0 %4317 }
 0x765   : > { %5998 = vrcp.f32 %v4318_v22  ;;  %v8528_v22 = vld [vmem:[#allocation33_spill] sm:$0xff] }
 0x772   : > { %v5999_v56 = vpop.eup %5998 }
 0x773   : > { %v4329_v18 = vrot.slane %v5999_v56, %v8515_v62  ;;  %v4333_v28 = vrot.slane %v5999_v56, %v8516_v20  ;;  %v4337_v61 = vrot.slane %v5999_v56, %v6849_v46 }
 0x775   : > { %v4407_v19 = vmul.f32 %v8005_v41, %v4329_v18  ;;  %v4406_v16 = vmul.f32 %v8003_v39, %v4329_v18  ;;  %v4409_v53 = vmul.f32 %v8015_v21, %v4333_v28  ;;  %v4408_v51 = vmul.f32 %v8011_v10, %v4333_v28  ;;  %v8529_v18 = vld [vmem:[#allocation27_spill] sm:$0xff] }
 0x776   : > { %v4411_v34 = vmul.f32 %v8040_v1, %v4337_v61  ;;  %v4410_v60 = vmul.f32 %v8028_v9, %v4337_v61  ;;  %v4341_v41 = vrot.slane %v5999_v56, %v7987_v26  ;;  %v4345_v21 = vrot.slane %v5999_v56, %v8000_v3 }
 0x777   : > { %4445 = vperm.xlu1 %5396, %v4407_v19   ;;  %4440 = vperm.xlu0 %5397, %v4406_v16   ;;  %v4349_v9 = vrot.slane %v5999_v56, %v7965_v15  ;;  %v8530_v16 = vld [vmem:[#allocation26_spill] sm:$0xff] }
 0x778   : > { %v4413_v39 = vmul.f32 %v8059_v59, %v4341_v41  ;;  %v4412_v45 = vmul.f32 %v8051_v50, %v4341_v41  ;;  %v4415_v13 = vmul.f32 %v8070_v47, %v4345_v21  ;;  %v4414_v1 = vmul.f32 %v8066_v49, %v4345_v21 }
 0x779   : > { %v4417_v29 = vmul.f32 %v8080_v27, %v4349_v9  ;;  %v4416_v59 = vmul.f32 %v8020_v63, %v4349_v9  ;;  %v4353_v50 = vrot.slane %v5999_v56, %v7971_v40  ;;  %v4357_v47 = vrot.slane %v5999_v56, %v7979_v31  ;;  %v8534_v9 = vld [vmem:[#allocation16_spill] sm:$0xff] }
 0x77b   : > { %4455 = vperm.xlu1 %5396, %v4409_v53   ;;  %4450 = vperm.xlu0 %5397, %v4408_v51   ;;  %v4419_v57 = vmul.f32 %v8090_v4, %v4353_v50  ;;  %v4418_v14 = vmul.f32 %v8032_v43, %v4353_v50  ;;  %v4421_v49 = vmul.f32 %v8097_v5, %v4357_v47  ;;  %v8531_v51 = vld [vmem:[#allocation50_spill] sm:$0xff] }
 0x77c   : > { %v4420_v30 = vmul.f32 %v8043_v7, %v4357_v47 }
 0x77f   : > { %4465 = vperm.xlu1 %5396, %v4411_v34   ;;  %4460 = vperm.xlu0 %5397, %v4410_v60   ;;  %v8532_v34 = vld [vmem:[#allocation47_spill] sm:$0xff] }
 0x783   : > { %4475 = vperm.xlu1 %5396, %v4413_v39   ;;  %4470 = vperm.xlu0 %5397, %v4412_v45  }
 0x784   : > { %v4321_v10 = vpop.xlane.xlu1 %4320 }
 0x785   : > { %6000 = vrcp.f32 %v4321_v10 }
 0x787   : > { %4485 = vperm.xlu1 %5396, %v4415_v13   ;;  %4480 = vperm.xlu0 %5397, %v4414_v1   ;;  %v8533_v13 = vld [vmem:[#allocation17_spill] sm:$0xff] }
 0x78b   : > { %4495 = vperm.xlu1 %5396, %v4417_v29   ;;  %4490 = vperm.xlu0 %5397, %v4416_v59  }
 0x78f   : > { %4505 = vperm.xlu1 %5396, %v4419_v57   ;;  %4500 = vperm.xlu0 %5397, %v4418_v14  }
 0x792   : > { %v6001_v11 = vpop.eup %6000 }
 0x793   : > { %4515 = vperm.xlu1 %5396, %v4421_v49   ;;  %4510 = vperm.xlu0 %5397, %v4420_v30   ;;  %v4361_v63 = vrot.slane %v6001_v11, %v8515_v62  ;;  %v4365_v4 = vrot.slane %v6001_v11, %v8516_v20  ;;  %v4369_v5 = vrot.slane %v6001_v11, %v6849_v46  ;;  %v8535_v30 = vld [vmem:[#allocation21_spill] sm:$0xff] }
 0x795   : > { %v4422_v27 = vmul.f32 %v8104_v35, %v4361_v63  ;;  %v4423_v12 = vmul.f32 %v8075_v58, %v4361_v63  ;;  %v4424_v43 = vmul.f32 %v8111_v42, %v4365_v4  ;;  %v4425_v52 = vmul.f32 %v8085_v37, %v4365_v4  ;;  %v8536_v63 = vld [vmem:[#allocation8_spill] sm:$0xff] }
 0x796   : > { %v4426_v7 = vmul.f32 %v8118_v6, %v4369_v5  ;;  %v4427_v62 = vmul.f32 %v8093_v23, %v4369_v5  ;;  %v4373_v35 = vrot.slane %v6001_v11, %v7987_v26  ;;  %v4377_v42 = vrot.slane %v6001_v11, %v8000_v3  ;;  %v8522_v23 = vld [vmem:[#allocation20_spill] sm:$0xff] }
 0x797   : > { %4520 = vperm.xlu1 %5396, %v4422_v27   ;;  %4525 = vperm.xlu0 %5397, %v4423_v12   ;;  %v4381_v6 = vrot.slane %v6001_v11, %v7965_v15 }
 0x798   : > { %v4428_v20 = vmul.f32 %v8125_v55, %v4373_v35  ;;  %v4429_v58 = vmul.f32 %v8100_v48, %v4373_v35  ;;  %v4430_v46 = vmul.f32 %v8131_v2, %v4377_v42  ;;  %v4431_v37 = vmul.f32 %v8107_v54, %v4377_v42  ;;  %v8523_v48 = vld [vmem:[#allocation54_spill] sm:$0xff]  ;;  %v8525_v54 = vld [vmem:[#allocation55_spill] sm:$0xff] }
 0x799   : > { %v4433_v26 = vmul.f32 %v8134_v32, %v4381_v6  ;;  %v4432_v24 = vmul.f32 %v8522_v23, %v4381_v6  ;;  %v4385_v55 = vrot.slane %v6001_v11, %v7971_v40  ;;  %v4389_v2 = vrot.slane %v6001_v11, %v7979_v31 }
 0x79b   : > { %4530 = vperm.xlu1 %5396, %v4424_v43   ;;  %4535 = vperm.xlu0 %5397, %v4425_v52   ;;  %v4435_v3 = vmul.f32 %v8523_v48, %v4385_v55  ;;  %v4434_v38 = vmul.f32 %v8524_v33, %v4385_v55  ;;  %v4437_v15 = vmul.f32 %v8525_v54, %v4389_v2  ;;  %v8540_v54 = vld [vmem:[#allocation10_spill] sm:$0xff] }
 0x79c   : > { %v4436_v25 = vmul.f32 %v8526_v17, %v4389_v2 }
 0x79f   : > { %4540 = vperm.xlu1 %5396, %v4426_v7   ;;  %4545 = vperm.xlu0 %5397, %v4427_v62  }
 0x7a3   : > { %4550 = vperm.xlu1 %5396, %v4428_v20   ;;  %4555 = vperm.xlu0 %5397, %v4429_v58   ;;  %v8537_v58 = vld [vmem:[#allocation9_spill] sm:$0xff] }
 0x7a7   : > { %4560 = vperm.xlu1 %5396, %v4430_v46   ;;  %4565 = vperm.xlu0 %5397, %v4431_v37   ;;  %v8538_v46 = vld [vmem:[#allocation7_spill] sm:$0xff] }
 0x7ab   : > { %4575 = vperm.xlu1 %5396, %v4433_v26   ;;  %4570 = vperm.xlu0 %5397, %v4432_v24  }
 0x7af   : > { %4585 = vperm.xlu1 %5396, %v4435_v3   ;;  %4580 = vperm.xlu0 %5397, %v4434_v38   ;;  %v8539_v38 = vld [vmem:[#allocation11_spill] sm:$0xff] }
 0x7b3   : > { %4595 = vperm.xlu1 %5396, %v4437_v15   ;;  %4590 = vperm.xlu0 %5397, %v4436_v25  }
 0x7f2   : > { %v4446_v32 = vpop.permute.xlu1 %4445  ;;  %v4441_v0 = vpop.permute.xlu0 %4440 }
 0x7f3   : > { %v4599_v19 = vmul.f32 %v4446_v32, %v8529_v18  ;;  %v4598_v31 = vmul.f32 %v4441_v0, %v8530_v16 }
 0x7f5   : > { %v4630_v39 = vadd.f32 %v4599_v19, %v4598_v31  ;;  %v8541_v19 = vld [vmem:[#allocation23_spill] sm:$0xff]  ;;  %v8542_v31 = vld [vmem:[#allocation13_spill] sm:$0xff] }
 0x7f6   : > { %v4456_v36 = vpop.permute.xlu1 %4455  ;;  %v4451_v40 = vpop.permute.xlu0 %4450 }
 0x7f7   : > { %v4601_v44 = vmul.f32 %v4456_v36, %v8527_v8  ;;  %v4600_v56 = vmul.f32 %v4451_v40, %v8528_v22  ;;  %v4631_v50 = vrot.slane %v4630_v39, 4 }
 0x7f9   : > { %v4637_v41 = vadd.f32 %v4601_v44, %v4600_v56  ;;  %v4632_v52 = vadd.f32 %v4631_v50, %v4630_v39 }
 0x7fa   : > { %v4466_v28 = vpop.permute.xlu1 %4465  ;;  %v4461_v53 = vpop.permute.xlu0 %4460 }
 0x7fb   : > { %v4603_v61 = vmul.f32 %v4466_v28, %v8531_v51  ;;  %v4602_v60 = vmul.f32 %v4461_v53, %v8532_v34  ;;  %v4638_v59 = vrot.slane %v4637_v41, 4  ;;  %v4633_v23 = vrot.slane %v4632_v52, 2 }
 0x7fd   : > { %v4644_v45 = vadd.f32 %v4603_v61, %v4602_v60  ;;  %v4639_v4 = vadd.f32 %v4638_v59, %v4637_v41  ;;  %v4634_v36 = vadd.f32 %v4633_v23, %v4632_v52  ;;  %v8545_v23 = vld [vmem:[#allocation38_spill] sm:$0xff] }
 0x7fe   : > { %v4476_v21 = vpop.permute.xlu1 %4475  ;;  %v4471_v10 = vpop.permute.xlu0 %4470 }
 0x7ff   : > { %v4605_v1 = vmul.f32 %v4476_v21, %v8533_v13  ;;  %v4604_v29 = vmul.f32 %v4471_v10, %v8534_v9  ;;  %v4645_v57 = vrot.slane %v4644_v45, 4  ;;  %v4640_v6 = vrot.slane %v4639_v4, 2 }
 0x800   : > { %v4635_v10 = vrot.slane %v4634_v36, 1 }
 0x801   : > { %v4651_v14 = vadd.f32 %v4605_v1, %v4604_v29  ;;  %v4646_v5 = vadd.f32 %v4645_v57, %v4644_v45  ;;  %v4641_v32 = vadd.f32 %v4640_v6, %v4639_v4 }
 0x802   : > { %v4486_v47 = vpop.permute.xlu1 %4485  ;;  %v4481_v49 = vpop.permute.xlu0 %4480 }
 0x803   : > { %v4607_v11 = vmul.f32 %v4486_v47, %v8535_v30  ;;  %v4606_v27 = vmul.f32 %v4481_v49, %v8536_v63  ;;  %v4652_v12 = vrot.slane %v4651_v14, 4  ;;  %v4647_v24 = vrot.slane %v4646_v5, 2 }
 0x804   : > { %v4642_v61 = vrot.slane %v4641_v32, 1 }
 0x805   : > { %v4658_v43 = vadd.f32 %v4607_v11, %v4606_v27  ;;  %v4653_v35 = vadd.f32 %v4652_v12, %v4651_v14  ;;  %v4648_v40 = vadd.f32 %v4647_v24, %v4646_v5  ;;  %v4636_v11 = vadd.f32 %v4635_v10, %v4634_v36 }
 0x806   : > { %v4496_v7 = vpop.permute.xlu1 %4495  ;;  %v4491_v62 = vpop.permute.xlu0 %4490  ;;  %v4643_v59 = vadd.f32 %v4642_v61, %v4641_v32  ;;  %v8551_v61 = vld [vmem:[#allocation45_spill] sm:$0xff] }
 0x807   : > { %v4659_v20 = vrot.slane %v4658_v43, 4  ;;  %v4609_v42 = vmul.f32 %v4496_v7, %v8537_v58  ;;  %v4608_v37 = vmul.f32 %v4491_v62, %v8538_v46  ;;  %v4654_v33 = vrot.slane %v4653_v35, 2  ;;  %v8544_v58 = vld [vmem:[#allocation29_spill] sm:$0xff] }
 0x808   : > { %v4649_v41 = vrot.slane %v4648_v40, 1 }
 0x809   : > { %v4660_v26 = vadd.f32 %v4659_v20, %v4658_v43  ;;  %v4665_v55 = vadd.f32 %v4609_v42, %v4608_v37  ;;  %v4655_v56 = vadd.f32 %v4654_v33, %v4653_v35  ;;  %v4758_v43 = vsel %vm3820_vm2, %v4643_v59, %v4636_v11  ;;  %v8543_v35 = vld [vmem:[#allocation32_spill] sm:$0xff]  ;;  %v8553_v59 = vld [vmem:[#allocation14_spill] sm:$0xff] }
 0x80a   : > { %v4506_v48 = vpop.permute.xlu1 %4505  ;;  %v4501_v3 = vpop.permute.xlu0 %4500  ;;  %v4650_v47 = vadd.f32 %v4649_v41, %v4648_v40  ;;  %v8547_v33 = vld [vmem:[#allocation12_spill] sm:$0xff] }
 0x80b   : > { %v4611_v2 = vmul.f32 %v4506_v48, %v8539_v38  ;;  %v4610_v15 = vmul.f32 %v4501_v3, %v8540_v54  ;;  %v4661_v17 = vrot.slane %v4660_v26, 2  ;;  %v4666_v25 = vrot.slane %v4665_v55, 4  ;;  %v8546_v48 = vld [vmem:[#allocation24_spill] sm:$0xff] }
 0x80c   : > { %v4656_v13 = vrot.slane %v4655_v56, 1  ;;  %v4759_v7 = vsel %vm3822_vm3, %v4650_v47, %v4758_v43  ;;  %v8554_v47 = vld [vmem:[#allocation15_spill] sm:$0xff]  ;;  %v8555_v43 = vld [vmem:[#allocation18_spill] sm:$0xff] }
 0x80d   : > { %v4672_v0 = vadd.f32 %v4611_v2, %v4610_v15  ;;  %v4667_v8 = vadd.f32 %v4666_v25, %v4665_v55  ;;  %v4662_v53 = vadd.f32 %v4661_v17, %v4660_v26  ;;  %v8548_v2 = vld [vmem:[#allocation30_spill] sm:$0xff] }
 0x80e   : > { %v4516_v44 = vpop.permute.xlu1 %4515  ;;  %v4511_v22 = vpop.permute.xlu0 %4510  ;;  %v4657_v63 = vadd.f32 %v4656_v13, %v4655_v56  ;;  %v8550_v56 = vld [vmem:[#allocation40_spill] sm:$0xff] }
 0x80f   : > { %v4673_v18 = vrot.slane %v4672_v0, 4  ;;  %v4613_v16 = vmul.f32 %v4516_v44, %v8541_v19  ;;  %v4612_v28 = vmul.f32 %v4511_v22, %v8542_v31  ;;  %v4668_v51 = vrot.slane %v4667_v8, 2  ;;  %v8549_v44 = vld [vmem:[#allocation36_spill] sm:$0xff] }
 0x810   : > { %v4663_v29 = vrot.slane %v4662_v53, 1  ;;  %v4760_v6 = vsel %vm3824_vm4, %v4657_v63, %v4759_v7 }
 0x811   : > { %v4674_v34 = vadd.f32 %v4673_v18, %v4672_v0  ;;  %v4679_v60 = vadd.f32 %v4613_v16, %v4612_v28  ;;  %v4669_v39 = vadd.f32 %v4668_v51, %v4667_v8 }
 0x812   : > { %v4521_v45 = vpop.permute.xlu1 %4520  ;;  %v4526_v21 = vpop.permute.xlu0 %4525  ;;  %v4664_v4 = vadd.f32 %v4663_v29, %v4662_v53 }
 0x813   : > { %v4675_v1 = vrot.slane %v4674_v34, 2  ;;  %v4680_v9 = vrot.slane %v4679_v60, 4  ;;  %v4670_v50 = vrot.slane %v4669_v39, 1  ;;  %v4614_v3 = vmul.f32 %v4521_v45, %v8546_v48 }
 0x814   : > { %v4761_v55 = vsel %vm3826_vm5, %v4664_v4, %v4760_v6  ;;  %v4615_v38 = vmul.f32 %v4526_v21, %v8547_v33 }
 0x815   : > { %v4676_v57 = vadd.f32 %v4675_v1, %v4674_v34  ;;  %v4681_v14 = vadd.f32 %v4680_v9, %v4679_v60  ;;  %v4671_v52 = vadd.f32 %v4670_v50, %v4669_v39  ;;  %v8552_v60 = vld [vmem:[#allocation43_spill] sm:$0xff] }
 0x816   : > { %v4531_v49 = vpop.permute.xlu1 %4530  ;;  %v4536_v30 = vpop.permute.xlu0 %4535  ;;  %v4686_v19 = vadd.f32 %v4615_v38, %v4614_v3 }
 0x817   : > { %v4677_v27 = vrot.slane %v4676_v57, 1  ;;  %v4682_v12 = vrot.slane %v4681_v14, 2  ;;  %v4616_v20 = vmul.f32 %v4531_v49, %v8543_v35  ;;  %v4617_v42 = vmul.f32 %v4536_v30, %v8544_v58 }
 0x818   : > { %v4762_v15 = vsel %vm3828_vm6, %v4671_v52, %v4761_v55  ;;  %v4687_v39 = vrot.slane %v4686_v19, 4  ;;  %v8557_v55 = vld [vmem:[#allocation51_spill] sm:$0xff] }
 0x819   : > { %v4683_v5 = vadd.f32 %v4682_v12, %v4681_v14  ;;  %v4678_v62 = vadd.f32 %v4677_v27, %v4676_v57  ;;  %v4693_v32 = vadd.f32 %v4617_v42, %v4616_v20 }
 0x81a   : > { %v4541_v46 = vpop.permute.xlu1 %4540  ;;  %v4546_v37 = vpop.permute.xlu0 %4545  ;;  %v4688_v57 = vadd.f32 %v4687_v39, %v4686_v19 }
 0x81b   : > { %v4684_v26 = vrot.slane %v4683_v5, 1  ;;  %v4618_v24 = vmul.f32 %v4541_v46, %v8545_v23  ;;  %v4619_v54 = vmul.f32 %v4546_v37, %v8548_v2  ;;  %v4763_v25 = vsel %vm3830_vm7, %v4678_v62, %v4762_v15  ;;  %v8558_v2 = vld [vmem:[#allocation19_spill] sm:$0xff] }
 0x81c   : > { %v4694_v31 = vrot.slane %v4693_v32, 4  ;;  %v4689_v62 = vrot.slane %v4688_v57, 2 }
 0x81d   : > { %v4685_v17 = vadd.f32 %v4684_v26, %v4683_v5  ;;  %v4700_v8 = vadd.f32 %v4619_v54, %v4618_v24  ;;  %v8556_v5 = vld [vmem:[#allocation48_spill] sm:$0xff] }
 0x81e   : > { %v4551_v0 = vpop.permute.xlu1 %4550  ;;  %v4556_v36 = vpop.permute.xlu0 %4555  ;;  %v4695_v10 = vadd.f32 %v4694_v31, %v4693_v32  ;;  %v4690_v3 = vadd.f32 %v4689_v62, %v4688_v57 }
 0x81f   : > { %v4764_v40 = vsel %vm3832_vm8, %v4685_v17, %v4763_v25  ;;  %v4620_v22 = vmul.f32 %v4551_v0, %v8549_v44  ;;  %v4621_v18 = vmul.f32 %v4556_v36, %v8550_v56  ;;  %v4701_v51 = vrot.slane %v4700_v8, 4 }
 0x820   : > { %4774 = vst [vmem:[%s8291_s27] sm:$0xff] %v4764_v40  ;;  %v4696_v11 = vrot.slane %v4695_v10, 2 }
 0x821   : > { %v4707_v16 = vadd.f32 %v4621_v18, %v4620_v22  ;;  %v4702_v9 = vadd.f32 %v4701_v51, %v4700_v8  ;;  %v4691_v8 = vrot.slane %v4690_v3, 1 }
 0x822   : > { %v4561_v28 = vpop.permute.xlu1 %4560  ;;  %v4566_v53 = vpop.permute.xlu0 %4565  ;;  %v4697_v46 = vadd.f32 %v4696_v11, %v4695_v10 }
 0x823   : > { %v4622_v34 = vmul.f32 %v4561_v28, %v8551_v61  ;;  %v4623_v41 = vmul.f32 %v4566_v53, %v8552_v60  ;;  %v4708_v45 = vrot.slane %v4707_v16, 4  ;;  %v4703_v4 = vrot.slane %v4702_v9, 2 }
 0x824   : > { %v4698_v25 = vrot.slane %v4697_v46, 1  ;;  %v4692_v51 = vadd.f32 %v4691_v8, %v4690_v3 }
 0x825   : > { %v4714_v21 = vadd.f32 %v4623_v41, %v4622_v34  ;;  %v4709_v14 = vadd.f32 %v4708_v45, %v4707_v16  ;;  %v4704_v23 = vadd.f32 %v4703_v4, %v4702_v9 }
 0x826   : > { %v4576_v13 = vpop.permute.xlu1 %4575  ;;  %v4571_v1 = vpop.permute.xlu0 %4570  ;;  %v4699_v19 = vadd.f32 %v4698_v25, %v4697_v46 }
 0x827   : > { %v4715_v29 = vrot.slane %v4714_v21, 4  ;;  %v4625_v50 = vmul.f32 %v4576_v13, %v8553_v59  ;;  %v4624_v49 = vmul.f32 %v4571_v1, %v8554_v47  ;;  %v4710_v35 = vrot.slane %v4709_v14, 2 }
 0x828   : > { %v4705_v36 = vrot.slane %v4704_v23, 1  ;;  %v4765_v41 = vsel %vm3820_vm2, %v4699_v19, %v4692_v51 }
 0x829   : > { %v4716_v30 = vadd.f32 %v4715_v29, %v4714_v21  ;;  %v4721_v63 = vadd.f32 %v4625_v50, %v4624_v49  ;;  %v4711_v33 = vadd.f32 %v4710_v35, %v4709_v14  ;;  %v4815_v14 = vld [vmem:[%s8291_s27] sm:$0xff] (%p6104_p5) }
 0x82a   : > { %v4586_v27 = vpop.permute.xlu1 %4585  ;;  %v4581_v12 = vpop.permute.xlu0 %4580  ;;  %v4706_v28 = vadd.f32 %v4705_v36, %v4704_v23  ;;  %4816 = vst [vmem:[%s4784_s17] sm:$0xff] (%p6104_p5), %v4815_v14 }
 0x82b   : > { %v4627_v52 = vmul.f32 %v4586_v27, %v8555_v43  ;;  %v4626_v7 = vmul.f32 %v4581_v12, %v8556_v5  ;;  %v4722_v20 = vrot.slane %v4721_v63, 4  ;;  %v4717_v58 = vrot.slane %v4716_v30, 2 }
 0x82c   : > { %v4712_v44 = vrot.slane %v4711_v33, 1  ;;  %v4766_v21 = vsel %vm3822_vm3, %v4706_v28, %v4765_v41 }
 0x82d   : > { %v4728_v42 = vadd.f32 %v4627_v52, %v4626_v7  ;;  %v4723_v37 = vadd.f32 %v4722_v20, %v4721_v63  ;;  %v4718_v15 = vadd.f32 %v4717_v58, %v4716_v30 }
 0x82e   : > { %v4596_v6 = vpop.permute.xlu1 %4595  ;;  %v4591_v26 = vpop.permute.xlu0 %4590  ;;  %v4713_v61 = vadd.f32 %v4712_v44, %v4711_v33 }
 0x82f   : > { %v4729_v24 = vrot.slane %v4728_v42, 4  ;;  %v4629_v48 = vmul.f32 %v4596_v6, %v8557_v55  ;;  %v4724_v38 = vrot.slane %v4723_v37, 2  ;;  %v4628_v54 = vmul.f32 %v4591_v26, %v8558_v2 }
 0x830   : > { %v4719_v56 = vrot.slane %v4718_v15, 1  ;;  %v4767_v13 = vsel %vm3824_vm4, %v4713_v61, %v4766_v21 }
 0x831   : > { %v4730_v17 = vadd.f32 %v4729_v24, %v4728_v42  ;;  %v4725_v32 = vadd.f32 %v4724_v38, %v4723_v37  ;;  %v4735_v0 = vadd.f32 %v4629_v48, %v4628_v54 }
 0x832   : > { %v4720_v60 = vadd.f32 %v4719_v56, %v4718_v15 }
 0x833   : > { %v4731_v40 = vrot.slane %v4730_v17, 2  ;;  %v4736_v22 = vrot.slane %v4735_v0, 4  ;;  %v4726_v16 = vrot.slane %v4725_v32, 1 }
 0x834   : > { %v4768_v9 = vsel %vm3826_vm5, %v4720_v60, %v4767_v13 }
 0x835   : > { %v4732_v18 = vadd.f32 %v4731_v40, %v4730_v17  ;;  %v4737_v31 = vadd.f32 %v4736_v22, %v4735_v0  ;;  %v4727_v39 = vadd.f32 %v4726_v16, %v4725_v32 }
 0x837   : > { %v4733_v53 = vrot.slane %v4732_v18, 1  ;;  %v4738_v34 = vrot.slane %v4737_v31, 2  ;;  %v4769_v29 = vsel %vm3828_vm6, %v4727_v39, %v4768_v9 }
 0x839   : > { %v4739_v45 = vadd.f32 %v4738_v34, %v4737_v31  ;;  %v4734_v10 = vadd.f32 %v4733_v53, %v4732_v18 }
 0x83b   : > { %v4740_v1 = vrot.slane %v4739_v45, 1  ;;  %v4770_v50 = vsel %vm3830_vm7, %v4734_v10, %v4769_v29 }
 0x83c   : > { %4782 = sbr.rel (!%p6104_p5) target bundleno = 2121 (0x849), region = 94 }
 0x83d   : > { %v4741_v59 = vadd.f32 %v4740_v1, %v4739_v45 }
 0x83f   : > { %v4771_v57 = vsel %vm3832_vm8, %v4741_v59, %v4770_v50 }
 0x840   : > { %4775 = vst [vmem:[%s8291_s27 + $0x8] sm:$0xff] %v4771_v57 }
 0x847   : > { %v4817_v47 = vld [vmem:[%s8291_s27 + $0x8] sm:$0xff] }
 0x848   : > { %4818 = vst [vmem:[%s4784_s17 + $0x10] sm:$0xff] %v4817_v47 }
 0x849 PF: > { %p15_p10 = scmp.ge.s32.totalorder %s6091_s9, 4   ;;  %s8559_s27 = smov %s6021_s28 }
 0x84a   : > { %s8560_s28 = smov %s6102_s12  ;;  %s8561_s29 = smov %s6091_s9 }
 0x84b   :  { %17 = sbr.rel (!%p15_p10) target bundleno = 2 (0x2), region = 166 }

</bundles_post_ra>
